<compile_context>
chip_gen: v6e
topology: v6e:2x2x1
jax: 0.10.0
libtpu: 0.0.40
codegen_flags: <defaults>
</compile_context>

<pallas_src>
import jax
import jax.numpy as jnp
from jax.experimental import pallas as pl
from jax.experimental.pallas import tpu as pltpu

KSIZE = 10
KPAD = 16                          # K rounded up (zero rows in w1 / zero cols in x_col1)
PAD_L = (KSIZE - 1) // 2           # 4  (torch 'same' left pad)
PAD_R = (KSIZE - 1) - PAD_L        # 5  (torch 'same' right pad)
NEG_SLOPE = 0.2                    # LeakyReLU slope
GROUP2 = 4                         # conv2 taps per partial matmul (K = 4*64  = 256)
GROUP3 = 2                         # conv3 taps per partial matmul (K = 2*128 = 256)


def _round_up(x, m):
    return (x + m - 1) // m * m


def _leaky_relu(x):
    return jnp.where(x > 0, x, NEG_SLOPE * x)


def fingan_disc_kernel(xcol1_ref, w1_ref, b1_ref, w2_ref, b2_ref,
                       w3_ref, b3_ref, wf1_ref, bf1_ref, wf2_ref, bf2_ref,
                       out_ref, pad1_ref, pad2_ref):
    L, tb, _ = xcol1_ref.shape

    def write_padded(pad_ref, h_f32):
        """Write activation (L, tb, C) into padded scratch (L+K-1, tb, C) as bf16.

        Only the PAD_L + PAD_R boundary rows actually read by boundary taps are
        zeroed, and they are zeroed every step (scratch persists across grid
        steps / cores, so this must NOT be gated on program_id == 0)."""
        c = pad_ref.shape[-1]
        pad_ref[pl.ds(0, PAD_L), :, :] = jnp.zeros((PAD_L, tb, c), jnp.bfloat16)
        pad_ref[pl.ds(PAD_L + L, PAD_R), :, :] = jnp.zeros((PAD_R, tb, c), jnp.bfloat16)
        pad_ref[pl.ds(PAD_L, L), :, :] = h_f32.astype(jnp.bfloat16)

    def conv_grouped(pad_ref, w_ref, b_ref, group):
        """'same' Conv1d via grouped-tap accumulation.

        pad_ref : (L+K-1, tb, Cin) bf16 padded activation (leading-dim tap
                  slices are free offsets).
        w_ref   : (K*Cin, Cout) bf16, row k*Cin + c.
        Returns (L, tb, Cout) f32 after bias + LeakyReLU."""
        cin = pad_ref.shape[-1]
        acc = None
        k0 = 0
        while k0 < KSIZE:
            g = min(group, KSIZE - k0)
            if g == 1:
                x_g = pad_ref[pl.ds(k0, L), :, :]                       # (L, tb, Cin)
            else:
                x_g = jnp.concatenate(
                    [pad_ref[pl.ds(k0 + j, L), :, :] for j in range(g)],
                    axis=-1)                                            # (L, tb, g*Cin)
            w_g = w_ref[pl.ds(k0 * cin, g * cin), :]                    # (g*Cin, Cout)
            p = jax.lax.dot_general(
                x_g, w_g, dimension_numbers=(((2,), (0,)), ((), ())),
                preferred_element_type=jnp.float32)
            acc = p if acc is None else acc + p
            k0 += g
        return _leaky_relu(acc + b_ref[...])

    # conv1 (Cin = 1): im2col over K built on the host -> one matmul (K = 16).
    h = jax.lax.dot_general(
        xcol1_ref[...], w1_ref[...],
        dimension_numbers=(((2,), (0,)), ((), ())),
        preferred_element_type=jnp.float32)
    h = _leaky_relu(h + b1_ref[...])                       # (L, tb, 64)

    write_padded(pad1_ref, h)
    h = conv_grouped(pad1_ref, w2_ref, b2_ref, GROUP2)     # (L, tb, 128)

    write_padded(pad2_ref, h)
    h = conv_grouped(pad2_ref, w3_ref, b3_ref, GROUP3)     # (L, tb, 128)

    # Flatten + Linear(128*L -> 32): L-step accumulated matmul (no concat).
    hb = h.astype(jnp.bfloat16)                            # (L, tb, 128)
    fc1 = jnp.zeros((tb, 32), jnp.float32)
    for l in range(L):
        fc1 = fc1 + jax.lax.dot_general(
            hb[l], wf1_ref[l, :, :],
            dimension_numbers=(((1,), (0,)), ((), ())),
            preferred_element_type=jnp.float32)
    fc1 = _leaky_relu(fc1 + bf1_ref[...])                  # (tb, 32)

    # TODO(synk): nn.Dropout(0.5) implemented as identity (eval-mode semantics).

    logits = jnp.dot(fc1.astype(jnp.bfloat16), wf2_ref[...],
                     preferred_element_type=jnp.float32) + bf2_ref[...]   # (tb, 1)
    out_ref[...] = jax.nn.sigmoid(logits).astype(out_ref.dtype)


def fingan_forward(x_ncl, params, *, tb=128):
    """x_ncl: (B, 1, L) float32 — same as the PyTorch discriminator input."""
    B, cin, L = x_ncl.shape
    assert cin == 1
    (w1, b1, w2, b2, w3, b3, wf1, bf1, wf2, bf2) = params
    K = KSIZE

    # Batch tiling: tb multiple of 16; force >= 2 grid steps (megacore on v7x)
    # whenever there is enough real work to split.
    tb = _round_up(max(16, tb), 16)
    tb = min(tb, _round_up(B, 16))
    Bp = _round_up(B, tb)
    if Bp // tb == 1 and tb > 16:
        tb = max(16, _round_up((tb + 1) // 2, 16))
        Bp = _round_up(B, tb)
    grid = (Bp // tb,)
    lpad = L + K - 1                          # padded-length scratch rows (25)

    # --- conv1 im2col on the host side (Cin == 1), in (L, B, K) layout -------
    x = x_ncl[:, 0, :].astype(jnp.float32)                       # (B, L)
    xp = jnp.pad(x, ((0, 0), (PAD_L, PAD_R)))                    # (B, L + K - 1)
    idx = jnp.arange(L)[:, None] + jnp.arange(K)[None, :]        # (L, K)
    x_col1 = xp[:, idx]                                          # (B, L, K)
    x_col1 = jnp.transpose(x_col1, (1, 0, 2))                    # (L, B, K)
    x_col1 = jnp.pad(x_col1, ((0, 0), (0, Bp - B), (0, KPAD - K)))
    x_col1 = x_col1.astype(jnp.bfloat16)                         # (L, Bp, 16)

    # --- weights reshaped for grouped-tap matmuls, cast to bf16 --------------
    w1k = jnp.pad(w1.reshape(K, 64), ((0, KPAD - K), (0, 0))).astype(jnp.bfloat16)  # (16, 64)
    w2k = w2.reshape(K * 64, 128).astype(jnp.bfloat16)           # (640, 128)
    w3k = w3.reshape(K * 128, 128).astype(jnp.bfloat16)          # (1280, 128)
    wf1k = wf1.astype(jnp.bfloat16)                              # (L, 128, 32)
    wf2k = wf2.astype(jnp.bfloat16)                              # (32, 1)

    const2 = lambda b: (0, 0)
    const3 = lambda b: (0, 0, 0)

    flops = (2 * Bp * L * (KPAD * 64 + K * 64 * 128 + K * 128 * 128)
             + 2 * Bp * (L * 128 * 32 + 32 * 1))
    bytes_accessed = (int(x_col1.size) * 2 + Bp * 4
                      + sum(int(a.size) * 2 for a in (w1k, w2k, w3k, wf1k, wf2k))
                      + sum(int(a.size) * 4 for a in (b1, b2, b3, bf1, bf2)))

    out = pl.pallas_call(
        fingan_disc_kernel,
        out_shape=jax.ShapeDtypeStruct((Bp, 1), jnp.float32),
        grid_spec=pltpu.PrefetchScalarGridSpec(
            num_scalar_prefetch=0,
            grid=grid,
            in_specs=[
                pl.BlockSpec((L, tb, KPAD), lambda b: (0, b, 0)),   # x tile (batch-tiled)
                pl.BlockSpec(w1k.shape, const2),                    # resident weights
                pl.BlockSpec(b1.shape, const2),
                pl.BlockSpec(w2k.shape, const2),
                pl.BlockSpec(b2.shape, const2),
                pl.BlockSpec(w3k.shape, const2),
                pl.BlockSpec(b3.shape, const2),
                pl.BlockSpec(wf1k.shape, const3),
                pl.BlockSpec(bf1.shape, const2),
                pl.BlockSpec(wf2k.shape, const2),
                pl.BlockSpec(bf2.shape, const2),
            ],
            out_specs=pl.BlockSpec((tb, 1), lambda b: (b, 0)),
            scratch_shapes=[
                pltpu.VMEM((lpad, tb, 64), jnp.bfloat16),   # padded conv2 input
                pltpu.VMEM((lpad, tb, 128), jnp.bfloat16),  # padded conv3 input
            ],
        ),
        compiler_params=pltpu.CompilerParams(
            dimension_semantics=("parallel",),
            vmem_limit_bytes=40 * 1024 * 1024),
        cost_estimate=pl.CostEstimate(
            flops=int(flops), transcendentals=int(Bp),
            bytes_accessed=int(bytes_accessed)),
    )(x_col1, w1k, b1, w2k, b2, w3k, b3, wf1k, bf1, wf2k, bf2)

    return out[:B]


def init_params(key, L):
    """Deterministic init matching FinGan._weights_init: N(0, 0.06) weights, zero bias."""
    std = 0.06
    k1, k2, k3, k4, k5 = jax.random.split(key, 5)
    # Conv1d(1, 64, 10):   torch (64, 1, 10)   -> (10, 1, 64)
    w1 = std * jax.random.normal(k1, (KSIZE, 1, 64), jnp.float32)
    b1 = jnp.zeros((1, 64), jnp.float32)
    # Conv1d(64, 128, 10): torch (128, 64, 10) -> (10, 64, 128)
    w2 = std * jax.random.normal(k2, (KSIZE, 64, 128), jnp.float32)
    b2 = jnp.zeros((1, 128), jnp.float32)
    # Conv1d(128, 128, 10): torch (128, 128, 10) -> (10, 128, 128)
    w3 = std * jax.random.normal(k3, (KSIZE, 128, 128), jnp.float32)
    b3 = jnp.zeros((1, 128), jnp.float32)
    # Linear(128*L, 32): torch (32, 128*L) -> (L, 128, 32), wf1[l,c,o] == W[o, c*L + l]
    wf1 = std * jax.random.normal(k4, (L, 128, 32), jnp.float32)
    bf1 = jnp.zeros((1, 32), jnp.float32)
    # Linear(32, 1): torch (1, 32) -> (32, 1)
    wf2 = std * jax.random.normal(k5, (32, 1), jnp.float32)
    bf2 = jnp.zeros((1, 1), jnp.float32)
    return (w1, b1, w2, b2, w3, b3, wf1, bf1, wf2, bf2)


def reference_forward(x_ncl, params):
    """Pure-JAX f32 reference (same math as the PyTorch module, eval-mode dropout)."""
    (w1, b1, w2, b2, w3, b3, wf1, bf1, wf2, bf2) = params
    lrelu = lambda t: jnp.where(t > 0, t, NEG_SLOPE * t)

    def conv(h, w, b):                              # h (B, L, Cin), w (K, Cin, Cout)
        B, L, Cin = h.shape
        hp = jnp.pad(h, ((0, 0), (PAD_L, PAD_R), (0, 0)))
        acc = jnp.zeros((B, L, w.shape[-1]), jnp.float32)
        for k in range(KSIZE):
            acc = acc + jnp.einsum('blc,co->blo', hp[:, k:k + L, :], w[k])
        return acc + b

    h = jnp.transpose(x_ncl, (0, 2, 1)).astype(jnp.float32)      # (B, L, 1)
    h = lrelu(conv(h, w1, b1))
    h = lrelu(conv(h, w2, b2))
    h = lrelu(conv(h, w3, b3))
    B, L, C = h.shape
    hf = h.reshape(B, L * C)
    fc1 = lrelu(hf @ wf1.reshape(L * C, 32) + bf1)
    logits = fc1 @ wf2 + bf2
    return jax.nn.sigmoid(logits)


if __name__ == "__main__":
    key = jax.random.PRNGKey(0)
    B, L = 2, 16                        # disc_config['input_dim'] = 16
    k_x, k_p = jax.random.split(key)
    x = jax.random.normal(k_x, (B, 1, L), jnp.float32)   # NCL, like torch Conv1d input
    params = init_params(k_p, L)

    out = fingan_forward(x, params)
    out = jax.block_until_ready(out)

    assert out.shape == (B, 1) and out.dtype == jnp.float32
    assert bool(jnp.all((out >= 0.0) & (out <= 1.0)))

    ref = reference_forward(x, params)
    assert bool(jnp.allclose(out, ref, atol=5e-2)), (out, ref)   # bf16 matmul tolerance

    print("KERNEL_OK")
</pallas_src>

<mosaic_0001>
module attributes {stable_mosaic.version = 11 : i64} {
  func.func @fingan_disc_kernel(%arg0: i32, %arg1: memref<16x16x16xbf16, #tpu.memory_space<vmem>>, %arg2: memref<16x64xbf16, #tpu.memory_space<vmem>>, %arg3: memref<1x64xf32, #tpu.memory_space<vmem>>, %arg4: memref<640x128xbf16, #tpu.memory_space<vmem>>, %arg5: memref<1x128xf32, #tpu.memory_space<vmem>>, %arg6: memref<1280x128xbf16, #tpu.memory_space<vmem>>, %arg7: memref<1x128xf32, #tpu.memory_space<vmem>>, %arg8: memref<16x128x32xbf16, #tpu.memory_space<vmem>>, %arg9: memref<1x32xf32, #tpu.memory_space<vmem>>, %arg10: memref<32x1xbf16, #tpu.memory_space<vmem>>, %arg11: memref<1x1xf32, #tpu.memory_space<vmem>>, %arg12: memref<16x1xf32, #tpu.memory_space<vmem>>, %arg13: memref<25x16x64xbf16, #tpu.memory_space<vmem>>, %arg14: memref<25x16x128xbf16, #tpu.memory_space<vmem>>) attributes {dimension_semantics = [#tpu.dimension_semantics<parallel>], iteration_bounds = array<i64: 1>, scalar_prefetch = 0 : i64, scratch_operands = 2 : i64, tpu.core_type = #tpu.core_type<tc>, window_params = [{transform_indices = @transform_0, window_bounds = array<i64: 16, 16, 16>}, {pipeline_mode = #tpu.pipeline_mode<synchronous>, transform_indices = @transform_1, window_bounds = array<i64: 16, 64>}, {pipeline_mode = #tpu.pipeline_mode<synchronous>, transform_indices = @transform_2, window_bounds = array<i64: 1, 64>}, {pipeline_mode = #tpu.pipeline_mode<synchronous>, transform_indices = @transform_3, window_bounds = array<i64: 640, 128>}, {pipeline_mode = #tpu.pipeline_mode<synchronous>, transform_indices = @transform_4, window_bounds = array<i64: 1, 128>}, {pipeline_mode = #tpu.pipeline_mode<synchronous>, transform_indices = @transform_5, window_bounds = array<i64: 1280, 128>}, {pipeline_mode = #tpu.pipeline_mode<synchronous>, transform_indices = @transform_6, window_bounds = array<i64: 1, 128>}, {pipeline_mode = #tpu.pipeline_mode<synchronous>, transform_indices = @transform_7, window_bounds = array<i64: 16, 128, 32>}, {pipeline_mode = #tpu.pipeline_mode<synchronous>, transform_indices = @transform_8, window_bounds = array<i64: 1, 32>}, {pipeline_mode = #tpu.pipeline_mode<synchronous>, transform_indices = @transform_9, window_bounds = array<i64: 32, 1>}, {pipeline_mode = #tpu.pipeline_mode<synchronous>, transform_indices = @transform_10, window_bounds = array<i64: 1, 1>}, {transform_indices = @transform_11, window_bounds = array<i64: 16, 1>}]} {
    %c0 = arith.constant 0 : index
    %c0_0 = arith.constant 0 : index
    %c0_1 = arith.constant 0 : index
    %0 = vector.load %arg1[%c0, %c0_0, %c0_1] : memref<16x16x16xbf16, #tpu.memory_space<vmem>>, vector<16x16x16xbf16>
    %c0_2 = arith.constant 0 : index
    %c0_3 = arith.constant 0 : index
    %1 = vector.load %arg2[%c0_2, %c0_3] : memref<16x64xbf16, #tpu.memory_space<vmem>>, vector<16x64xbf16>
    %cst = arith.constant dense<0.000000e+00> : vector<16x16x64xf32>
    %2 = tpu.matmul %0, %1, %cst {dimension_numbers = #tpu.dot_dimension_numbers<[2], [0], [0, 1], [1], [0, 0, 0, 1, 1, 1], [], []>} : vector<16x16x16xbf16>, vector<16x64xbf16>, vector<16x16x64xf32> -> vector<16x16x64xf32>
    %c0_4 = arith.constant 0 : index
    %c0_5 = arith.constant 0 : index
    %3 = vector.load %arg3[%c0_4, %c0_5] : memref<1x64xf32, #tpu.memory_space<vmem>>, vector<1x64xf32>
    %4 = vector.shape_cast %3 : vector<1x64xf32> to vector<1x1x64xf32>
    %5 = vector.broadcast %4 : vector<1x1x64xf32> to vector<16x16x64xf32>
    %6 = arith.addf %2, %5 : vector<16x16x64xf32>
    %cst_6 = arith.constant 0.000000e+00 : f32
    %7 = vector.broadcast %cst_6 : f32 to vector<16x16x64xf32>
    %8 = arith.cmpf ogt, %6, %7 : vector<16x16x64xf32>
    %cst_7 = arith.constant 2.000000e-01 : f32
    %9 = vector.broadcast %cst_7 : f32 to vector<16x16x64xf32>
    %10 = arith.mulf %9, %6 : vector<16x16x64xf32>
    %11 = arith.select %8, %6, %10 : vector<16x16x64xi1>, vector<16x16x64xf32>
    %cst_8 = arith.constant 0.000000e+00 : bf16
    %12 = vector.broadcast %cst_8 : bf16 to vector<4x16x64xbf16>
    %c0_9 = arith.constant 0 : index
    %c0_10 = arith.constant 0 : index
    %c0_11 = arith.constant 0 : index
    %13 = vector.load %arg13[%c0_9, %c0_10, %c0_11] : memref<25x16x64xbf16, #tpu.memory_space<vmem>>, vector<4x16x64xbf16>
    tpu.vector_store %arg13[%c0_9, %c0_10, %c0_11], %12 {strides = array<i32>} : memref<25x16x64xbf16, #tpu.memory_space<vmem>>, vector<4x16x64xbf16>,
    %cst_12 = arith.constant 0.000000e+00 : bf16
    %14 = vector.broadcast %cst_12 : bf16 to vector<5x16x64xbf16>
    %c20 = arith.constant 20 : index
    %c0_13 = arith.constant 0 : index
    %c0_14 = arith.constant 0 : index
    %15 = vector.load %arg13[%c20, %c0_13, %c0_14] : memref<25x16x64xbf16, #tpu.memory_space<vmem>>, vector<5x16x64xbf16>
    tpu.vector_store %arg13[%c20, %c0_13, %c0_14], %14 {strides = array<i32>} : memref<25x16x64xbf16, #tpu.memory_space<vmem>>, vector<5x16x64xbf16>,
    %16 = arith.truncf %11 : vector<16x16x64xf32> to vector<16x16x64xbf16>
    %c4 = arith.constant 4 : index
    %c0_15 = arith.constant 0 : index
    %c0_16 = arith.constant 0 : index
    %17 = vector.load %arg13[%c4, %c0_15, %c0_16] : memref<25x16x64xbf16, #tpu.memory_space<vmem>>, vector<16x16x64xbf16>
    tpu.vector_store %arg13[%c4, %c0_15, %c0_16], %16 {strides = array<i32>} : memref<25x16x64xbf16, #tpu.memory_space<vmem>>, vector<16x16x64xbf16>,
    %c0_17 = arith.constant 0 : index
    %c0_18 = arith.constant 0 : index
    %c0_19 = arith.constant 0 : index
    %18 = vector.load %arg13[%c0_17, %c0_18, %c0_19] : memref<25x16x64xbf16, #tpu.memory_space<vmem>>, vector<16x16x64xbf16>
    %c1 = arith.constant 1 : index
    %c0_20 = arith.constant 0 : index
    %c0_21 = arith.constant 0 : index
    %19 = vector.load %arg13[%c1, %c0_20, %c0_21] : memref<25x16x64xbf16, #tpu.memory_space<vmem>>, vector<16x16x64xbf16>
    %c2 = arith.constant 2 : index
    %c0_22 = arith.constant 0 : index
    %c0_23 = arith.constant 0 : index
    %20 = vector.load %arg13[%c2, %c0_22, %c0_23] : memref<25x16x64xbf16, #tpu.memory_space<vmem>>, vector<16x16x64xbf16>
    %c3 = arith.constant 3 : index
    %c0_24 = arith.constant 0 : index
    %c0_25 = arith.constant 0 : index
    %21 = vector.load %arg13[%c3, %c0_24, %c0_25] : memref<25x16x64xbf16, #tpu.memory_space<vmem>>, vector<16x16x64xbf16>
    %22 = tpu.concatenate %18, %19, %20, %21 in 2 : vector<16x16x64xbf16>, vector<16x16x64xbf16>, vector<16x16x64xbf16>, vector<16x16x64xbf16> -> vector<16x16x256xbf16>
    %c0_26 = arith.constant 0 : index
    %c0_27 = arith.constant 0 : index
    %23 = vector.load %arg4[%c0_26, %c0_27] : memref<640x128xbf16, #tpu.memory_space<vmem>>, vector<256x128xbf16>
    %cst_28 = arith.constant dense<0.000000e+00> : vector<16x16x128xf32>
    %24 = tpu.matmul %22, %23, %cst_28 {dimension_numbers = #tpu.dot_dimension_numbers<[2], [0], [0, 1], [1], [0, 0, 0, 1, 1, 1], [], []>} : vector<16x16x256xbf16>, vector<256x128xbf16>, vector<16x16x128xf32> -> vector<16x16x128xf32>
    %c4_29 = arith.constant 4 : index
    %c0_30 = arith.constant 0 : index
    %c0_31 = arith.constant 0 : index
    %25 = vector.load %arg13[%c4_29, %c0_30, %c0_31] : memref<25x16x64xbf16, #tpu.memory_space<vmem>>, vector<16x16x64xbf16>
    %c5 = arith.constant 5 : index
    %c0_32 = arith.constant 0 : index
    %c0_33 = arith.constant 0 : index
    %26 = vector.load %arg13[%c5, %c0_32, %c0_33] : memref<25x16x64xbf16, #tpu.memory_space<vmem>>, vector<16x16x64xbf16>
    %c6 = arith.constant 6 : index
    %c0_34 = arith.constant 0 : index
    %c0_35 = arith.constant 0 : index
    %27 = vector.load %arg13[%c6, %c0_34, %c0_35] : memref<25x16x64xbf16, #tpu.memory_space<vmem>>, vector<16x16x64xbf16>
    %c7 = arith.constant 7 : index
    %c0_36 = arith.constant 0 : index
    %c0_37 = arith.constant 0 : index
    %28 = vector.load %arg13[%c7, %c0_36, %c0_37] : memref<25x16x64xbf16, #tpu.memory_space<vmem>>, vector<16x16x64xbf16>
    %29 = tpu.concatenate %25, %26, %27, %28 in 2 : vector<16x16x64xbf16>, vector<16x16x64xbf16>, vector<16x16x64xbf16>, vector<16x16x64xbf16> -> vector<16x16x256xbf16>
    %c256 = arith.constant 256 : index
    %c0_38 = arith.constant 0 : index
    %30 = vector.load %arg4[%c256, %c0_38] : memref<640x128xbf16, #tpu.memory_space<vmem>>, vector<256x128xbf16>
    %cst_39 = arith.constant dense<0.000000e+00> : vector<16x16x128xf32>
    %31 = tpu.matmul %29, %30, %cst_39 {dimension_numbers = #tpu.dot_dimension_numbers<[2], [0], [0, 1], [1], [0, 0, 0, 1, 1, 1], [], []>} : vector<16x16x256xbf16>, vector<256x128xbf16>, vector<16x16x128xf32> -> vector<16x16x128xf32>
    %32 = arith.addf %24, %31 : vector<16x16x128xf32>
    %c8 = arith.constant 8 : index
    %c0_40 = arith.constant 0 : index
    %c0_41 = arith.constant 0 : index
    %33 = vector.load %arg13[%c8, %c0_40, %c0_41] : memref<25x16x64xbf16, #tpu.memory_space<vmem>>, vector<16x16x64xbf16>
    %c9 = arith.constant 9 : index
    %c0_42 = arith.constant 0 : index
    %c0_43 = arith.constant 0 : index
    %34 = vector.load %arg13[%c9, %c0_42, %c0_43] : memref<25x16x64xbf16, #tpu.memory_space<vmem>>, vector<16x16x64xbf16>
    %35 = tpu.concatenate %33, %34 in 2 : vector<16x16x64xbf16>, vector<16x16x64xbf16> -> vector<16x16x128xbf16>
    %c512 = arith.constant 512 : index
    %c0_44 = arith.constant 0 : index
    %36 = vector.load %arg4[%c512, %c0_44] : memref<640x128xbf16, #tpu.memory_space<vmem>>, vector<128x128xbf16>
    %cst_45 = arith.constant dense<0.000000e+00> : vector<16x16x128xf32>
    %37 = tpu.matmul %35, %36, %cst_45 {dimension_numbers = #tpu.dot_dimension_numbers<[2], [0], [0, 1], [1], [0, 0, 0, 1, 1, 1], [], []>} : vector<16x16x128xbf16>, vector<128x128xbf16>, vector<16x16x128xf32> -> vector<16x16x128xf32>
    %38 = arith.addf %32, %37 : vector<16x16x128xf32>
    %c0_46 = arith.constant 0 : index
    %c0_47 = arith.constant 0 : index
    %39 = vector.load %arg5[%c0_46, %c0_47] : memref<1x128xf32, #tpu.memory_space<vmem>>, vector<1x128xf32>
    %40 = vector.shape_cast %39 : vector<1x128xf32> to vector<1x1x128xf32>
    %41 = vector.broadcast %40 : vector<1x1x128xf32> to vector<16x16x128xf32>
    %42 = arith.addf %38, %41 : vector<16x16x128xf32>
    %cst_48 = arith.constant 0.000000e+00 : f32
    %43 = vector.broadcast %cst_48 : f32 to vector<16x16x128xf32>
    %44 = arith.cmpf ogt, %42, %43 : vector<16x16x128xf32>
    %cst_49 = arith.constant 2.000000e-01 : f32
    %45 = vector.broadcast %cst_49 : f32 to vector<16x16x128xf32>
    %46 = arith.mulf %45, %42 : vector<16x16x128xf32>
    %47 = arith.select %44, %42, %46 : vector<16x16x128xi1>, vector<16x16x128xf32>
    %cst_50 = arith.constant 0.000000e+00 : bf16
    %48 = vector.broadcast %cst_50 : bf16 to vector<4x16x128xbf16>
    %c0_51 = arith.constant 0 : index
    %c0_52 = arith.constant 0 : index
    %c0_53 = arith.constant 0 : index
    %49 = vector.load %arg14[%c0_51, %c0_52, %c0_53] : memref<25x16x128xbf16, #tpu.memory_space<vmem>>, vector<4x16x128xbf16>
    tpu.vector_store %arg14[%c0_51, %c0_52, %c0_53], %48 {strides = array<i32>} : memref<25x16x128xbf16, #tpu.memory_space<vmem>>, vector<4x16x128xbf16>,
    %cst_54 = arith.constant 0.000000e+00 : bf16
    %50 = vector.broadcast %cst_54 : bf16 to vector<5x16x128xbf16>
    %c20_55 = arith.constant 20 : index
    %c0_56 = arith.constant 0 : index
    %c0_57 = arith.constant 0 : index
    %51 = vector.load %arg14[%c20_55, %c0_56, %c0_57] : memref<25x16x128xbf16, #tpu.memory_space<vmem>>, vector<5x16x128xbf16>
    tpu.vector_store %arg14[%c20_55, %c0_56, %c0_57], %50 {strides = array<i32>} : memref<25x16x128xbf16, #tpu.memory_space<vmem>>, vector<5x16x128xbf16>,
    %52 = arith.truncf %47 : vector<16x16x128xf32> to vector<16x16x128xbf16>
    %c4_58 = arith.constant 4 : index
    %c0_59 = arith.constant 0 : index
    %c0_60 = arith.constant 0 : index
    %53 = vector.load %arg14[%c4_58, %c0_59, %c0_60] : memref<25x16x128xbf16, #tpu.memory_space<vmem>>, vector<16x16x128xbf16>
    tpu.vector_store %arg14[%c4_58, %c0_59, %c0_60], %52 {strides = array<i32>} : memref<25x16x128xbf16, #tpu.memory_space<vmem>>, vector<16x16x128xbf16>,
    %c0_61 = arith.constant 0 : index
    %c0_62 = arith.constant 0 : index
    %c0_63 = arith.constant 0 : index
    %54 = vector.load %arg14[%c0_61, %c0_62, %c0_63] : memref<25x16x128xbf16, #tpu.memory_space<vmem>>, vector<16x16x128xbf16>
    %c1_64 = arith.constant 1 : index
    %c0_65 = arith.constant 0 : index
    %c0_66 = arith.constant 0 : index
    %55 = vector.load %arg14[%c1_64, %c0_65, %c0_66] : memref<25x16x128xbf16, #tpu.memory_space<vmem>>, vector<16x16x128xbf16>
    %56 = tpu.concatenate %54, %55 in 2 : vector<16x16x128xbf16>, vector<16x16x128xbf16> -> vector<16x16x256xbf16>
    %c0_67 = arith.constant 0 : index
    %c0_68 = arith.constant 0 : index
    %57 = vector.load %arg6[%c0_67, %c0_68] : memref<1280x128xbf16, #tpu.memory_space<vmem>>, vector<256x128xbf16>
    %cst_69 = arith.constant dense<0.000000e+00> : vector<16x16x128xf32>
    %58 = tpu.matmul %56, %57, %cst_69 {dimension_numbers = #tpu.dot_dimension_numbers<[2], [0], [0, 1], [1], [0, 0, 0, 1, 1, 1], [], []>} : vector<16x16x256xbf16>, vector<256x128xbf16>, vector<16x16x128xf32> -> vector<16x16x128xf32>
    %c2_70 = arith.constant 2 : index
    %c0_71 = arith.constant 0 : index
    %c0_72 = arith.constant 0 : index
    %59 = vector.load %arg14[%c2_70, %c0_71, %c0_72] : memref<25x16x128xbf16, #tpu.memory_space<vmem>>, vector<16x16x128xbf16>
    %c3_73 = arith.constant 3 : index
    %c0_74 = arith.constant 0 : index
    %c0_75 = arith.constant 0 : index
    %60 = vector.load %arg14[%c3_73, %c0_74, %c0_75] : memref<25x16x128xbf16, #tpu.memory_space<vmem>>, vector<16x16x128xbf16>
    %61 = tpu.concatenate %59, %60 in 2 : vector<16x16x128xbf16>, vector<16x16x128xbf16> -> vector<16x16x256xbf16>
    %c256_76 = arith.constant 256 : index
    %c0_77 = arith.constant 0 : index
    %62 = vector.load %arg6[%c256_76, %c0_77] : memref<1280x128xbf16, #tpu.memory_space<vmem>>, vector<256x128xbf16>
    %cst_78 = arith.constant dense<0.000000e+00> : vector<16x16x128xf32>
    %63 = tpu.matmul %61, %62, %cst_78 {dimension_numbers = #tpu.dot_dimension_numbers<[2], [0], [0, 1], [1], [0, 0, 0, 1, 1, 1], [], []>} : vector<16x16x256xbf16>, vector<256x128xbf16>, vector<16x16x128xf32> -> vector<16x16x128xf32>
    %64 = arith.addf %58, %63 : vector<16x16x128xf32>
    %c4_79 = arith.constant 4 : index
    %c0_80 = arith.constant 0 : index
    %c0_81 = arith.constant 0 : index
    %65 = vector.load %arg14[%c4_79, %c0_80, %c0_81] : memref<25x16x128xbf16, #tpu.memory_space<vmem>>, vector<16x16x128xbf16>
    %c5_82 = arith.constant 5 : index
    %c0_83 = arith.constant 0 : index
    %c0_84 = arith.constant 0 : index
    %66 = vector.load %arg14[%c5_82, %c0_83, %c0_84] : memref<25x16x128xbf16, #tpu.memory_space<vmem>>, vector<16x16x128xbf16>
    %67 = tpu.concatenate %65, %66 in 2 : vector<16x16x128xbf16>, vector<16x16x128xbf16> -> vector<16x16x256xbf16>
    %c512_85 = arith.constant 512 : index
    %c0_86 = arith.constant 0 : index
    %68 = vector.load %arg6[%c512_85, %c0_86] : memref<1280x128xbf16, #tpu.memory_space<vmem>>, vector<256x128xbf16>
    %cst_87 = arith.constant dense<0.000000e+00> : vector<16x16x128xf32>
    %69 = tpu.matmul %67, %68, %cst_87 {dimension_numbers = #tpu.dot_dimension_numbers<[2], [0], [0, 1], [1], [0, 0, 0, 1, 1, 1], [], []>} : vector<16x16x256xbf16>, vector<256x128xbf16>, vector<16x16x128xf32> -> vector<16x16x128xf32>
    %70 = arith.addf %64, %69 : vector<16x16x128xf32>
    %c6_88 = arith.constant 6 : index
    %c0_89 = arith.constant 0 : index
    %c0_90 = arith.constant 0 : index
    %71 = vector.load %arg14[%c6_88, %c0_89, %c0_90] : memref<25x16x128xbf16, #tpu.memory_space<vmem>>, vector<16x16x128xbf16>
    %c7_91 = arith.constant 7 : index
    %c0_92 = arith.constant 0 : index
    %c0_93 = arith.constant 0 : index
    %72 = vector.load %arg14[%c7_91, %c0_92, %c0_93] : memref<25x16x128xbf16, #tpu.memory_space<vmem>>, vector<16x16x128xbf16>
    %73 = tpu.concatenate %71, %72 in 2 : vector<16x16x128xbf16>, vector<16x16x128xbf16> -> vector<16x16x256xbf16>
    %c768 = arith.constant 768 : index
    %c0_94 = arith.constant 0 : index
    %74 = vector.load %arg6[%c768, %c0_94] : memref<1280x128xbf16, #tpu.memory_space<vmem>>, vector<256x128xbf16>
    %cst_95 = arith.constant dense<0.000000e+00> : vector<16x16x128xf32>
    %75 = tpu.matmul %73, %74, %cst_95 {dimension_numbers = #tpu.dot_dimension_numbers<[2], [0], [0, 1], [1], [0, 0, 0, 1, 1, 1], [], []>} : vector<16x16x256xbf16>, vector<256x128xbf16>, vector<16x16x128xf32> -> vector<16x16x128xf32>
    %76 = arith.addf %70, %75 : vector<16x16x128xf32>
    %c8_96 = arith.constant 8 : index
    %c0_97 = arith.constant 0 : index
    %c0_98 = arith.constant 0 : index
    %77 = vector.load %arg14[%c8_96, %c0_97, %c0_98] : memref<25x16x128xbf16, #tpu.memory_space<vmem>>, vector<16x16x128xbf16>
    %c9_99 = arith.constant 9 : index
    %c0_100 = arith.constant 0 : index
    %c0_101 = arith.constant 0 : index
    %78 = vector.load %arg14[%c9_99, %c0_100, %c0_101] : memref<25x16x128xbf16, #tpu.memory_space<vmem>>, vector<16x16x128xbf16>
    %79 = tpu.concatenate %77, %78 in 2 : vector<16x16x128xbf16>, vector<16x16x128xbf16> -> vector<16x16x256xbf16>
    %c1024 = arith.constant 1024 : index
    %c0_102 = arith.constant 0 : index
    %80 = vector.load %arg6[%c1024, %c0_102] : memref<1280x128xbf16, #tpu.memory_space<vmem>>, vector<256x128xbf16>
    %cst_103 = arith.constant dense<0.000000e+00> : vector<16x16x128xf32>
    %81 = tpu.matmul %79, %80, %cst_103 {dimension_numbers = #tpu.dot_dimension_numbers<[2], [0], [0, 1], [1], [0, 0, 0, 1, 1, 1], [], []>} : vector<16x16x256xbf16>, vector<256x128xbf16>, vector<16x16x128xf32> -> vector<16x16x128xf32>
    %82 = arith.addf %76, %81 : vector<16x16x128xf32>
    %c0_104 = arith.constant 0 : index
    %c0_105 = arith.constant 0 : index
    %83 = vector.load %arg7[%c0_104, %c0_105] : memref<1x128xf32, #tpu.memory_space<vmem>>, vector<1x128xf32>
    %84 = vector.shape_cast %83 : vector<1x128xf32> to vector<1x1x128xf32>
    %85 = vector.broadcast %84 : vector<1x1x128xf32> to vector<16x16x128xf32>
    %86 = arith.addf %82, %85 : vector<16x16x128xf32>
    %cst_106 = arith.constant 0.000000e+00 : f32
    %87 = vector.broadcast %cst_106 : f32 to vector<16x16x128xf32>
    %88 = arith.cmpf ogt, %86, %87 : vector<16x16x128xf32>
    %cst_107 = arith.constant 2.000000e-01 : f32
    %89 = vector.broadcast %cst_107 : f32 to vector<16x16x128xf32>
    %90 = arith.mulf %89, %86 : vector<16x16x128xf32>
    %91 = arith.select %88, %86, %90 : vector<16x16x128xi1>, vector<16x16x128xf32>
    %92 = arith.truncf %91 : vector<16x16x128xf32> to vector<16x16x128xbf16>
    %cst_108 = arith.constant 0.000000e+00 : f32
    %93 = vector.broadcast %cst_108 : f32 to vector<16x32xf32>
    %94 = vector.extract_strided_slice %92 {offsets = [0, 0, 0], sizes = [1, 16, 128], strides = [1, 1, 1]} : vector<16x16x128xbf16> to vector<1x16x128xbf16>
    %95 = vector.shape_cast %94 : vector<1x16x128xbf16> to vector<16x128xbf16>
    %c0_109 = arith.constant 0 : index
    %c0_110 = arith.constant 0 : index
    %c0_111 = arith.constant 0 : index
    %96 = vector.load %arg8[%c0_109, %c0_110, %c0_111] : memref<16x128x32xbf16, #tpu.memory_space<vmem>>, vector<1x128x32xbf16>
    %97 = vector.shape_cast %96 : vector<1x128x32xbf16> to vector<128x32xbf16>
    %cst_112 = arith.constant dense<0.000000e+00> : vector<16x32xf32>
    %98 = tpu.matmul %95, %97, %cst_112 {dimension_numbers = #tpu.dot_dimension_numbers<[1], [0], [0], [1], [0, 0, 1, 1], [], []>} : vector<16x128xbf16>, vector<128x32xbf16>, vector<16x32xf32> -> vector<16x32xf32>
    %99 = arith.addf %93, %98 : vector<16x32xf32>
    %100 = vector.extract_strided_slice %92 {offsets = [1, 0, 0], sizes = [1, 16, 128], strides = [1, 1, 1]} : vector<16x16x128xbf16> to vector<1x16x128xbf16>
    %101 = vector.shape_cast %100 : vector<1x16x128xbf16> to vector<16x128xbf16>
    %c1_113 = arith.constant 1 : index
    %c0_114 = arith.constant 0 : index
    %c0_115 = arith.constant 0 : index
    %102 = vector.load %arg8[%c1_113, %c0_114, %c0_115] : memref<16x128x32xbf16, #tpu.memory_space<vmem>>, vector<1x128x32xbf16>
    %103 = vector.shape_cast %102 : vector<1x128x32xbf16> to vector<128x32xbf16>
    %cst_116 = arith.constant dense<0.000000e+00> : vector<16x32xf32>
    %104 = tpu.matmul %101, %103, %cst_116 {dimension_numbers = #tpu.dot_dimension_numbers<[1], [0], [0], [1], [0, 0, 1, 1], [], []>} : vector<16x128xbf16>, vector<128x32xbf16>, vector<16x32xf32> -> vector<16x32xf32>
    %105 = arith.addf %99, %104 : vector<16x32xf32>
    %106 = vector.extract_strided_slice %92 {offsets = [2, 0, 0], sizes = [1, 16, 128], strides = [1, 1, 1]} : vector<16x16x128xbf16> to vector<1x16x128xbf16>
    %107 = vector.shape_cast %106 : vector<1x16x128xbf16> to vector<16x128xbf16>
    %c2_117 = arith.constant 2 : index
    %c0_118 = arith.constant 0 : index
    %c0_119 = arith.constant 0 : index
    %108 = vector.load %arg8[%c2_117, %c0_118, %c0_119] : memref<16x128x32xbf16, #tpu.memory_space<vmem>>, vector<1x128x32xbf16>
    %109 = vector.shape_cast %108 : vector<1x128x32xbf16> to vector<128x32xbf16>
    %cst_120 = arith.constant dense<0.000000e+00> : vector<16x32xf32>
    %110 = tpu.matmul %107, %109, %cst_120 {dimension_numbers = #tpu.dot_dimension_numbers<[1], [0], [0], [1], [0, 0, 1, 1], [], []>} : vector<16x128xbf16>, vector<128x32xbf16>, vector<16x32xf32> -> vector<16x32xf32>
    %111 = arith.addf %105, %110 : vector<16x32xf32>
    %112 = vector.extract_strided_slice %92 {offsets = [3, 0, 0], sizes = [1, 16, 128], strides = [1, 1, 1]} : vector<16x16x128xbf16> to vector<1x16x128xbf16>
    %113 = vector.shape_cast %112 : vector<1x16x128xbf16> to vector<16x128xbf16>
    %c3_121 = arith.constant 3 : index
    %c0_122 = arith.constant 0 : index
    %c0_123 = arith.constant 0 : index
    %114 = vector.load %arg8[%c3_121, %c0_122, %c0_123] : memref<16x128x32xbf16, #tpu.memory_space<vmem>>, vector<1x128x32xbf16>
    %115 = vector.shape_cast %114 : vector<1x128x32xbf16> to vector<128x32xbf16>
    %cst_124 = arith.constant dense<0.000000e+00> : vector<16x32xf32>
    %116 = tpu.matmul %113, %115, %cst_124 {dimension_numbers = #tpu.dot_dimension_numbers<[1], [0], [0], [1], [0, 0, 1, 1], [], []>} : vector<16x128xbf16>, vector<128x32xbf16>, vector<16x32xf32> -> vector<16x32xf32>
    %117 = arith.addf %111, %116 : vector<16x32xf32>
    %118 = vector.extract_strided_slice %92 {offsets = [4, 0, 0], sizes = [1, 16, 128], strides = [1, 1, 1]} : vector<16x16x128xbf16> to vector<1x16x128xbf16>
    %119 = vector.shape_cast %118 : vector<1x16x128xbf16> to vector<16x128xbf16>
    %c4_125 = arith.constant 4 : index
    %c0_126 = arith.constant 0 : index
    %c0_127 = arith.constant 0 : index
    %120 = vector.load %arg8[%c4_125, %c0_126, %c0_127] : memref<16x128x32xbf16, #tpu.memory_space<vmem>>, vector<1x128x32xbf16>
    %121 = vector.shape_cast %120 : vector<1x128x32xbf16> to vector<128x32xbf16>
    %cst_128 = arith.constant dense<0.000000e+00> : vector<16x32xf32>
    %122 = tpu.matmul %119, %121, %cst_128 {dimension_numbers = #tpu.dot_dimension_numbers<[1], [0], [0], [1], [0, 0, 1, 1], [], []>} : vector<16x128xbf16>, vector<128x32xbf16>, vector<16x32xf32> -> vector<16x32xf32>
    %123 = arith.addf %117, %122 : vector<16x32xf32>
    %124 = vector.extract_strided_slice %92 {offsets = [5, 0, 0], sizes = [1, 16, 128], strides = [1, 1, 1]} : vector<16x16x128xbf16> to vector<1x16x128xbf16>
    %125 = vector.shape_cast %124 : vector<1x16x128xbf16> to vector<16x128xbf16>
    %c5_129 = arith.constant 5 : index
    %c0_130 = arith.constant 0 : index
    %c0_131 = arith.constant 0 : index
    %126 = vector.load %arg8[%c5_129, %c0_130, %c0_131] : memref<16x128x32xbf16, #tpu.memory_space<vmem>>, vector<1x128x32xbf16>
    %127 = vector.shape_cast %126 : vector<1x128x32xbf16> to vector<128x32xbf16>
    %cst_132 = arith.constant dense<0.000000e+00> : vector<16x32xf32>
    %128 = tpu.matmul %125, %127, %cst_132 {dimension_numbers = #tpu.dot_dimension_numbers<[1], [0], [0], [1], [0, 0, 1, 1], [], []>} : vector<16x128xbf16>, vector<128x32xbf16>, vector<16x32xf32> -> vector<16x32xf32>
    %129 = arith.addf %123, %128 : vector<16x32xf32>
    %130 = vector.extract_strided_slice %92 {offsets = [6, 0, 0], sizes = [1, 16, 128], strides = [1, 1, 1]} : vector<16x16x128xbf16> to vector<1x16x128xbf16>
    %131 = vector.shape_cast %130 : vector<1x16x128xbf16> to vector<16x128xbf16>
    %c6_133 = arith.constant 6 : index
    %c0_134 = arith.constant 0 : index
    %c0_135 = arith.constant 0 : index
    %132 = vector.load %arg8[%c6_133, %c0_134, %c0_135] : memref<16x128x32xbf16, #tpu.memory_space<vmem>>, vector<1x128x32xbf16>
    %133 = vector.shape_cast %132 : vector<1x128x32xbf16> to vector<128x32xbf16>
    %cst_136 = arith.constant dense<0.000000e+00> : vector<16x32xf32>
    %134 = tpu.matmul %131, %133, %cst_136 {dimension_numbers = #tpu.dot_dimension_numbers<[1], [0], [0], [1], [0, 0, 1, 1], [], []>} : vector<16x128xbf16>, vector<128x32xbf16>, vector<16x32xf32> -> vector<16x32xf32>
    %135 = arith.addf %129, %134 : vector<16x32xf32>
    %136 = vector.extract_strided_slice %92 {offsets = [7, 0, 0], sizes = [1, 16, 128], strides = [1, 1, 1]} : vector<16x16x128xbf16> to vector<1x16x128xbf16>
    %137 = vector.shape_cast %136 : vector<1x16x128xbf16> to vector<16x128xbf16>
    %c7_137 = arith.constant 7 : index
    %c0_138 = arith.constant 0 : index
    %c0_139 = arith.constant 0 : index
    %138 = vector.load %arg8[%c7_137, %c0_138, %c0_139] : memref<16x128x32xbf16, #tpu.memory_space<vmem>>, vector<1x128x32xbf16>
    %139 = vector.shape_cast %138 : vector<1x128x32xbf16> to vector<128x32xbf16>
    %cst_140 = arith.constant dense<0.000000e+00> : vector<16x32xf32>
    %140 = tpu.matmul %137, %139, %cst_140 {dimension_numbers = #tpu.dot_dimension_numbers<[1], [0], [0], [1], [0, 0, 1, 1], [], []>} : vector<16x128xbf16>, vector<128x32xbf16>, vector<16x32xf32> -> vector<16x32xf32>
    %141 = arith.addf %135, %140 : vector<16x32xf32>
    %142 = vector.extract_strided_slice %92 {offsets = [8, 0, 0], sizes = [1, 16, 128], strides = [1, 1, 1]} : vector<16x16x128xbf16> to vector<1x16x128xbf16>
    %143 = vector.shape_cast %142 : vector<1x16x128xbf16> to vector<16x128xbf16>
    %c8_141 = arith.constant 8 : index
    %c0_142 = arith.constant 0 : index
    %c0_143 = arith.constant 0 : index
    %144 = vector.load %arg8[%c8_141, %c0_142, %c0_143] : memref<16x128x32xbf16, #tpu.memory_space<vmem>>, vector<1x128x32xbf16>
    %145 = vector.shape_cast %144 : vector<1x128x32xbf16> to vector<128x32xbf16>
    %cst_144 = arith.constant dense<0.000000e+00> : vector<16x32xf32>
    %146 = tpu.matmul %143, %145, %cst_144 {dimension_numbers = #tpu.dot_dimension_numbers<[1], [0], [0], [1], [0, 0, 1, 1], [], []>} : vector<16x128xbf16>, vector<128x32xbf16>, vector<16x32xf32> -> vector<16x32xf32>
    %147 = arith.addf %141, %146 : vector<16x32xf32>
    %148 = vector.extract_strided_slice %92 {offsets = [9, 0, 0], sizes = [1, 16, 128], strides = [1, 1, 1]} : vector<16x16x128xbf16> to vector<1x16x128xbf16>
    %149 = vector.shape_cast %148 : vector<1x16x128xbf16> to vector<16x128xbf16>
    %c9_145 = arith.constant 9 : index
    %c0_146 = arith.constant 0 : index
    %c0_147 = arith.constant 0 : index
    %150 = vector.load %arg8[%c9_145, %c0_146, %c0_147] : memref<16x128x32xbf16, #tpu.memory_space<vmem>>, vector<1x128x32xbf16>
    %151 = vector.shape_cast %150 : vector<1x128x32xbf16> to vector<128x32xbf16>
    %cst_148 = arith.constant dense<0.000000e+00> : vector<16x32xf32>
    %152 = tpu.matmul %149, %151, %cst_148 {dimension_numbers = #tpu.dot_dimension_numbers<[1], [0], [0], [1], [0, 0, 1, 1], [], []>} : vector<16x128xbf16>, vector<128x32xbf16>, vector<16x32xf32> -> vector<16x32xf32>
    %153 = arith.addf %147, %152 : vector<16x32xf32>
    %154 = vector.extract_strided_slice %92 {offsets = [10, 0, 0], sizes = [1, 16, 128], strides = [1, 1, 1]} : vector<16x16x128xbf16> to vector<1x16x128xbf16>
    %155 = vector.shape_cast %154 : vector<1x16x128xbf16> to vector<16x128xbf16>
    %c10 = arith.constant 10 : index
    %c0_149 = arith.constant 0 : index
    %c0_150 = arith.constant 0 : index
    %156 = vector.load %arg8[%c10, %c0_149, %c0_150] : memref<16x128x32xbf16, #tpu.memory_space<vmem>>, vector<1x128x32xbf16>
    %157 = vector.shape_cast %156 : vector<1x128x32xbf16> to vector<128x32xbf16>
    %cst_151 = arith.constant dense<0.000000e+00> : vector<16x32xf32>
    %158 = tpu.matmul %155, %157, %cst_151 {dimension_numbers = #tpu.dot_dimension_numbers<[1], [0], [0], [1], [0, 0, 1, 1], [], []>} : vector<16x128xbf16>, vector<128x32xbf16>, vector<16x32xf32> -> vector<16x32xf32>
    %159 = arith.addf %153, %158 : vector<16x32xf32>
    %160 = vector.extract_strided_slice %92 {offsets = [11, 0, 0], sizes = [1, 16, 128], strides = [1, 1, 1]} : vector<16x16x128xbf16> to vector<1x16x128xbf16>
    %161 = vector.shape_cast %160 : vector<1x16x128xbf16> to vector<16x128xbf16>
    %c11 = arith.constant 11 : index
    %c0_152 = arith.constant 0 : index
    %c0_153 = arith.constant 0 : index
    %162 = vector.load %arg8[%c11, %c0_152, %c0_153] : memref<16x128x32xbf16, #tpu.memory_space<vmem>>, vector<1x128x32xbf16>
    %163 = vector.shape_cast %162 : vector<1x128x32xbf16> to vector<128x32xbf16>
    %cst_154 = arith.constant dense<0.000000e+00> : vector<16x32xf32>
    %164 = tpu.matmul %161, %163, %cst_154 {dimension_numbers = #tpu.dot_dimension_numbers<[1], [0], [0], [1], [0, 0, 1, 1], [], []>} : vector<16x128xbf16>, vector<128x32xbf16>, vector<16x32xf32> -> vector<16x32xf32>
    %165 = arith.addf %159, %164 : vector<16x32xf32>
    %166 = vector.extract_strided_slice %92 {offsets = [12, 0, 0], sizes = [1, 16, 128], strides = [1, 1, 1]} : vector<16x16x128xbf16> to vector<1x16x128xbf16>
    %167 = vector.shape_cast %166 : vector<1x16x128xbf16> to vector<16x128xbf16>
    %c12 = arith.constant 12 : index
    %c0_155 = arith.constant 0 : index
    %c0_156 = arith.constant 0 : index
    %168 = vector.load %arg8[%c12, %c0_155, %c0_156] : memref<16x128x32xbf16, #tpu.memory_space<vmem>>, vector<1x128x32xbf16>
    %169 = vector.shape_cast %168 : vector<1x128x32xbf16> to vector<128x32xbf16>
    %cst_157 = arith.constant dense<0.000000e+00> : vector<16x32xf32>
    %170 = tpu.matmul %167, %169, %cst_157 {dimension_numbers = #tpu.dot_dimension_numbers<[1], [0], [0], [1], [0, 0, 1, 1], [], []>} : vector<16x128xbf16>, vector<128x32xbf16>, vector<16x32xf32> -> vector<16x32xf32>
    %171 = arith.addf %165, %170 : vector<16x32xf32>
    %172 = vector.extract_strided_slice %92 {offsets = [13, 0, 0], sizes = [1, 16, 128], strides = [1, 1, 1]} : vector<16x16x128xbf16> to vector<1x16x128xbf16>
    %173 = vector.shape_cast %172 : vector<1x16x128xbf16> to vector<16x128xbf16>
    %c13 = arith.constant 13 : index
    %c0_158 = arith.constant 0 : index
    %c0_159 = arith.constant 0 : index
    %174 = vector.load %arg8[%c13, %c0_158, %c0_159] : memref<16x128x32xbf16, #tpu.memory_space<vmem>>, vector<1x128x32xbf16>
    %175 = vector.shape_cast %174 : vector<1x128x32xbf16> to vector<128x32xbf16>
    %cst_160 = arith.constant dense<0.000000e+00> : vector<16x32xf32>
    %176 = tpu.matmul %173, %175, %cst_160 {dimension_numbers = #tpu.dot_dimension_numbers<[1], [0], [0], [1], [0, 0, 1, 1], [], []>} : vector<16x128xbf16>, vector<128x32xbf16>, vector<16x32xf32> -> vector<16x32xf32>
    %177 = arith.addf %171, %176 : vector<16x32xf32>
    %178 = vector.extract_strided_slice %92 {offsets = [14, 0, 0], sizes = [1, 16, 128], strides = [1, 1, 1]} : vector<16x16x128xbf16> to vector<1x16x128xbf16>
    %179 = vector.shape_cast %178 : vector<1x16x128xbf16> to vector<16x128xbf16>
    %c14 = arith.constant 14 : index
    %c0_161 = arith.constant 0 : index
    %c0_162 = arith.constant 0 : index
    %180 = vector.load %arg8[%c14, %c0_161, %c0_162] : memref<16x128x32xbf16, #tpu.memory_space<vmem>>, vector<1x128x32xbf16>
    %181 = vector.shape_cast %180 : vector<1x128x32xbf16> to vector<128x32xbf16>
    %cst_163 = arith.constant dense<0.000000e+00> : vector<16x32xf32>
    %182 = tpu.matmul %179, %181, %cst_163 {dimension_numbers = #tpu.dot_dimension_numbers<[1], [0], [0], [1], [0, 0, 1, 1], [], []>} : vector<16x128xbf16>, vector<128x32xbf16>, vector<16x32xf32> -> vector<16x32xf32>
    %183 = arith.addf %177, %182 : vector<16x32xf32>
    %184 = vector.extract_strided_slice %92 {offsets = [15, 0, 0], sizes = [1, 16, 128], strides = [1, 1, 1]} : vector<16x16x128xbf16> to vector<1x16x128xbf16>
    %185 = vector.shape_cast %184 : vector<1x16x128xbf16> to vector<16x128xbf16>
    %c15 = arith.constant 15 : index
    %c0_164 = arith.constant 0 : index
    %c0_165 = arith.constant 0 : index
    %186 = vector.load %arg8[%c15, %c0_164, %c0_165] : memref<16x128x32xbf16, #tpu.memory_space<vmem>>, vector<1x128x32xbf16>
    %187 = vector.shape_cast %186 : vector<1x128x32xbf16> to vector<128x32xbf16>
    %cst_166 = arith.constant dense<0.000000e+00> : vector<16x32xf32>
    %188 = tpu.matmul %185, %187, %cst_166 {dimension_numbers = #tpu.dot_dimension_numbers<[1], [0], [0], [1], [0, 0, 1, 1], [], []>} : vector<16x128xbf16>, vector<128x32xbf16>, vector<16x32xf32> -> vector<16x32xf32>
    %189 = arith.addf %183, %188 : vector<16x32xf32>
    %c0_167 = arith.constant 0 : index
    %c0_168 = arith.constant 0 : index
    %190 = vector.load %arg9[%c0_167, %c0_168] : memref<1x32xf32, #tpu.memory_space<vmem>>, vector<1x32xf32>
    %191 = vector.broadcast %190 : vector<1x32xf32> to vector<16x32xf32>
    %192 = arith.addf %189, %191 : vector<16x32xf32>
    %cst_169 = arith.constant 0.000000e+00 : f32
    %193 = vector.broadcast %cst_169 : f32 to vector<16x32xf32>
    %194 = arith.cmpf ogt, %192, %193 : vector<16x32xf32>
    %cst_170 = arith.constant 2.000000e-01 : f32
    %195 = vector.broadcast %cst_170 : f32 to vector<16x32xf32>
    %196 = arith.mulf %195, %192 : vector<16x32xf32>
    %197 = arith.select %194, %192, %196 : vector<16x32xi1>, vector<16x32xf32>
    %198 = arith.truncf %197 : vector<16x32xf32> to vector<16x32xbf16>
    %c0_171 = arith.constant 0 : index
    %c0_172 = arith.constant 0 : index
    %199 = vector.load %arg10[%c0_171, %c0_172] : memref<32x1xbf16, #tpu.memory_space<vmem>>, vector<32x1xbf16>
    %cst_173 = arith.constant dense<0.000000e+00> : vector<16x1xf32>
    %200 = tpu.matmul %198, %199, %cst_173 {dimension_numbers = #tpu.dot_dimension_numbers<[1], [0], [0], [1], [0, 0, 1, 1], [], []>} : vector<16x32xbf16>, vector<32x1xbf16>, vector<16x1xf32> -> vector<16x1xf32>
    %c0_174 = arith.constant 0 : index
    %c0_175 = arith.constant 0 : index
    %201 = vector.load %arg11[%c0_174, %c0_175] : memref<1x1xf32, #tpu.memory_space<vmem>>, vector<1x1xf32>
    %202 = vector.broadcast %201 : vector<1x1xf32> to vector<16x1xf32>
    %203 = arith.addf %200, %202 : vector<16x1xf32>
    %204 = arith.negf %203 : vector<16x1xf32>
    %205 = math.exp %204 : vector<16x1xf32>
    %cst_176 = arith.constant 1.000000e+00 : f32
    %206 = vector.broadcast %cst_176 : f32 to vector<16x1xf32>
    %207 = arith.addf %206, %205 : vector<16x1xf32>
    %208 = arith.divf %206, %207 : vector<16x1xf32>
    %c0_177 = arith.constant 0 : index
    %c0_178 = arith.constant 0 : index
    %209 = vector.load %arg12[%c0_177, %c0_178] : memref<16x1xf32, #tpu.memory_space<vmem>>, vector<16x1xf32>
    tpu.vector_store %arg12[%c0_177, %c0_178], %208 {strides = array<i32>} : memref<16x1xf32, #tpu.memory_space<vmem>>, vector<16x1xf32>,
    return
  }
  func.func @transform_0(%arg0: i32) -> (i32, i32, i32) {
    %c0_i32 = arith.constant 0 : i32
    %c0_i32_0 = arith.constant 0 : i32
    %c0_i32_1 = arith.constant 0 : i32
    return %c0_i32, %arg0, %c0_i32_0 : i32, i32, i32
  }
  func.func @transform_1(%arg0: i32) -> (i32, i32) {
    %c0_i32 = arith.constant 0 : i32
    %c0_i32_0 = arith.constant 0 : i32
    %c0_i32_1 = arith.constant 0 : i32
    return %c0_i32, %c0_i32_0 : i32, i32
  }
  func.func @transform_2(%arg0: i32) -> (i32, i32) {
    %c0_i32 = arith.constant 0 : i32
    %c0_i32_0 = arith.constant 0 : i32
    %c0_i32_1 = arith.constant 0 : i32
    return %c0_i32, %c0_i32_0 : i32, i32
  }
  func.func @transform_3(%arg0: i32) -> (i32, i32) {
    %c0_i32 = arith.constant 0 : i32
    %c0_i32_0 = arith.constant 0 : i32
    %c0_i32_1 = arith.constant 0 : i32
    return %c0_i32, %c0_i32_0 : i32, i32
  }
  func.func @transform_4(%arg0: i32) -> (i32, i32) {
    %c0_i32 = arith.constant 0 : i32
    %c0_i32_0 = arith.constant 0 : i32
    %c0_i32_1 = arith.constant 0 : i32
    return %c0_i32, %c0_i32_0 : i32, i32
  }
  func.func @transform_5(%arg0: i32) -> (i32, i32) {
    %c0_i32 = arith.constant 0 : i32
    %c0_i32_0 = arith.constant 0 : i32
    %c0_i32_1 = arith.constant 0 : i32
    return %c0_i32, %c0_i32_0 : i32, i32
  }
  func.func @transform_6(%arg0: i32) -> (i32, i32) {
    %c0_i32 = arith.constant 0 : i32
    %c0_i32_0 = arith.constant 0 : i32
    %c0_i32_1 = arith.constant 0 : i32
    return %c0_i32, %c0_i32_0 : i32, i32
  }
  func.func @transform_7(%arg0: i32) -> (i32, i32, i32) {
    %c0_i32 = arith.constant 0 : i32
    %c0_i32_0 = arith.constant 0 : i32
    %c0_i32_1 = arith.constant 0 : i32
    %c0_i32_2 = arith.constant 0 : i32
    return %c0_i32, %c0_i32_0, %c0_i32_1 : i32, i32, i32
  }
  func.func @transform_8(%arg0: i32) -> (i32, i32) {
    %c0_i32 = arith.constant 0 : i32
    %c0_i32_0 = arith.constant 0 : i32
    %c0_i32_1 = arith.constant 0 : i32
    return %c0_i32, %c0_i32_0 : i32, i32
  }
  func.func @transform_9(%arg0: i32) -> (i32, i32) {
    %c0_i32 = arith.constant 0 : i32
    %c0_i32_0 = arith.constant 0 : i32
    %c0_i32_1 = arith.constant 0 : i32
    return %c0_i32, %c0_i32_0 : i32, i32
  }
  func.func @transform_10(%arg0: i32) -> (i32, i32) {
    %c0_i32 = arith.constant 0 : i32
    %c0_i32_0 = arith.constant 0 : i32
    %c0_i32_1 = arith.constant 0 : i32
    return %c0_i32, %c0_i32_0 : i32, i32
  }
  func.func @transform_11(%arg0: i32) -> (i32, i32) {
    %c0_i32 = arith.constant 0 : i32
    %c0_i32_0 = arith.constant 0 : i32
    return %arg0, %c0_i32 : i32, i32
  }
}

</mosaic_0001>

<bundles_post_ra>
// kernel: tpu_custom_call.1
= control target key start
LH: loop header
LB: loop body
LE: loop exit
PB: predicated region body
PF: predicated region fallthrough
CT: control target
= control target key end

     0   :  { %vm168_vm0 = vcmask 130048   ;;  %vm474_vm1 = vcmask 519168   ;;  %v11276_v17 = vmov 0   ;;  %s11277_s24 = smov 64   ;;  %s13464_s1 = inlined_call_operand.vmem [shape: bf16[16,64], index: 1, kind: input, shape index: {}]   ;;  %s13465_s0 = inlined_call_operand.vmem [shape: bf16[16,16,16], index: 0, kind: input, shape index: {}]   ;;  %s13466_s3 = inlined_call_operand.vmem [shape: bf16[640,128], index: 3, kind: input, shape index: {}]   ;;  %s13467_s2 = inlined_call_operand.vmem [shape: f32[1,64], index: 2, kind: input, shape index: {}]   ;;  %s13468_s5 = inlined_call_operand.vmem [shape: bf16[1280,128], index: 5, kind: input, shape index: {}]   ;;  %s13469_s4 = inlined_call_operand.vmem [shape: f32[1,128], index: 4, kind: input, shape index: {}]   ;;  %s13470_s7 = inlined_call_operand.vmem [shape: bf16[16,128,32], index: 7, kind: input, shape index: {}]   ;;  %s13471_s6 = inlined_call_operand.vmem [shape: f32[1,128], index: 6, kind: input, shape index: {}]   ;;  %s13472_s9 = inlined_call_operand.vmem [shape: bf16[32,1], index: 9, kind: input, shape index: {}]   ;;  %s13473_s10 = inlined_call_operand.<no memory space> [shape: f32[1,1], index: 10, kind: input, shape index: {}]   ;;  %s13474_s8 = inlined_call_operand.vmem [shape: f32[1,32], index: 8, kind: input, shape index: {}]   ;;  %s13475_s11 = inlined_call_operand.vmem [shape: f32[16,1], index: 11, kind: output, shape index: {}]  }
   0x1   :  { %v10680_v0 = vld [vmem:[%s13464_s1] sm:$0xff]   ;;  %v10682_v2 = vld [vmem:[%s13465_s0 + $0x8] sm:$0xff]   ;;  %v10683_v3 = vld [vmem:[%s13465_s0 + $0x10] sm:$0xff]   ;;  %484 = vst.msk [vmem:[#allocation2 + $0xa0] sm:$0xf] %vm474_vm1, %v11276_v17 }
   0x2   :  { %v10681_v1 = vld [vmem:[%s13465_s0] sm:$0xff]   ;;  %10266 = vmatprep.subr.bf16.mxu0 %v10680_v0  ;;  %v10684_v4 = vld [vmem:[%s13465_s0 + $0x18] sm:$0xff]   ;;  %v10686_v6 = vld [vmem:[%s13465_s0 + $0x28] sm:$0xff]   ;;  %485 = vst.msk [vmem:[#allocation2 + $0xa4] sm:$0xf] %vm474_vm1, %v11276_v17 }
   0x3   :  { %10267 = vmatpush3.bf16.msra.mxu0 %v10680_v0  ;;  %10268 = vmatprep.mubr.msk.bf16.mxu0 %vm168_vm0, %v10681_v1  ;;  %v10685_v5 = vld [vmem:[%s13465_s0 + $0x20] sm:$0xff]   ;;  %v10687_v7 = vld [vmem:[%s13465_s0 + $0x30] sm:$0xff]   ;;  %v10688_v8 = vld [vmem:[%s13465_s0 + $0x38] sm:$0xff]   ;;  %475 = vst.msk [vmem:[#allocation2] sm:$0xf] %vm474_vm1, %v11276_v17 }
   0x4   :  { %v10689_v9 = vld [vmem:[%s13465_s0 + $0x40] sm:$0xff]   ;;  %v10690_v10 = vld [vmem:[%s13465_s0 + $0x48] sm:$0xff]   ;;  %v10691_v11 = vld [vmem:[%s13465_s0 + $0x50] sm:$0xff]   ;;  %476 = vst.msk [vmem:[#allocation2 + $0x4] sm:$0xf] %vm474_vm1, %v11276_v17 }
   0x5   :  { %v10692_v12 = vld [vmem:[%s13465_s0 + $0x58] sm:$0xff]   ;;  %v10693_v13 = vld [vmem:[%s13465_s0 + $0x60] sm:$0xff]   ;;  %v10694_v14 = vld [vmem:[%s13465_s0 + $0x68] sm:$0xff]   ;;  %477 = vst.msk [vmem:[#allocation2 + $0x8] sm:$0xf] %vm474_vm1, %v11276_v17 }
   0x6   :  { %10269 = vmatmul.mubr.msk.bf16.vlgmr.msra.gmra.mxu0 %vm168_vm0, %v10682_v2  ;;  %v10695_v15 = vld [vmem:[%s13465_s0 + $0x70] sm:$0xff]   ;;  %v10696_v16 = vld [vmem:[%s13465_s0 + $0x78] sm:$0xff]   ;;  %478 = vst.msk [vmem:[#allocation2 + $0xc] sm:$0xf] %vm474_vm1, %v11276_v17  ;;  %479 = vst.msk [vmem:[#allocation2 + $0x10] sm:$0xf] %vm474_vm1, %v11276_v17 }
   0x7   :  { %10272 = vmatprep.mubr.msk.bf16.mxu0 %vm168_vm0, %v10683_v3  ;;  %480 = vst.msk [vmem:[#allocation2 + $0x14] sm:$0xf] %vm474_vm1, %v11276_v17  ;;  %481 = vst.msk [vmem:[#allocation2 + $0x18] sm:$0xf] %vm474_vm1, %v11276_v17  ;;  %v10738_v18 = vld [vmem:[%s13466_s3 + $0xf8] sm:$0xff]   ;;  %v10742_v20 = vld [vmem:[%s13466_s3 + $0xf0] sm:$0xff]  }
   0x8   :  { %482 = vst.msk [vmem:[#allocation2 + $0x1c] sm:$0xf] %vm474_vm1, %v11276_v17  ;;  %486 = vst.msk [vmem:[#allocation2 + $0xa8] sm:$0xf] %vm474_vm1, %v11276_v17  ;;  %v10739_v19 = vld [vmem:[%s13466_s3 + $0xb8] sm:$0xff]   ;;  %9311 = vmatprep.subr.bf16.mxu1 %v10738_v18  ;;  %v10743_v21 = vld [vmem:[%s13466_s3 + $0xb0] sm:$0xff]  }
   0x9   :  { %487 = vst.msk [vmem:[#allocation2 + $0xac] sm:$0xf] %vm474_vm1, %v11276_v17  ;;  %488 = vst.msk [vmem:[#allocation2 + $0xb0] sm:$0xf] %vm474_vm1, %v11276_v17  ;;  %9312 = vmatpush3.bf16.msra.mxu1 %v10739_v19  ;;  %v10746_v22 = vld [vmem:[%s13466_s3 + $0xe8] sm:$0xff]   ;;  %v10750_v25 = vld [vmem:[%s13466_s3 + $0xe0] sm:$0xff]  }
   0xa   :  { %489 = vst.msk [vmem:[#allocation2 + $0xb4] sm:$0xf] %vm474_vm1, %v11276_v17  ;;  %490 = vst.msk [vmem:[#allocation2 + $0xb8] sm:$0xf] %vm474_vm1, %v11276_v17  ;;  %9313 = vmatprep.subr.bf16.mxu1 %v10742_v20  ;;  %v10747_v23 = vld [vmem:[%s13466_s3 + $0xa8] sm:$0xff]   ;;  %v10751_v26 = vld [vmem:[%s13466_s3 + $0xa0] sm:$0xff]  }
   0xb   :  { %491 = vst.msk [vmem:[#allocation2 + $0xbc] sm:$0xf] %vm474_vm1, %v11276_v17  ;;  %492 = vst.msk [vmem:[#allocation2 + $0xc0] sm:$0xf] %vm474_vm1, %v11276_v17  ;;  %v11446_v24 = vld [vmem:[%s13467_s2] ss:$0 sm:$0xff] }
   0xc   :  { %493 = vst.msk [vmem:[#allocation2 + $0xc4] sm:$0xf] %vm474_vm1, %v11276_v17  ;;  %3234 = vst [vmem:[#allocation3] sm:$0xf] %v11276_v17  ;;  %v10754_v32 = vld [vmem:[%s13466_s3 + $0xd8] sm:$0xff]   ;;  %v10758_v43 = vld [vmem:[%s13466_s3 + $0xd0] sm:$0xff]  }
   0xd   :  { %3235 = vst [vmem:[#allocation3 + $0x4] sm:$0xf] %v11276_v17  ;;  %3236 = vst [vmem:[#allocation3 + $0x8] sm:$0xf] %v11276_v17  ;;  %9314 = vmatpush3.bf16.msra.mxu1 %v10743_v21  ;;  %v10755_v33 = vld [vmem:[%s13466_s3 + $0x98] sm:$0xff]   ;;  %v10759_v44 = vld [vmem:[%s13466_s3 + $0x90] sm:$0xff]  }
   0xe   :  { %10273 = vmatmul.mubr.msk.bf16.gmra.mxu0 %vm168_vm0, %v10684_v4  ;;  %3237 = vst [vmem:[#allocation3 + $0xc] sm:$0xf] %v11276_v17  ;;  %3238 = vst [vmem:[#allocation3 + $0x10] sm:$0xf] %v11276_v17  ;;  %9315 = vmatprep.subr.bf16.mxu1 %v10746_v22  ;;  %v10762_v55 = vld [vmem:[%s13466_s3 + $0xc8] sm:$0xff]   ;;  %v10766_v3 = vld [vmem:[%s13466_s3 + $0xc0] sm:$0xff]  }
   0xf   :  { %10276 = vmatprep.mubr.msk.bf16.mxu0 %vm168_vm0, %v10685_v5  ;;  %3239 = vst [vmem:[#allocation3 + $0x14] sm:$0xf] %v11276_v17  ;;  %3240 = vst [vmem:[#allocation3 + $0x18] sm:$0xf] %v11276_v17  ;;  %v10763_v56 = vld [vmem:[%s13466_s3 + $0x88] sm:$0xff]  }
  0x10   :  { %3241 = vst [vmem:[#allocation3 + $0x1c] sm:$0xf] %v11276_v17  ;;  %3243 = vst [vmem:[#allocation3 + $0xa0] sm:$0xf] %v11276_v17 }
  0x11   :  { %3244 = vst [vmem:[#allocation3 + $0xa4] sm:$0xf] %v11276_v17  ;;  %3245 = vst [vmem:[#allocation3 + $0xa8] sm:$0xf] %v11276_v17  ;;  %9316 = vmatpush3.bf16.msra.mxu1 %v10747_v23 }
  0x12   :  { %3246 = vst [vmem:[#allocation3 + $0xac] sm:$0xf] %v11276_v17  ;;  %3247 = vst [vmem:[#allocation3 + $0xb0] sm:$0xf] %v11276_v17  ;;  %9317 = vmatprep.subr.bf16.mxu1 %v10750_v25 }
  0x13   :  { %3248 = vst [vmem:[#allocation3 + $0xb4] sm:$0xf] %v11276_v17  ;;  %3249 = vst [vmem:[#allocation3 + $0xb8] sm:$0xf] %v11276_v17 }
  0x14   :  { %3250 = vst [vmem:[#allocation3 + $0xbc] sm:$0xf] %v11276_v17  ;;  %3251 = vst [vmem:[#allocation3 + $0xc0] sm:$0xf] %v11276_v17 }
  0x15   :  { %3252 = vst [vmem:[#allocation3 + $0xc4] sm:$0xf] %v11276_v17  ;;  %9318 = vmatpush3.bf16.msra.mxu1 %v10751_v26 }
  0x16   :  { %10277 = vmatmul.mubr.msk.bf16.gmra.mxu0 %vm168_vm0, %v10686_v6  ;;  %9319 = vmatprep.subr.bf16.mxu1 %v10754_v32 }
  0x17   :  { %10280 = vmatprep.mubr.msk.bf16.mxu0 %vm168_vm0, %v10687_v7 }
  0x19   :  { %9320 = vmatpush3.bf16.msra.mxu1 %v10755_v33 }
  0x1a   :  { %9321 = vmatprep.subr.bf16.mxu1 %v10758_v43 }
  0x1d   :  { %9322 = vmatpush3.bf16.msra.mxu1 %v10759_v44 }
  0x1e   :  { %10281 = vmatmul.mubr.msk.bf16.gmra.mxu0 %vm168_vm0, %v10688_v8  ;;  %9323 = vmatprep.subr.bf16.mxu1 %v10762_v55 }
  0x1f   :  { %10284 = vmatprep.mubr.msk.bf16.mxu0 %vm168_vm0, %v10689_v9  ;;  %v10768_v9 = vld [vmem:[%s13466_s3 + $0x80] sm:$0xff]  }
  0x21   :  { %9324 = vmatpush3.bf16.msra.mxu1 %v10763_v56 }
  0x22   :  { %9325 = vmatprep.subr.bf16.mxu1 %v10766_v3 }
  0x25   :  { %9326 = vmatpush3.bf16.msra.mxu1 %v10768_v9 }
  0x26   :  { %10285 = vmatmul.mubr.msk.bf16.gmra.mxu0 %vm168_vm0, %v10690_v10 }
  0x27   :  { %10288 = vmatprep.mubr.msk.bf16.mxu0 %vm168_vm0, %v10691_v11 }
  0x2e   :  { %10289 = vmatmul.mubr.msk.bf16.gmra.mxu0 %vm168_vm0, %v10692_v12 }
  0x2f   :  { %10292 = vmatprep.mubr.msk.bf16.mxu0 %vm168_vm0, %v10693_v13 }
  0x36   :  { %10293 = vmatmul.mubr.msk.bf16.gmra.mxu0 %vm168_vm0, %v10694_v14 }
  0x37   :  { %10296 = vmatprep.mubr.msk.bf16.mxu0 %vm168_vm0, %v10695_v15 }
  0x3e   :  { %10297 = vmatmul.mubr.msk.bf16.gmra.mxu0 %vm168_vm0, %v10696_v16 }
  0xc6   :  { %v10270_v27 = vpop.f32.mrf.mxu0 }
  0xc7   :  { %v260_v28 = vadd.f32 %v10270_v27, %v11446_v24 }
  0xc8   :  { %v251_v29 = vpop.f32.mrf.mxu0 }
  0xc9   :  { %vm380_vm2 = vcmp.gt.f32.partialorder %v260_v28, 0.0  ;;  %v412_v30 = vmul.f32 0.2, %v260_v28  ;;  %v252_v31 = vadd.f32 %v11446_v24, %v251_v29 }
  0xca   :  { %v10271_v34 = vpop.f32.mrf.mxu0 }
  0xcb   :  { %v444_v35 = vsel %vm380_vm2, %v260_v28, %v412_v30  ;;  %vm378_vm3 = vcmp.gt.f32.partialorder %v252_v31, 0.0  ;;  %v410_v36 = vmul.f32 0.2, %v252_v31  ;;  %v263_v37 = vadd.f32 %v10271_v34, %v11446_v24 }
  0xcc   :  { %v9137_v38 = vpack.c.bf16 %v444_v35, %v444_v35  ;;  %v254_v39 = vpop.f32.mrf.mxu0 }
  0xcd   :  { %v442_v40 = vsel %vm378_vm3, %v252_v31, %v410_v36  ;;  %vm381_vm4 = vcmp.gt.f32.partialorder %v263_v37, 0.0  ;;  %v413_v41 = vmul.f32 0.2, %v263_v37  ;;  %v255_v42 = vadd.f32 %v11446_v24, %v254_v39  ;;  %v10772_v31 = vld [vmem:[%s13466_s3 + $0x138] sm:$0xff]  }
  0xce   :  { %625 = vst.msk [vmem:[#allocation2 + $0x28] sm:$0xf] %vm474_vm1, %v9137_v38  ;;  %v9135_v45 = vpack.c.bf16 %v442_v40, %v442_v40  ;;  %v10274_v46 = vpop.f32.mrf.mxu0  ;;  %10300 = vmatprep.subr.bf16.mxu1 %v10772_v31 }
  0xcf   :  { %v445_v47 = vsel %vm381_vm4, %v263_v37, %v413_v41  ;;  %vm379_vm5 = vcmp.gt.f32.partialorder %v255_v42, 0.0  ;;  %v411_v48 = vmul.f32 0.2, %v255_v42  ;;  %v276_v49 = vadd.f32 %v10274_v46, %v11446_v24 }
  0xd0   :  { %623 = vst.msk [vmem:[#allocation2 + $0x20] sm:$0xf] %vm474_vm1, %v9135_v45  ;;  %v9138_v50 = vpack.c.bf16 %v445_v47, %v445_v47  ;;  %v267_v51 = vpop.f32.mrf.mxu0 }
  0xd1   :  { %v443_v52 = vsel %vm379_vm5, %v255_v42, %v411_v48  ;;  %vm384_vm6 = vcmp.gt.f32.partialorder %v276_v49, 0.0  ;;  %v416_v53 = vmul.f32 0.2, %v276_v49  ;;  %v268_v54 = vadd.f32 %v11446_v24, %v267_v51 }
  0xd2   :  { %626 = vst.msk [vmem:[#allocation2 + $0x2c] sm:$0xf] %vm474_vm1, %v9138_v50  ;;  %v9136_v57 = vpack.c.bf16 %v443_v52, %v443_v52  ;;  %v10275_v58 = vpop.f32.mrf.mxu0 }
  0xd3   :  { %v448_v59 = vsel %vm384_vm6, %v276_v49, %v416_v53  ;;  %vm382_vm7 = vcmp.gt.f32.partialorder %v268_v54, 0.0  ;;  %v414_v60 = vmul.f32 0.2, %v268_v54  ;;  %v279_v61 = vadd.f32 %v10275_v58, %v11446_v24 }
  0xd4   :  { %624 = vst.msk [vmem:[#allocation2 + $0x24] sm:$0xf] %vm474_vm1, %v9136_v57  ;;  %v9141_v62 = vpack.c.bf16 %v448_v59, %v448_v59  ;;  %v270_v63 = vpop.f32.mrf.mxu0 }
  0xd5   :  { %v446_v0 = vsel %vm382_vm7, %v268_v54, %v414_v60  ;;  %vm385_vm8 = vcmp.gt.f32.partialorder %v279_v61, 0.0  ;;  %v417_v1 = vmul.f32 0.2, %v279_v61  ;;  %v271_v2 = vadd.f32 %v11446_v24, %v270_v63 }
  0xd6   :  { %629 = vst.msk [vmem:[#allocation2 + $0x38] sm:$0xf] %vm474_vm1, %v9141_v62  ;;  %v9139_v4 = vpack.c.bf16 %v446_v0, %v446_v0  ;;  %v10278_v5 = vpop.f32.mrf.mxu0 }
  0xd7   :  { %v449_v6 = vsel %vm385_vm8, %v279_v61, %v417_v1  ;;  %vm383_vm9 = vcmp.gt.f32.partialorder %v271_v2, 0.0  ;;  %v415_v7 = vmul.f32 0.2, %v271_v2  ;;  %v292_v8 = vadd.f32 %v10278_v5, %v11446_v24 }
  0xd8   :  { %627 = vst.msk [vmem:[#allocation2 + $0x30] sm:$0xf] %vm474_vm1, %v9139_v4  ;;  %v9142_v10 = vpack.c.bf16 %v449_v6, %v449_v6  ;;  %v283_v11 = vpop.f32.mrf.mxu0 }
  0xd9   :  { %v447_v12 = vsel %vm383_vm9, %v271_v2, %v415_v7  ;;  %vm388_vm10 = vcmp.gt.f32.partialorder %v292_v8, 0.0  ;;  %v420_v13 = vmul.f32 0.2, %v292_v8  ;;  %v284_v14 = vadd.f32 %v11446_v24, %v283_v11  ;;  %v10698_v48 = vld [vmem:[#allocation2 + $0x28] sm:$0xff]  }
  0xda   :  { %630 = vst.msk [vmem:[#allocation2 + $0x3c] sm:$0xf] %vm474_vm1, %v9142_v10  ;;  %v9140_v15 = vpack.c.bf16 %v447_v12, %v447_v12  ;;  %v10279_v16 = vpop.f32.mrf.mxu0 }
  0xdb   :  { %v452_v17 = vsel %vm388_vm10, %v292_v8, %v420_v13  ;;  %vm386_vm11 = vcmp.gt.f32.partialorder %v284_v14, 0.0  ;;  %v418_v18 = vmul.f32 0.2, %v284_v14  ;;  %v295_v19 = vadd.f32 %v10279_v16, %v11446_v24 }
  0xdc   :  { %628 = vst.msk [vmem:[#allocation2 + $0x34] sm:$0xf] %vm474_vm1, %v9140_v15  ;;  %v9145_v20 = vpack.c.bf16 %v452_v17, %v452_v17  ;;  %v286_v21 = vpop.f32.mrf.mxu0 }
  0xdd   :  { %v450_v22 = vsel %vm386_vm11, %v284_v14, %v418_v18  ;;  %vm389_vm12 = vcmp.gt.f32.partialorder %v295_v19, 0.0  ;;  %v421_v23 = vmul.f32 0.2, %v295_v19  ;;  %v287_v25 = vadd.f32 %v11446_v24, %v286_v21 }
  0xde   :  { %633 = vst.msk [vmem:[#allocation2 + $0x48] sm:$0xf] %vm474_vm1, %v9145_v20  ;;  %v9143_v26 = vpack.c.bf16 %v450_v22, %v450_v22  ;;  %v10282_v27 = vpop.f32.mrf.mxu0 }
  0xdf   :  { %v453_v28 = vsel %vm389_vm12, %v295_v19, %v421_v23  ;;  %vm387_vm13 = vcmp.gt.f32.partialorder %v287_v25, 0.0  ;;  %v419_v29 = vmul.f32 0.2, %v287_v25  ;;  %v308_v30 = vadd.f32 %v10282_v27, %v11446_v24 }
  0xe0   :  { %631 = vst.msk [vmem:[#allocation2 + $0x40] sm:$0xf] %vm474_vm1, %v9143_v26  ;;  %v9146_v32 = vpack.c.bf16 %v453_v28, %v453_v28  ;;  %v299_v33 = vpop.f32.mrf.mxu0 }
  0xe1   :  { %v451_v34 = vsel %vm387_vm13, %v287_v25, %v419_v29  ;;  %vm392_vm14 = vcmp.gt.f32.partialorder %v308_v30, 0.0  ;;  %v424_v35 = vmul.f32 0.2, %v308_v30  ;;  %v300_v36 = vadd.f32 %v11446_v24, %v299_v33  ;;  %v10697_v37 = vld [vmem:[#allocation2 + $0x38] sm:$0xff]  }
  0xe2   :  { %634 = vst.msk [vmem:[#allocation2 + $0x4c] sm:$0xf] %vm474_vm1, %v9146_v32  ;;  %v9144_v38 = vpack.c.bf16 %v451_v34, %v451_v34  ;;  %v10283_v39 = vpop.f32.mrf.mxu0  ;;  %1814 = vrot.lane.b32.xlu0 %v10697_v37, %s11277_s24  ;;  %v10703_v20 = vld [vmem:[#allocation2 + $0x38] sm:$0xff]  }
  0xe3   :  { %v456_v40 = vsel %vm392_vm14, %v308_v30, %v424_v35  ;;  %vm390_vm15 = vcmp.gt.f32.partialorder %v300_v36, 0.0  ;;  %v422_v41 = vmul.f32 0.2, %v300_v36  ;;  %v311_v42 = vadd.f32 %v10283_v39, %v11446_v24  ;;  %v10701_v12 = vld [vmem:[#allocation2 + $0x30] sm:$0xff]  }
  0xe4   :  { %632 = vst.msk [vmem:[#allocation2 + $0x44] sm:$0xf] %vm474_vm1, %v9144_v38  ;;  %v9149_v43 = vpack.c.bf16 %v456_v40, %v456_v40  ;;  %v302_v44 = vpop.f32.mrf.mxu0 }
  0xe5   :  { %v454_v45 = vsel %vm390_vm15, %v300_v36, %v422_v41  ;;  %vm393_vm0 = vcmp.gt.f32.partialorder %v311_v42, 0.0  ;;  %v425_v46 = vmul.f32 0.2, %v311_v42  ;;  %v303_v47 = vadd.f32 %v11446_v24, %v302_v44 }
  0xe6   :  { %637 = vst.msk [vmem:[#allocation2 + $0x58] sm:$0xf] %vm474_vm1, %v9149_v43  ;;  %v9147_v49 = vpack.c.bf16 %v454_v45, %v454_v45  ;;  %v10286_v50 = vpop.f32.mrf.mxu0  ;;  %1622 = vrot.lane.b32.xlu0 %v10698_v48, %s11277_s24 }
  0xe7   :  { %v457_v51 = vsel %vm393_vm0, %v311_v42, %v425_v46  ;;  %vm391_vm2 = vcmp.gt.f32.partialorder %v303_v47, 0.0  ;;  %v423_v52 = vmul.f32 0.2, %v303_v47  ;;  %v324_v53 = vadd.f32 %v10286_v50, %v11446_v24 }
  0xe8   :  { %635 = vst.msk [vmem:[#allocation2 + $0x50] sm:$0xf] %vm474_vm1, %v9147_v49  ;;  %v9150_v54 = vpack.c.bf16 %v457_v51, %v457_v51  ;;  %v315_v55 = vpop.f32.mrf.mxu0 }
  0xe9   :  { %v455_v56 = vsel %vm391_vm2, %v303_v47, %v423_v52  ;;  %vm396_vm3 = vcmp.gt.f32.partialorder %v324_v53, 0.0  ;;  %v428_v57 = vmul.f32 0.2, %v324_v53  ;;  %v316_v58 = vadd.f32 %v11446_v24, %v315_v55  ;;  %v10699_v59 = vld [vmem:[#allocation2 + $0x48] sm:$0xff]  }
  0xea   :  { %638 = vst.msk [vmem:[#allocation2 + $0x5c] sm:$0xf] %vm474_vm1, %v9150_v54  ;;  %v9148_v60 = vpack.c.bf16 %v455_v56, %v455_v56  ;;  %v10287_v61 = vpop.f32.mrf.mxu0  ;;  %1818 = vrot.lane.b32.xlu0 %v10699_v59, %s11277_s24  ;;  %v10707_v45 = vld [vmem:[#allocation2 + $0x48] sm:$0xff]  }
  0xeb   :  { %v460_v62 = vsel %vm396_vm3, %v324_v53, %v428_v57  ;;  %vm394_vm4 = vcmp.gt.f32.partialorder %v316_v58, 0.0  ;;  %v426_v63 = vmul.f32 0.2, %v316_v58  ;;  %v327_v0 = vadd.f32 %v10287_v61, %v11446_v24  ;;  %v10700_v1 = vld [vmem:[#allocation2 + $0x40] sm:$0xff]  }
  0xec   :  { %636 = vst.msk [vmem:[#allocation2 + $0x54] sm:$0xf] %vm474_vm1, %v9148_v60  ;;  %v9153_v2 = vpack.c.bf16 %v460_v62, %v460_v62  ;;  %v318_v3 = vpop.f32.mrf.mxu0  ;;  %1816 = vrot.lane.b32.xlu1 %v10700_v1, %s11277_s24  ;;  %v10705_v37 = vld [vmem:[#allocation2 + $0x40] sm:$0xff]  }
  0xed   :  { %v458_v4 = vsel %vm394_vm4, %v316_v58, %v426_v63  ;;  %vm397_vm5 = vcmp.gt.f32.partialorder %v327_v0, 0.0  ;;  %v429_v5 = vmul.f32 0.2, %v327_v0  ;;  %v319_v6 = vadd.f32 %v11446_v24, %v318_v3 }
  0xee   :  { %641 = vst.msk [vmem:[#allocation2 + $0x68] sm:$0xf] %vm474_vm1, %v9153_v2  ;;  %v9151_v7 = vpack.c.bf16 %v458_v4, %v458_v4  ;;  %v10290_v8 = vpop.f32.mrf.mxu0 }
  0xef   :  { %v461_v9 = vsel %vm397_vm5, %v327_v0, %v429_v5  ;;  %vm395_vm6 = vcmp.gt.f32.partialorder %v319_v6, 0.0  ;;  %v427_v10 = vmul.f32 0.2, %v319_v6  ;;  %v340_v11 = vadd.f32 %v10290_v8, %v11446_v24 }
  0xf0   :  { %639 = vst.msk [vmem:[#allocation2 + $0x60] sm:$0xf] %vm474_vm1, %v9151_v7  ;;  %v9154_v13 = vpack.c.bf16 %v461_v9, %v461_v9  ;;  %v331_v14 = vpop.f32.mrf.mxu0  ;;  %1624 = vrot.lane.b32.xlu1 %v10701_v12, %s11277_s24 }
  0xf1   :  { %v459_v15 = vsel %vm395_vm6, %v319_v6, %v427_v10  ;;  %vm400_vm7 = vcmp.gt.f32.partialorder %v340_v11, 0.0  ;;  %v432_v16 = vmul.f32 0.2, %v340_v11  ;;  %v332_v17 = vadd.f32 %v11446_v24, %v331_v14  ;;  %v10704_v31 = vld [vmem:[#allocation2 + $0x58] sm:$0xff]  }
  0xf2   :  { %642 = vst.msk [vmem:[#allocation2 + $0x6c] sm:$0xf] %vm474_vm1, %v9154_v13  ;;  %v9152_v18 = vpack.c.bf16 %v459_v15, %v459_v15  ;;  %v10291_v19 = vpop.f32.mrf.mxu0  ;;  %v10711_v5 = vld [vmem:[#allocation2 + $0x58] sm:$0xff]  }
  0xf3   :  { %v464_v21 = vsel %vm400_vm7, %v340_v11, %v432_v16  ;;  %vm398_vm8 = vcmp.gt.f32.partialorder %v332_v17, 0.0  ;;  %v430_v22 = vmul.f32 0.2, %v332_v17  ;;  %v343_v23 = vadd.f32 %v10291_v19, %v11446_v24  ;;  %v10702_v25 = vld [vmem:[#allocation2 + $0x50] sm:$0xff]  }
  0xf4   :  { %640 = vst.msk [vmem:[#allocation2 + $0x64] sm:$0xf] %vm474_vm1, %v9152_v18  ;;  %v9157_v26 = vpack.c.bf16 %v464_v21, %v464_v21  ;;  %v334_v27 = vpop.f32.mrf.mxu0  ;;  %1820 = vrot.lane.b32.xlu0 %v10702_v25, %s11277_s24  ;;  %1626 = vrot.lane.b32.xlu1 %v10703_v20, %s11277_s24  ;;  %v10709_v61 = vld [vmem:[#allocation2 + $0x50] sm:$0xff]  }
  0xf5   :  { %v462_v28 = vsel %vm398_vm8, %v332_v17, %v430_v22  ;;  %vm401_vm9 = vcmp.gt.f32.partialorder %v343_v23, 0.0  ;;  %v433_v29 = vmul.f32 0.2, %v343_v23  ;;  %v335_v30 = vadd.f32 %v11446_v24, %v334_v27 }
  0xf6   :  { %645 = vst.msk [vmem:[#allocation2 + $0x78] sm:$0xf] %vm474_vm1, %v9157_v26  ;;  %v9155_v32 = vpack.c.bf16 %v462_v28, %v462_v28  ;;  %v10294_v33 = vpop.f32.mrf.mxu0 }
  0xf7   :  { %v465_v34 = vsel %vm401_vm9, %v343_v23, %v433_v29  ;;  %vm399_vm10 = vcmp.gt.f32.partialorder %v335_v30, 0.0  ;;  %v431_v35 = vmul.f32 0.2, %v335_v30  ;;  %v356_v36 = vadd.f32 %v10294_v33, %v11446_v24  ;;  %v10724_v33 = vld [vmem:[#allocation2 + $0xa8] sm:$0xff]  }
  0xf8   :  { %643 = vst.msk [vmem:[#allocation2 + $0x70] sm:$0xf] %vm474_vm1, %v9155_v32  ;;  %v9158_v38 = vpack.c.bf16 %v465_v34, %v465_v34  ;;  %v347_v39 = vpop.f32.mrf.mxu0  ;;  %1822 = vrot.lane.b32.xlu0 %v10704_v31, %s11277_s24  ;;  %1628 = vrot.lane.b32.xlu1 %v10705_v37, %s11277_s24  ;;  %v10722_v31 = vld [vmem:[#allocation2 + $0xa0] sm:$0xff]   ;;  %v10728_v37 = vld [vmem:[#allocation2 + $0x18] sm:$0xff]  }
  0xf9   :  { %v463_v40 = vsel %vm399_vm10, %v335_v30, %v431_v35  ;;  %vm404_vm11 = vcmp.gt.f32.partialorder %v356_v36, 0.0  ;;  %v436_v41 = vmul.f32 0.2, %v356_v36  ;;  %v348_v42 = vadd.f32 %v11446_v24, %v347_v39  ;;  %v10708_v55 = vld [vmem:[#allocation2 + $0x68] sm:$0xff]   ;;  %v10726_v35 = vld [vmem:[#allocation2 + $0xb0] sm:$0xff]  }
  0xfa   :  { %646 = vst.msk [vmem:[#allocation2 + $0x7c] sm:$0xf] %vm474_vm1, %v9158_v38  ;;  %v9156_v43 = vpack.c.bf16 %v463_v40, %v463_v40  ;;  %v10295_v44 = vpop.f32.mrf.mxu0  ;;  %v10715_v22 = vld [vmem:[#allocation2 + $0x68] sm:$0xff]   ;;  %v10729_v38 = vld [vmem:[#allocation2 + $0xa0] sm:$0xff]  }
  0xfb   :  { %v468_v46 = vsel %vm404_vm11, %v356_v36, %v436_v41  ;;  %vm402_vm12 = vcmp.gt.f32.partialorder %v348_v42, 0.0  ;;  %v434_v47 = vmul.f32 0.2, %v348_v42  ;;  %v359_v48 = vadd.f32 %v10295_v44, %v11446_v24  ;;  %v10706_v49 = vld [vmem:[#allocation2 + $0x60] sm:$0xff]   ;;  %v10731_v39 = vld [vmem:[#allocation2 + $0x8] sm:$0xff]   ;;  %v10802_v41 = vld [vmem:[%s13466_s3 + $0x78] sm:$0xff]  }
  0xfc   :  { %644 = vst.msk [vmem:[#allocation2 + $0x74] sm:$0xf] %vm474_vm1, %v9156_v43  ;;  %v9161_v50 = vpack.c.bf16 %v468_v46, %v468_v46  ;;  %v350_v51 = vpop.f32.mrf.mxu0  ;;  %1824 = vrot.lane.b32.xlu0 %v10706_v49, %s11277_s24  ;;  %1630 = vrot.lane.b32.xlu1 %v10707_v45, %s11277_s24  ;;  %v10713_v12 = vld [vmem:[#allocation2 + $0x60] sm:$0xff]   ;;  %v10730_v40 = vld [vmem:[#allocation2 + $0x48] sm:$0xff]   ;;  %v10807_v44 = vld [vmem:[%s13466_s3 + $0x70] sm:$0xff]  }
  0xfd   :  { %v466_v52 = vsel %vm402_vm12, %v348_v42, %v434_v47  ;;  %vm405_vm13 = vcmp.gt.f32.partialorder %v359_v48, 0.0  ;;  %v437_v53 = vmul.f32 0.2, %v359_v48  ;;  %v351_v54 = vadd.f32 %v11446_v24, %v350_v51  ;;  %v10805_v42 = vld [vmem:[%s13466_s3 + $0x38] sm:$0xff]   ;;  %v10733_v43 = vld [vmem:[#allocation2 + $0x20] sm:$0xff]   ;;  %9423 = vmatprep.subr.bf16.mxu0 %v10802_v41  ;;  %v10732_v45 = vld [vmem:[#allocation2 + $0x50] sm:$0xff]  }
  0xfe   :  { %649 = vst.msk [vmem:[#allocation2 + $0x88] sm:$0xf] %vm474_vm1, %v9161_v50  ;;  %v9159_v56 = vpack.c.bf16 %v466_v52, %v466_v52  ;;  %v10298_v57 = vpop.f32.mrf.mxu0  ;;  %9424 = vmatpush3.bf16.msra.mxu0 %v10805_v42  ;;  %v10734_v46 = vld [vmem:[#allocation2 + $0x10] sm:$0xff]   ;;  %v10735_v49 = vld [vmem:[#allocation2 + $0x28] sm:$0xff]   ;;  %v10817_v51 = vld [vmem:[%s13466_s3 + $0x60] sm:$0xff]  }
  0xff   :  { %v469_v58 = vsel %vm405_vm13, %v359_v48, %v437_v53  ;;  %vm403_vm14 = vcmp.gt.f32.partialorder %v351_v54, 0.0  ;;  %v435_v59 = vmul.f32 0.2, %v351_v54  ;;  %v372_v60 = vadd.f32 %v10298_v57, %v11446_v24  ;;  %9425 = vmatprep.subr.bf16.mxu0 %v10807_v44  ;;  %v10811_v47 = vld [vmem:[%s13466_s3 + $0x30] sm:$0xff]   ;;  %v10812_v48 = vld [vmem:[%s13466_s3 + $0x68] sm:$0xff]   ;;  %v10736_v52 = vld [vmem:[#allocation2 + $0x18] sm:$0xff]  }
 0x100   :  { %647 = vst.msk [vmem:[#allocation2 + $0x80] sm:$0xf] %vm474_vm1, %v9159_v56  ;;  %v9162_v62 = vpack.c.bf16 %v469_v58, %v469_v58  ;;  %v363_v63 = vpop.f32.mrf.mxu0  ;;  %1826 = vrot.lane.b32.xlu0 %v10708_v55, %s11277_s24  ;;  %1632 = vrot.lane.b32.xlu1 %v10709_v61, %s11277_s24  ;;  %v10814_v50 = vld [vmem:[%s13466_s3 + $0x28] sm:$0xff]   ;;  %v10737_v53 = vld [vmem:[#allocation2 + $0x58] sm:$0xff]   ;;  %v10741_v56 = vld [vmem:[#allocation2 + $0x30] sm:$0xff]  }
 0x101   :  { %v467_v0 = vsel %vm403_vm14, %v351_v54, %v435_v59  ;;  %vm408_vm15 = vcmp.gt.f32.partialorder %v372_v60, 0.0  ;;  %v440_v1 = vmul.f32 0.2, %v372_v60  ;;  %v364_v2 = vadd.f32 %v11446_v24, %v363_v63  ;;  %v10712_v16 = vld [vmem:[#allocation2 + $0x78] sm:$0xff]   ;;  %v10819_v54 = vld [vmem:[%s13466_s3 + $0x20] sm:$0xff]   ;;  %v10823_v59 = vld [vmem:[%s13466_s3 + $0x50] sm:$0xff]  }
 0x102   :  { %650 = vst.msk [vmem:[#allocation2 + $0x8c] sm:$0xf] %vm474_vm1, %v9162_v62  ;;  %v9160_v3 = vpack.c.bf16 %v467_v0, %v467_v0  ;;  %v10299_v4 = vpop.f32.mrf.mxu0  ;;  %v10719_v27 = vld [vmem:[#allocation2 + $0x78] sm:$0xff]   ;;  %9426 = vmatpush3.bf16.msra.mxu0 %v10811_v47  ;;  %v10740_v57 = vld [vmem:[#allocation2 + $0x60] sm:$0xff]   ;;  %v10825_v62 = vld [vmem:[%s13466_s3 + $0x10] sm:$0xff]  }
 0x103   :  { %v472_v6 = vsel %vm408_vm15, %v372_v60, %v440_v1  ;;  %vm406_vm0 = vcmp.gt.f32.partialorder %v364_v2, 0.0  ;;  %v438_v7 = vmul.f32 0.2, %v364_v2  ;;  %v375_v8 = vadd.f32 %v10299_v4, %v11446_v24  ;;  %v10710_v9 = vld [vmem:[#allocation2 + $0x70] sm:$0xff]   ;;  %9427 = vmatprep.subr.bf16.mxu0 %v10812_v48  ;;  %v10820_v55 = vld [vmem:[%s13466_s3 + $0x58] sm:$0xff]   ;;  %v10745_v60 = vld [vmem:[#allocation2 + $0x20] sm:$0xff]  }
 0x104   :  { %648 = vst.msk [vmem:[#allocation2 + $0x84] sm:$0xf] %vm474_vm1, %v9160_v3  ;;  %v9165_v10 = vpack.c.bf16 %v472_v6, %v472_v6  ;;  %v366_v11 = vpop.f32.mrf.mxu0  ;;  %1828 = vrot.lane.b32.xlu0 %v10710_v9, %s11277_s24  ;;  %1634 = vrot.lane.b32.xlu1 %v10711_v5, %s11277_s24  ;;  %v10717_v26 = vld [vmem:[#allocation2 + $0x70] sm:$0xff]   ;;  %v10821_v58 = vld [vmem:[%s13466_s3 + $0x18] sm:$0xff]   ;;  %v10826_v63 = vld [vmem:[%s13466_s3 + $0x48] sm:$0xff]  }
 0x105   :  { %v470_v13 = vsel %vm406_vm0, %v364_v2, %v438_v7  ;;  %vm409_vm2 = vcmp.gt.f32.partialorder %v375_v8, 0.0  ;;  %v441_v14 = vmul.f32 0.2, %v375_v8  ;;  %v367_v15 = vadd.f32 %v11446_v24, %v366_v11  ;;  %v10744_v61 = vld [vmem:[#allocation2 + $0x38] sm:$0xff]   ;;  %v10748_v0 = vld [vmem:[#allocation2 + $0x68] sm:$0xff]   ;;  %v10830_v3 = vld [vmem:[%s13466_s3 + $0x40] sm:$0xff]  }
 0x106   :  { %653 = vst.msk [vmem:[#allocation2 + $0x98] sm:$0xf] %vm474_vm1, %v9165_v10  ;;  %v9163_v17 = vpack.c.bf16 %v470_v13, %v470_v13  ;;  %9428 = vmatpush3.bf16.msra.mxu0 %v10814_v50  ;;  %v10749_v1 = vld [vmem:[#allocation2 + $0x28] sm:$0xff]   ;;  %v10752_v4 = vld [vmem:[#allocation2 + $0x40] sm:$0xff]   ;;  %v10753_v5 = vld [vmem:[#allocation2 + $0x70] sm:$0xff]  }
 0x107   :  { %v473_v18 = vsel %vm409_vm2, %v375_v8, %v441_v14  ;;  %vm407_vm3 = vcmp.gt.f32.partialorder %v367_v15, 0.0  ;;  %v439_v19 = vmul.f32 0.2, %v367_v15  ;;  %9429 = vmatprep.subr.bf16.mxu0 %v10817_v51  ;;  %v10827_v2 = vld [vmem:[%s13466_s3 + $0x8] sm:$0xff]   ;;  %v10832_v6 = vld [vmem:[%s13466_s3] sm:$0xff]   ;;  %v10757_v7 = vld [vmem:[#allocation2 + $0x30] sm:$0xff]  }
 0x108   :  { %651 = vst.msk [vmem:[#allocation2 + $0x90] sm:$0xf] %vm474_vm1, %v9163_v17  ;;  %v9166_v20 = vpack.c.bf16 %v473_v18, %v473_v18  ;;  %1830 = vrot.lane.b32.xlu0 %v10712_v16, %s11277_s24  ;;  %1636 = vrot.lane.b32.xlu1 %v10713_v12, %s11277_s24  ;;  %v10756_v8 = vld [vmem:[#allocation2 + $0x48] sm:$0xff]   ;;  %v10761_v9 = vld [vmem:[#allocation2 + $0x38] sm:$0xff]   ;;  %v10764_v11 = vld [vmem:[#allocation2 + $0x50] sm:$0xff]  }
 0x109   :  { %v471_v21 = vsel %vm407_vm3, %v367_v15, %v439_v19  ;;  %v10716_v25 = vld [vmem:[#allocation2 + $0x88] sm:$0xff]   ;;  %v10760_v10 = vld [vmem:[#allocation2 + $0x78] sm:$0xff]   ;;  %v10767_v13 = vld [vmem:[#allocation2 + $0x30] sm:$0xff]  }
 0x10a   :  { %654 = vst.msk [vmem:[#allocation2 + $0x9c] sm:$0xf] %vm474_vm1, %v9166_v20  ;;  %v9164_v24 = vpack.c.bf16 %v471_v21, %v471_v21  ;;  %v10723_v32 = vld [vmem:[#allocation2 + $0x88] sm:$0xff]   ;;  %9430 = vmatpush3.bf16.msra.mxu0 %v10819_v54  ;;  %v10769_v16 = vld [vmem:[#allocation2 + $0x58] sm:$0xff]   ;;  %v10770_v17 = vld [vmem:[#allocation2 + $0x40] sm:$0xff]  }
 0x10b   :  { %v10714_v23 = vld [vmem:[#allocation2 + $0x80] sm:$0xff]   ;;  %9431 = vmatprep.subr.bf16.mxu0 %v10820_v55  ;;  %v10773_v20 = vld [vmem:[#allocation2 + $0x88] sm:$0xff]   ;;  %v10783_v44 = vld [vmem:[#allocation2 + $0x58] sm:$0xff]  }
 0x10c   :  { %652 = vst.msk [vmem:[#allocation2 + $0x94] sm:$0xf] %vm474_vm1, %v9164_v24  ;;  %1832 = vrot.lane.b32.xlu0 %v10714_v23, %s11277_s24  ;;  %1638 = vrot.lane.b32.xlu1 %v10715_v22, %s11277_s24  ;;  %v10721_v29 = vld [vmem:[#allocation2 + $0x80] sm:$0xff]   ;;  %vm1170_vm1 = vcmask 523264   ;;  %v10784_v24 = vld [vmem:[%s13466_s3 + $0x130] sm:$0xff]   ;;  %v10774_v22 = vld [vmem:[#allocation2 + $0x48] sm:$0xff]  }
 0x10d   :  { %v10765_v12 = vld [vmem:[#allocation2 + $0x80] sm:$0xff]   ;;  %v11275_v23 = vld [vmem:[%s13466_s3 + $0x138] sm:$0xff]   ;;  %v10788_v48 = vld [vmem:[#allocation2 + $0x48] sm:$0xff]  }
 0x10e   :  { %9432 = vmatpush3.bf16.msra.mxu0 %v10821_v58  ;;  %v10771_v18 = vld [vmem:[#allocation2 + $0x20] sm:$0xff]   ;;  %v10841_v51 = vld [vmem:[%s13466_s3 + $0x110] sm:$0xff]   ;;  %v10850_v54 = vld [vmem:[%s13466_s3 + $0x108] sm:$0xff]  }
 0x10f   :  { %9433 = vmatprep.subr.bf16.mxu0 %v10823_v59  ;;  %v10787_v47 = vld [vmem:[#allocation2 + $0xa0] sm:$0xff]   ;;  %v10789_v55 = vld [vmem:[#allocation2 + $0x78] sm:$0xff]  }
 0x110   :  { %1834 = vrot.lane.b32.xlu0 %v10716_v25, %s11277_s24  ;;  %1640 = vrot.lane.b32.xlu1 %v10717_v26, %s11277_s24  ;;  %v10775_v25 = vld [vmem:[#allocation2 + $0x38] sm:$0xff]   ;;  %v10776_v26 = vld [vmem:[#allocation2 + $0x60] sm:$0xff]  }
 0x111   :  { %v10720_v30 = vld [vmem:[#allocation2 + $0x98] sm:$0xff]   ;;  %v10790_v58 = vld [vmem:[#allocation2 + $0x60] sm:$0xff]  }
 0x112   :  { %v10727_v36 = vld [vmem:[#allocation2 + $0x98] sm:$0xff]   ;;  %9434 = vmatpush3.bf16.msra.mxu0 %v10825_v62 }
 0x113   :  { %v10718_v28 = vld [vmem:[#allocation2 + $0x90] sm:$0xff]   ;;  %9435 = vmatprep.subr.bf16.mxu0 %v10826_v63  ;;  %v10782_v41 = vld [vmem:[#allocation2 + $0x98] sm:$0xff]  }
 0x114   :  { %1836 = vrot.lane.b32.xlu0 %v10718_v28, %s11277_s24  ;;  %1642 = vrot.lane.b32.xlu1 %v10719_v27, %s11277_s24  ;;  %v10725_v34 = vld [vmem:[#allocation2 + $0x90] sm:$0xff]   ;;  %v10797_v27 = vld [vmem:[%s13466_s3 + $0x128] sm:$0xff]   ;;  %v10791_v59 = vld [vmem:[#allocation2 + $0x38] sm:$0xff]  }
 0x116   :  { %9436 = vmatpush3.bf16.msra.mxu0 %v10827_v2  ;;  %v10793_v2 = vld [vmem:[#allocation2 + $0x68] sm:$0xff]  }
 0x117   :  { %9437 = vmatprep.subr.bf16.mxu0 %v10830_v3 }
 0x118   :  { %1838 = vrot.lane.b32.xlu0 %v10720_v30, %s11277_s24  ;;  %1644 = vrot.lane.b32.xlu1 %v10721_v29, %s11277_s24  ;;  %v10777_v29 = vld [vmem:[#allocation2 + $0x90] sm:$0xff]  }
 0x11a   :  { %9438 = vmatpush3.bf16.msra.mxu0 %v10832_v6 }
 0x11c   :  { %1840 = vrot.lane.b32.xlu0 %v10722_v31, %s11277_s24  ;;  %1646 = vrot.lane.b32.xlu1 %v10723_v32, %s11277_s24  ;;  %v10778_v31 = vld [vmem:[#allocation2 + $0x28] sm:$0xff]  }
 0x11d   :  { %v10779_v32 = vld [vmem:[#allocation2 + $0x68] sm:$0xff]  }
 0x120   :  { %1842 = vrot.lane.b32.xlu0 %v10724_v33, %s11277_s24  ;;  %1648 = vrot.lane.b32.xlu1 %v10725_v34, %s11277_s24  ;;  %v10781_v34 = vld [vmem:[#allocation2 + $0x40] sm:$0xff]  }
 0x124   :  { %1844 = vrot.lane.b32.xlu0 %v10726_v35, %s11277_s24  ;;  %1650 = vrot.lane.b32.xlu1 %v10727_v36, %s11277_s24  ;;  %v10815_v36 = vld [vmem:[%s13466_s3 + $0x120] sm:$0xff]  }
 0x128   :  { %1138 = vrot.lane.b32.xlu0 %v10728_v37, %s11277_s24  ;;  %1652 = vrot.lane.b32.xlu1 %v10729_v38, %s11277_s24  ;;  %v10780_v38 = vld [vmem:[#allocation2 + $0x50] sm:$0xff]  }
 0x12c   :  { %2746 = vrot.lane.b32.xlu0 %v10730_v40, %s11277_s24  ;;  %946 = vrot.lane.b32.xlu1 %v10731_v39, %s11277_s24  ;;  %v10828_v40 = vld [vmem:[%s13466_s3 + $0x118] sm:$0xff]  }
 0x130   :  { %2748 = vrot.lane.b32.xlu1 %v10732_v45, %s11277_s24  ;;  %1140 = vrot.lane.b32.xlu0 %v10733_v43, %s11277_s24  ;;  %v10785_v45 = vld [vmem:[#allocation2 + $0x30] sm:$0xff]  }
 0x134   :  { %948 = vrot.lane.b32.xlu1 %v10734_v46, %s11277_s24  ;;  %1142 = vrot.lane.b32.xlu0 %v10735_v49, %s11277_s24  ;;  %v10786_v46 = vld [vmem:[#allocation2 + $0x70] sm:$0xff]  }
 0x138   :  { %950 = vrot.lane.b32.xlu1 %v10736_v52, %s11277_s24  ;;  %2750 = vrot.lane.b32.xlu0 %v10737_v53, %s11277_s24 }
 0x13c   :  { %2752 = vrot.lane.b32.xlu1 %v10740_v57, %s11277_s24  ;;  %1144 = vrot.lane.b32.xlu0 %v10741_v56, %s11277_s24 }
 0x140   :  { %1146 = vrot.lane.b32.xlu0 %v10744_v61, %s11277_s24  ;;  %952 = vrot.lane.b32.xlu1 %v10745_v60, %s11277_s24  ;;  %v10792_v60 = vld [vmem:[#allocation2 + $0xa8] sm:$0xff]   ;;  %v10794_v61 = vld [vmem:[#allocation2 + $0x50] sm:$0xff]  }
 0x144   :  { %2754 = vrot.lane.b32.xlu0 %v10748_v0, %s11277_s24  ;;  %954 = vrot.lane.b32.xlu1 %v10749_v1, %s11277_s24  ;;  %v10859_v0 = vld [vmem:[%s13466_s3 + $0x100] sm:$0xff]  }
 0x148   :  { %1148 = vrot.lane.b32.xlu0 %v10752_v4, %s11277_s24  ;;  %2756 = vrot.lane.b32.xlu1 %v10753_v5, %s11277_s24  ;;  %v10796_v4 = vld [vmem:[#allocation2 + $0xb0] sm:$0xff]  }
 0x14c   :  { %1150 = vrot.lane.b32.xlu0 %v10756_v8, %s11277_s24  ;;  %956 = vrot.lane.b32.xlu1 %v10757_v7, %s11277_s24  ;;  %v10795_v7 = vld [vmem:[#allocation2 + $0x80] sm:$0xff]  }
 0x14d   :  { %v10798_v8 = vld [vmem:[#allocation2 + $0x40] sm:$0xff]  }
 0x150   :  { %2758 = vrot.lane.b32.xlu0 %v10760_v10, %s11277_s24  ;;  %958 = vrot.lane.b32.xlu1 %v10761_v9, %s11277_s24  ;;  %v10799_v9 = vld [vmem:[#allocation2 + $0x88] sm:$0xff]   ;;  %v10801_v10 = vld [vmem:[#allocation2 + $0x58] sm:$0xff]  }
 0x154   :  { %v1815_v14 = vpop.permute.xlu0 %1814  ;;  %1152 = vrot.lane.b32.xlu0 %v10764_v11, %s11277_s24  ;;  %2760 = vrot.lane.b32.xlu1 %v10765_v12, %s11277_s24  ;;  %v10800_v11 = vld [vmem:[#allocation2 + $0x70] sm:$0xff]  }
 0x155   :  { %v1912_v15 = vsel %vm1170_vm1, %v10767_v13, %v1815_v14  ;;  %v10803_v14 = vld [vmem:[#allocation2 + $0xb8] sm:$0xff]  }
 0x156   :  { %2134 = vmatprep.mubr.bf16.mxu1 %v1912_v15 }
 0x158   :  { %v1623_v19 = vpop.permute.xlu0 %1622  ;;  %1154 = vrot.lane.b32.xlu0 %v10769_v16, %s11277_s24  ;;  %960 = vrot.lane.b32.xlu1 %v10770_v17, %s11277_s24 }
 0x159   :  { %v1848_v21 = vsel %vm1170_vm1, %v10771_v18, %v1623_v19  ;;  %v10804_v19 = vld [vmem:[#allocation2 + $0x78] sm:$0xff]  }
 0x15a   :  { %2135 = vmatmul.mubr.bf16.vlgmr.msra.gmra.mxu1 %v1848_v21  ;;  %v10809_v21 = vld [vmem:[#allocation2 + $0xc0] sm:$0xff]  }
 0x15b   :  { %10301 = vmatpush3.bf16.msra.mxu1 %v11275_v23  ;;  %v10808_v23 = vld [vmem:[#allocation2 + $0x90] sm:$0xff]  }
 0x15c   :  { %2762 = vrot.lane.b32.xlu0 %v10773_v20, %s11277_s24  ;;  %962 = vrot.lane.b32.xlu1 %v10774_v22, %s11277_s24  ;;  %v1819_v33 = vpop.permute.xlu0 %1818  ;;  %v10806_v20 = vld [vmem:[#allocation2 + $0x48] sm:$0xff]  }
 0x15d   :  { %10302 = vmatprep.subr.bf16.mxu1 %v10784_v24  ;;  %v1920_v39 = vsel %vm1170_vm1, %v10781_v34, %v1819_v33  ;;  %v10818_v34 = vld [vmem:[#allocation2 + $0x68] sm:$0xff]  }
 0x15e   :  { %v1817_v28 = vpop.permute.xlu1 %1816 }
 0x15f   :  { %v1916_v30 = vsel %vm1170_vm1, %v10775_v25, %v1817_v28  ;;  %10303 = vmatpush3.bf16.msra.mxu1 %v10784_v24  ;;  %v10810_v25 = vld [vmem:[#allocation2 + $0x60] sm:$0xff]  }
 0x160   :  { %2142 = vmatprep.mubr.bf16.mxu1 %v1916_v30  ;;  %1156 = vrot.lane.b32.xlu0 %v10776_v26, %s11277_s24  ;;  %v10813_v30 = vld [vmem:[#allocation2 + $0x80] sm:$0xff]  }
 0x161   :  { %2764 = vrot.lane.b32.xlu1 %v10777_v29, %s11277_s24  ;;  %10304 = vmatprep.subr.bf16.mxu1 %v10797_v27 }
 0x162   :  { %v1625_v35 = vpop.permute.xlu1 %1624 }
 0x163   :  { %v1852_v37 = vsel %vm1170_vm1, %v10778_v31, %v1625_v35  ;;  %10305 = vmatpush3.bf16.msra.mxu1 %v10797_v27  ;;  %v10816_v31 = vld [vmem:[#allocation2 + $0x50] sm:$0xff]  }
 0x164   :  { %2143 = vmatmul.mubr.bf16.gmra.mxu1 %v1852_v37  ;;  %1158 = vrot.lane.b32.xlu0 %v10779_v32, %s11277_s24 }
 0x165   :  { %964 = vrot.lane.b32.xlu1 %v10780_v38, %s11277_s24  ;;  %2150 = vmatprep.mubr.bf16.mxu1 %v1920_v39  ;;  %v10822_v39 = vld [vmem:[#allocation2 + $0x58] sm:$0xff]  }
 0x166   :  { %v1821_v42 = vpop.permute.xlu0 %1820  ;;  %v1627_v43 = vpop.permute.xlu1 %1626  ;;  %10306 = vmatprep.subr.bf16.mxu1 %v10815_v36 }
 0x167   :  { %10307 = vmatpush3.bf16.msra.mxu1 %v10815_v36  ;;  %v1856_v52 = vsel %vm1170_vm1, %v10785_v45, %v1627_v43  ;;  %v1924_v53 = vsel %vm1170_vm1, %v10788_v48, %v1821_v42  ;;  %v10824_v42 = vld [vmem:[#allocation2 + $0x70] sm:$0xff]   ;;  %v10829_v48 = vld [vmem:[#allocation2 + $0x60] sm:$0xff]  }
 0x168   :  { %2766 = vrot.lane.b32.xlu0 %v10782_v41, %s11277_s24  ;;  %10308 = vmatprep.subr.bf16.mxu1 %v10828_v40 }
 0x169   :  { %966 = vrot.lane.b32.xlu1 %v10783_v44, %s11277_s24 }
 0x16a   :  { %v1823_v49 = vpop.permute.xlu0 %1822  ;;  %v1629_v50 = vpop.permute.xlu1 %1628 }
 0x16b   :  { %10309 = vmatpush3.bf16.msra.mxu1 %v10828_v40  ;;  %v1860_v1 = vsel %vm1170_vm1, %v10791_v59, %v1629_v50  ;;  %v1928_v3 = vsel %vm1170_vm1, %v10794_v61, %v1823_v49  ;;  %v10837_v59 = vld [vmem:[#allocation2 + $0x18] sm:$0xff]  }
 0x16c   :  { %2151 = vmatmul.mubr.bf16.gmra.mxu1 %v1856_v52  ;;  %1160 = vrot.lane.b32.xlu0 %v10786_v46, %s11277_s24 }
 0x16d   :  { %2768 = vrot.lane.b32.xlu1 %v10787_v47, %s11277_s24  ;;  %2158 = vmatprep.mubr.bf16.mxu1 %v1924_v53  ;;  %v10834_v47 = vld [vmem:[#allocation2 + $0x10] sm:$0xff]   ;;  %v10833_v53 = vld [vmem:[#allocation2] sm:$0xff]  }
 0x16e   :  { %v1825_v56 = vpop.permute.xlu0 %1824  ;;  %v1631_v57 = vpop.permute.xlu1 %1630  ;;  %10310 = vmatprep.subr.bf16.mxu1 %v10841_v51 }
 0x16f   :  { %10311 = vmatpush3.bf16.msra.mxu1 %v10841_v51  ;;  %v1864_v15 = vsel %vm1170_vm1, %v10798_v8, %v1631_v57  ;;  %v1932_v16 = vsel %vm1170_vm1, %v10801_v10, %v1825_v56  ;;  %v10831_v51 = vld [vmem:[#allocation2 + $0x78] sm:$0xff]   ;;  %v10844_v10 = vld [vmem:[#allocation2 + $0x10] sm:$0xff]  }
 0x170   :  { %1162 = vrot.lane.b32.xlu0 %v10789_v55, %s11277_s24  ;;  %10312 = vmatprep.subr.bf16.mxu1 %v10850_v54 }
 0x171   :  { %968 = vrot.lane.b32.xlu1 %v10790_v58, %s11277_s24 }
 0x172   :  { %v1827_v62 = vpop.permute.xlu0 %1826  ;;  %v1633_v63 = vpop.permute.xlu1 %1632 }
 0x173   :  { %10313 = vmatpush3.bf16.msra.mxu1 %v10850_v54  ;;  %v1868_v26 = vsel %vm1170_vm1, %v10806_v20, %v1633_v63  ;;  %v1936_v27 = vsel %vm1170_vm1, %v10810_v25, %v1827_v62  ;;  %v10838_v63 = vld [vmem:[#allocation2 + $0x80] sm:$0xff]   ;;  %v10898_v25 = vld [vmem:[%s13468_s5 + $0xb8] sm:$0xff]  }
 0x174   :  { %2159 = vmatmul.mubr.bf16.gmra.mxu1 %v1860_v1  ;;  %2770 = vrot.lane.b32.xlu0 %v10792_v60, %s11277_s24  ;;  %v10836_v60 = vld [vmem:[#allocation2 + $0x68] sm:$0xff]  }
 0x175   :  { %970 = vrot.lane.b32.xlu1 %v10793_v2, %s11277_s24  ;;  %2166 = vmatprep.mubr.bf16.mxu1 %v1928_v3  ;;  %v10839_v2 = vld [vmem:[#allocation2 + $0x8] sm:$0xff]  }
 0x176   :  { %v1829_v5 = vpop.permute.xlu0 %1828  ;;  %v1635_v6 = vpop.permute.xlu1 %1634  ;;  %10314 = vmatprep.subr.bf16.mxu1 %v10859_v0 }
 0x177   :  { %10315 = vmatpush3.bf16.msra.mxu1 %v10859_v0  ;;  %v1872_v35 = vsel %vm1170_vm1, %v10816_v31, %v1635_v6  ;;  %v1940_v36 = vsel %vm1170_vm1, %v10818_v34, %v1829_v5 }
 0x178   :  { %1164 = vrot.lane.b32.xlu0 %v10795_v7, %s11277_s24 }
 0x179   :  { %2772 = vrot.lane.b32.xlu1 %v10796_v4, %s11277_s24  ;;  %v10840_v4 = vld [vmem:[#allocation2 + $0x20] sm:$0xff]  }
 0x17a   :  { %v1831_v12 = vpop.permute.xlu0 %1830  ;;  %v1637_v13 = vpop.permute.xlu1 %1636 }
 0x17b   :  { %v1876_v43 = vsel %vm1170_vm1, %v10822_v39, %v1637_v13  ;;  %v1944_v44 = vsel %vm1170_vm1, %v10824_v42, %v1831_v12  ;;  %v10843_v13 = vld [vmem:[#allocation2 + $0x88] sm:$0xff]   ;;  %v10852_v42 = vld [vmem:[#allocation2 + $0x98] sm:$0xff]  }
 0x17c   :  { %2167 = vmatmul.mubr.bf16.gmra.mxu1 %v1864_v15  ;;  %1166 = vrot.lane.b32.xlu0 %v10799_v9, %s11277_s24  ;;  %v10842_v9 = vld [vmem:[#allocation2 + $0x70] sm:$0xff]  }
 0x17d   :  { %972 = vrot.lane.b32.xlu1 %v10800_v11, %s11277_s24  ;;  %2174 = vmatprep.mubr.bf16.mxu1 %v1932_v16 }
 0x17e   :  { %v1833_v17 = vpop.permute.xlu0 %1832  ;;  %v1639_v18 = vpop.permute.xlu1 %1638 }
 0x17f   :  { %v1880_v52 = vsel %vm1170_vm1, %v10829_v48, %v1639_v18  ;;  %v1948_v55 = vsel %vm1170_vm1, %v10831_v51, %v1833_v17  ;;  %v10845_v17 = vld [vmem:[#allocation2 + $0x28] sm:$0xff]   ;;  %v10854_v48 = vld [vmem:[#allocation2 + $0x38] sm:$0xff]  }
 0x180   :  { %2774 = vrot.lane.b32.xlu0 %v10803_v14, %s11277_s24 }
 0x181   :  { %974 = vrot.lane.b32.xlu1 %v10804_v19, %s11277_s24 }
 0x182   :  { %v1835_v24 = vpop.permute.xlu0 %1834  ;;  %v1641_v22 = vpop.permute.xlu1 %1640 }
 0x183   :  { %v1884_v0 = vsel %vm1170_vm1, %v10836_v60, %v1641_v22  ;;  %v1952_v3 = vsel %vm1170_vm1, %v10838_v63, %v1835_v24  ;;  %v10847_v24 = vld [vmem:[#allocation2 + $0x90] sm:$0xff]   ;;  %v10897_v22 = vld [vmem:[%s13468_s5 + $0xf8] sm:$0xff]   ;;  %v10857_v63 = vld [vmem:[#allocation2 + $0x40] sm:$0xff]  }
 0x184   :  { %2175 = vmatmul.mubr.bf16.gmra.mxu1 %v1868_v26  ;;  %1168 = vrot.lane.b32.xlu0 %v10808_v23, %s11277_s24  ;;  %v10848_v23 = vld [vmem:[#allocation2 + $0x18] sm:$0xff]  }
 0x185   :  { %2776 = vrot.lane.b32.xlu1 %v10809_v21, %s11277_s24  ;;  %2182 = vmatprep.mubr.bf16.mxu1 %v1936_v27  ;;  %v10846_v21 = vld [vmem:[#allocation2 + $0x78] sm:$0xff]  }
 0x186   :  { %v11709_v28 = vpop.permute.xlu0 %1836  ;;  %v11711_v29 = vpop.permute.xlu1 %1642  ;;  %9559 = vmatprep.subr.bf16.mxu0 %v10897_v22 }
 0x187   :  { %v1888_v14 = vsel %vm1170_vm1, %v10842_v9, %v11711_v29  ;;  %v1956_v15 = vsel %vm1170_vm1, %v10843_v13, %v11709_v28  ;;  %v10862_v9 = vld [vmem:[#allocation2 + $0x48] sm:$0xff]  }
 0x188   :  { %v10901_v13 = vld [vmem:[%s13468_s5 + $0xe8] sm:$0xff]  }
 0x189   :  { %976 = vrot.lane.b32.xlu1 %v10813_v30, %s11277_s24  ;;  %v10849_v30 = vld [vmem:[#allocation2 + $0x30] sm:$0xff]  }
 0x18a   :  { %v11714_v32 = vpop.permute.xlu0 %1838  ;;  %v11716_v33 = vpop.permute.xlu1 %1644 }
 0x18b   :  { %v1892_v28 = vsel %vm1170_vm1, %v10846_v21, %v11716_v33  ;;  %v1960_v29 = vsel %vm1170_vm1, %v10847_v24, %v11714_v32  ;;  %v10853_v32 = vld [vmem:[#allocation2 + $0x20] sm:$0xff]   ;;  %v10867_v21 = vld [vmem:[#allocation2 + $0x50] sm:$0xff]   ;;  %v10835_v24 = vld [vmem:[#allocation2 + $0x48] sm:$0xff]  }
 0x18c   :  { %2183 = vmatmul.mubr.bf16.gmra.mxu1 %v1872_v35 }
 0x18d   :  { %2190 = vmatprep.mubr.bf16.mxu1 %v1940_v36  ;;  %v10851_v36 = vld [vmem:[#allocation2 + $0x80] sm:$0xff]  }
 0x18e   :  { %v11720_v37 = vpop.permute.xlu0 %1840  ;;  %v11722_v38 = vpop.permute.xlu1 %1646 }
 0x192   :  { %v11724_v40 = vpop.permute.xlu0 %1842  ;;  %v11726_v41 = vpop.permute.xlu1 %1648 }
 0x194   :  { %2191 = vmatmul.mubr.bf16.gmra.mxu1 %v1876_v43 }
 0x195   :  { %2198 = vmatprep.mubr.bf16.mxu1 %v1944_v44  ;;  %v1896_v44 = vsel %vm1170_vm1, %v10851_v36, %v11722_v38  ;;  %v10900_v38 = vld [vmem:[%s13468_s5 + $0xb0] sm:$0xff]   ;;  %v10871_v36 = vld [vmem:[#allocation2 + $0x58] sm:$0xff]  }
 0x196   :  { %v11730_v45 = vpop.permute.xlu0 %1844  ;;  %v11732_v46 = vpop.permute.xlu1 %1650 }
 0x19a   :  { %v1139_v49 = vpop.permute.xlu0 %1138  ;;  %v11734_v50 = vpop.permute.xlu1 %1652 }
 0x19b   :  { %v1237_v54 = vsel %vm1170_vm1, %v10834_v47, %v1139_v49  ;;  %v1964_v47 = vsel %vm1170_vm1, %v10852_v42, %v11720_v37  ;;  %v10858_v49 = vld [vmem:[#allocation2 + $0xa0] sm:$0xff]  }
 0x19c   :  { %2199 = vmatmul.mubr.bf16.gmra.mxu1 %v1880_v52  ;;  %2391 = vmatprep.mubr.bf16.mxu0 %v1237_v54  ;;  %v10855_v54 = vld [vmem:[#allocation2 + $0x88] sm:$0xff]  }
 0x19d   :  { %2206 = vmatprep.mubr.bf16.mxu1 %v1948_v55  ;;  %v10899_v55 = vld [vmem:[%s13468_s5 + $0xf0] sm:$0xff]   ;;  %v1900_v60 = vsel %vm1170_vm1, %v10855_v54, %v11726_v41  ;;  %v10875_v54 = vld [vmem:[#allocation2 + $0x68] sm:$0xff]  }
 0x19e   :  { %v11739_v56 = vpop.permute.xlu0 %2746  ;;  %v947_v57 = vpop.permute.xlu1 %946 }
 0x19f   :  { %v1173_v58 = vsel %vm1170_vm1, %v10833_v53, %v947_v57 }
 0x1a0   :  { %2392 = vmatmul.mubr.bf16.vlgmr.msra.gmra.mxu0 %v1173_v58 }
 0x1a1   :  { %9560 = vmatpush3.bf16.msra.mxu0 %v10898_v25 }
 0x1a2   :  { %v11742_v61 = vpop.permute.xlu1 %2748  ;;  %v1141_v62 = vpop.permute.xlu0 %1140  ;;  %9561 = vmatprep.subr.bf16.mxu0 %v10899_v55 }
 0x1a3   :  { %v1241_v1 = vsel %vm1170_vm1, %v10837_v59, %v1141_v62  ;;  %v1968_v59 = vsel %vm1170_vm1, %v10858_v49, %v11724_v40  ;;  %v10856_v62 = vld [vmem:[#allocation2 + $0x28] sm:$0xff]   ;;  %v10874_v49 = vld [vmem:[#allocation2 + $0x60] sm:$0xff]  }
 0x1a4   :  { %2207 = vmatmul.mubr.bf16.gmra.mxu1 %v1884_v0  ;;  %2399 = vmatprep.mubr.bf16.mxu0 %v1241_v1  ;;  %v10863_v0 = vld [vmem:[#allocation2 + $0xa8] sm:$0xff]  }
 0x1a5   :  { %2214 = vmatprep.mubr.bf16.mxu1 %v1952_v3  ;;  %9562 = vmatpush3.bf16.msra.mxu0 %v10900_v38  ;;  %v1972_v40 = vsel %vm1170_vm1, %v10863_v0, %v11730_v45  ;;  %v10902_v45 = vld [vmem:[%s13468_s5 + $0xa8] sm:$0xff]   ;;  %v10876_v38 = vld [vmem:[#allocation2 + $0x70] sm:$0xff]  }
 0x1a6   :  { %v949_v5 = vpop.permute.xlu1 %948  ;;  %v1143_v6 = vpop.permute.xlu0 %1142  ;;  %9563 = vmatprep.subr.bf16.mxu0 %v10901_v13 }
 0x1a7   :  { %v1177_v7 = vsel %vm1170_vm1, %v10839_v2, %v949_v5  ;;  %v1245_v8 = vsel %vm1170_vm1, %v10840_v4, %v1143_v6  ;;  %v10860_v4 = vld [vmem:[#allocation2 + $0x90] sm:$0xff]  }
 0x1a8   :  { %2400 = vmatmul.mubr.bf16.gmra.mxu0 %v1177_v7  ;;  %v1904_v41 = vsel %vm1170_vm1, %v10860_v4, %v11732_v46  ;;  %v10861_v7 = vld [vmem:[#allocation2 + $0x30] sm:$0xff]   ;;  %v10865_v46 = vld [vmem:[#allocation2 + $0x40] sm:$0xff]  }
 0x1a9   :  { %2407 = vmatprep.mubr.bf16.mxu0 %v1245_v8  ;;  %9564 = vmatpush3.bf16.msra.mxu0 %v10902_v45 }
 0x1aa   :  { %v951_v11 = vpop.permute.xlu1 %950  ;;  %v11749_v12 = vpop.permute.xlu0 %2750 }
 0x1ab   :  { %v1181_v16 = vsel %vm1170_vm1, %v10844_v10, %v951_v11  ;;  %v10864_v11 = vld [vmem:[#allocation2 + $0x98] sm:$0xff]  }
 0x1ac   :  { %2215 = vmatmul.mubr.bf16.gmra.mxu1 %v1888_v14 }
 0x1ad   :  { %2222 = vmatprep.mubr.bf16.mxu1 %v1956_v15 }
 0x1ae   :  { %v11756_v18 = vpop.permute.xlu1 %2752  ;;  %v1145_v19 = vpop.permute.xlu0 %1144 }
 0x1af   :  { %v1249_v20 = vsel %vm1170_vm1, %v10845_v17, %v1145_v19  ;;  %v1908_v17 = vsel %vm1170_vm1, %v10864_v11, %v11734_v50  ;;  %v10866_v19 = vld [vmem:[#allocation2 + $0x38] sm:$0xff]   ;;  %v2784_v50 = vsel %vm1170_vm1, %v10835_v24, %v11742_v61  ;;  %v10904_v61 = vld [vmem:[%s13468_s5 + $0xa0] sm:$0xff]  }
 0x1b0   :  { %2408 = vmatmul.mubr.bf16.gmra.mxu0 %v1181_v16  ;;  %v10910_v24 = vld [vmem:[%s13468_s5 + $0x38] sm:$0xff]  }
 0x1b1   :  { %2415 = vmatprep.mubr.bf16.mxu0 %v1249_v20  ;;  %v2780_v20 = vsel %vm1170_vm1, %v10865_v46, %v11739_v56  ;;  %v10886_v46 = vld [vmem:[#allocation2 + $0x78] sm:$0xff]  }
 0x1b2   :  { %v1147_v26 = vpop.permute.xlu0 %1146  ;;  %v953_v27 = vpop.permute.xlu1 %952 }
 0x1b3   :  { %v1185_v35 = vsel %vm1170_vm1, %v10848_v23, %v953_v27  ;;  %v1253_v39 = vsel %vm1170_vm1, %v10849_v30, %v1147_v26  ;;  %v10868_v27 = vld [vmem:[#allocation2 + $0x50] sm:$0xff]  }
 0x1b4   :  { %2223 = vmatmul.mubr.bf16.gmra.mxu1 %v1892_v28  ;;  %v10869_v28 = vld [vmem:[#allocation2 + $0x40] sm:$0xff]   ;;  %v2788_v56 = vsel %vm1170_vm1, %v10868_v27, %v11749_v12 }
 0x1b5   :  { %2230 = vmatprep.mubr.bf16.mxu1 %v1960_v29  ;;  %v10870_v29 = vld [vmem:[#allocation2 + $0x58] sm:$0xff]  }
 0x1b6   :  { %v11769_v31 = vpop.permute.xlu0 %2754  ;;  %v955_v34 = vpop.permute.xlu1 %954 }
 0x1b7   :  { %v1189_v53 = vsel %vm1170_vm1, %v10853_v32, %v955_v34  ;;  %v10873_v32 = vld [vmem:[#allocation2 + $0x48] sm:$0xff]  }
 0x1b8   :  { %2416 = vmatmul.mubr.bf16.gmra.mxu0 %v1185_v35 }
 0x1b9   :  { %2423 = vmatprep.mubr.bf16.mxu0 %v1253_v39  ;;  %v10903_v39 = vld [vmem:[%s13468_s5 + $0xe0] sm:$0xff]  }
 0x1ba   :  { %v1149_v43 = vpop.permute.xlu0 %1148  ;;  %v11773_v33 = vpop.permute.xlu1 %2756  ;;  %9565 = vmatprep.subr.bf16.mxu0 %v10903_v39  ;;  %v10913_v39 = vld [vmem:[%s13468_s5 + $0x68] sm:$0xff]  }
 0x1bb   :  { %v1257_v57 = vsel %vm1170_vm1, %v10854_v48, %v1149_v43  ;;  %v10872_v43 = vld [vmem:[#allocation2 + $0x60] sm:$0xff]   ;;  %9566 = vmatpush3.bf16.msra.mxu0 %v10904_v61 }
 0x1bc   :  { %2231 = vmatmul.mubr.bf16.gmra.mxu1 %v1896_v44  ;;  %v2792_v44 = vsel %vm1170_vm1, %v10871_v36, %v11756_v18  ;;  %v2796_v48 = vsel %vm1170_vm1, %v10872_v43, %v11769_v31  ;;  %v2800_v18 = vsel %vm1170_vm1, %v10875_v54, %v11773_v33  ;;  %v10877_v31 = vld [vmem:[#allocation2 + $0x50] sm:$0xff]   ;;  %v10914_v43 = vld [vmem:[%s13468_s5 + $0x28] sm:$0xff]  }
 0x1bd   :  { %2238 = vmatprep.mubr.bf16.mxu1 %v1964_v47 }
 0x1be   :  { %v1151_v51 = vpop.permute.xlu0 %1150  ;;  %v957_v52 = vpop.permute.xlu1 %956 }
 0x1bf   :  { %v1193_v3 = vsel %vm1170_vm1, %v10856_v62, %v957_v52  ;;  %v1261_v5 = vsel %vm1170_vm1, %v10857_v63, %v1151_v51  ;;  %v10905_v62 = vld [vmem:[%s13468_s5 + $0xd8] sm:$0xff]  }
 0x1c0   :  { %2424 = vmatmul.mubr.bf16.gmra.mxu0 %v1189_v53  ;;  %v10906_v63 = vld [vmem:[%s13468_s5 + $0x98] sm:$0xff]   ;;  %9567 = vmatprep.subr.bf16.mxu0 %v10905_v62  ;;  %v10922_v62 = vld [vmem:[%s13468_s5 + $0x10] sm:$0xff]  }
 0x1c1   :  { %2431 = vmatprep.mubr.bf16.mxu0 %v1257_v57  ;;  %9568 = vmatpush3.bf16.msra.mxu0 %v10906_v63  ;;  %v10896_v63 = vld [vmem:[#allocation2 + $0x78] sm:$0xff]  }
 0x1c2   :  { %v11787_v37 = vpop.permute.xlu0 %2758  ;;  %v959_v58 = vpop.permute.xlu1 %958 }
 0x1c3   :  { %v1197_v10 = vsel %vm1170_vm1, %v10861_v7, %v959_v58  ;;  %v2804_v57 = vsel %vm1170_vm1, %v10876_v38, %v11787_v37  ;;  %v10878_v58 = vld [vmem:[#allocation2 + $0x68] sm:$0xff]   ;;  %v10879_v37 = vld [vmem:[#allocation2 + $0x78] sm:$0xff]  }
 0x1c4   :  { %2239 = vmatmul.mubr.bf16.gmra.mxu1 %v1900_v60  ;;  %v10918_v38 = vld [vmem:[%s13468_s5 + $0x88] sm:$0xff]  }
 0x1c5   :  { %2246 = vmatprep.mubr.bf16.mxu1 %v1968_v59 }
 0x1c6   :  { %v1153_v1 = vpop.permute.xlu0 %1152  ;;  %v11793_v2 = vpop.permute.xlu1 %2760 }
 0x1c7   :  { %v1265_v14 = vsel %vm1170_vm1, %v10862_v9, %v1153_v1  ;;  %v10880_v1 = vld [vmem:[#allocation2 + $0x80] sm:$0xff]   ;;  %v10883_v9 = vld [vmem:[#allocation2 + $0x88] sm:$0xff]  }
 0x1c8   :  { %2432 = vmatmul.mubr.bf16.gmra.mxu0 %v1193_v3  ;;  %v2808_v3 = vsel %vm1170_vm1, %v10879_v37, %v11793_v2  ;;  %v10924_v37 = vld [vmem:[%s13468_s5 + $0x8] sm:$0xff]  }
 0x1c9   :  { %2439 = vmatprep.mubr.bf16.mxu0 %v1261_v5 }
 0x1ca   :  { %v1155_v6 = vpop.permute.xlu0 %1154  ;;  %v961_v8 = vpop.permute.xlu1 %960 }
 0x1cb   :  { %v1201_v23 = vsel %vm1170_vm1, %v10866_v19, %v961_v8  ;;  %v1269_v26 = vsel %vm1170_vm1, %v10867_v21, %v1155_v6  ;;  %v10908_v19 = vld [vmem:[%s13468_s5 + $0x90] sm:$0xff]  }
 0x1cc   :  { %2247 = vmatmul.mubr.bf16.gmra.mxu1 %v1904_v41  ;;  %v10882_v41 = vld [vmem:[#allocation2 + $0x70] sm:$0xff]  }
 0x1cd   :  { %2254 = vmatprep.mubr.bf16.mxu1 %v1972_v40  ;;  %v10881_v40 = vld [vmem:[#allocation2 + $0x58] sm:$0xff]  }
 0x1ce   :  { %v11809_v15 = vpop.permute.xlu0 %2762  ;;  %v963_v16 = vpop.permute.xlu1 %962 }
 0x1cf   :  { %v1205_v35 = vsel %vm1170_vm1, %v10869_v28, %v963_v16  ;;  %v2812_v4 = vsel %vm1170_vm1, %v10880_v1, %v11809_v15  ;;  %v10890_v15 = vld [vmem:[#allocation2 + $0xa0] sm:$0xff]   ;;  %v10912_v28 = vld [vmem:[%s13468_s5 + $0x30] sm:$0xff]  }
 0x1d0   :  { %2440 = vmatmul.mubr.bf16.gmra.mxu0 %v1197_v10  ;;  %v10884_v10 = vld [vmem:[#allocation2 + $0x90] sm:$0xff]  }
 0x1d1   :  { %2447 = vmatprep.mubr.bf16.mxu0 %v1265_v14  ;;  %v10885_v14 = vld [vmem:[#allocation2 + $0x60] sm:$0xff]  }
 0x1d2   :  { %v1157_v22 = vpop.permute.xlu0 %1156 }
 0x1d3   :  { %v11816_v25 = vpop.permute.xlu1 %2764  ;;  %v1273_v42 = vsel %vm1170_vm1, %v10870_v29, %v1157_v22  ;;  %v10891_v29 = vld [vmem:[#allocation2 + $0xa8] sm:$0xff]  }
 0x1d4   :  { %2255 = vmatmul.mubr.bf16.gmra.mxu1 %v1908_v17  ;;  %v2816_v2 = vsel %vm1170_vm1, %v10883_v9, %v11816_v25  ;;  %v10907_v17 = vld [vmem:[%s13468_s5 + $0xd0] sm:$0xff]  }
 0x1d5   :  { %10316 = vmatprep.mubr.bf16.mxu1 %v2780_v20  ;;  %v10909_v20 = vld [vmem:[%s13468_s5 + $0x78] sm:$0xff]   ;;  %9569 = vmatprep.subr.bf16.mxu0 %v10907_v17  ;;  %v10928_v9 = vld [vmem:[#allocation3 + $0x8] sm:$0xff]  }
 0x1d6   :  { %v1159_v30 = vpop.permute.xlu0 %1158  ;;  %9570 = vmatpush3.bf16.msra.mxu0 %v10908_v19  ;;  %9671 = vmatprep.subr.bf16.mxu1 %v10909_v20 }
 0x1d7   :  { %v965_v34 = vpop.permute.xlu1 %964  ;;  %v1277_v52 = vsel %vm1170_vm1, %v10874_v49, %v1159_v30  ;;  %v10889_v30 = vld [vmem:[#allocation2 + $0x80] sm:$0xff]   ;;  %v10892_v49 = vld [vmem:[#allocation2 + $0x70] sm:$0xff]  }
 0x1d8   :  { %2448 = vmatmul.mubr.bf16.gmra.mxu0 %v1201_v23  ;;  %v1209_v51 = vsel %vm1170_vm1, %v10873_v32, %v965_v34  ;;  %v10887_v23 = vld [vmem:[#allocation2 + $0x98] sm:$0xff]   ;;  %v10894_v34 = vld [vmem:[#allocation2 + $0xb0] sm:$0xff]   ;;  %v10915_v32 = vld [vmem:[%s13468_s5 + $0x60] sm:$0xff]  }
 0x1d9   :  { %2455 = vmatprep.mubr.bf16.mxu0 %v1269_v26 }
 0x1da   :  { %v2767_v12 = vpop.permute.xlu0 %2766 }
 0x1db   :  { %v967_v47 = vpop.permute.xlu1 %966  ;;  %v2820_v45 = vsel %vm1170_vm1, %v10884_v10, %v2767_v12  ;;  %v10929_v10 = vld [vmem:[%s13468_s5 + $0x80] sm:$0xff]  }
 0x1dc   :  { %10317 = vmatmul.mubr.bf16.vlgmr.msra.gmra.mxu1 %v2784_v50  ;;  %v1213_v60 = vsel %vm1170_vm1, %v10877_v31, %v967_v47  ;;  %v10911_v50 = vld [vmem:[%s13468_s5 + $0x70] sm:$0xff]   ;;  %v10916_v47 = vld [vmem:[%s13468_s5 + $0x20] sm:$0xff]   ;;  %v10920_v31 = vld [vmem:[%s13468_s5 + $0x18] sm:$0xff]  }
 0x1dd   :  { %10320 = vmatprep.mubr.bf16.mxu1 %v2788_v56  ;;  %9672 = vmatpush3.bf16.msra.mxu1 %v10910_v24  ;;  %v10888_v56 = vld [vmem:[#allocation2 + $0x68] sm:$0xff]   ;;  %v10933_v24 = vld [vmem:[#allocation3 + $0x18] sm:$0xff]  }
 0x1de   :  { %v1161_v53 = vpop.permute.xlu0 %1160  ;;  %9673 = vmatprep.subr.bf16.mxu1 %v10911_v50 }
 0x1df   :  { %v2769_v55 = vpop.permute.xlu1 %2768  ;;  %v1281_v33 = vsel %vm1170_vm1, %v10878_v58, %v1161_v53  ;;  %v10893_v53 = vld [vmem:[#allocation2 + $0x88] sm:$0xff]  }
 0x1e0   :  { %2456 = vmatmul.mubr.bf16.gmra.mxu0 %v1205_v35  ;;  %v2824_v27 = vsel %vm1170_vm1, %v10887_v23, %v2769_v55  ;;  %v10917_v55 = vld [vmem:[%s13468_s5 + $0xc8] sm:$0xff]  }
 0x1e1   :  { %2463 = vmatprep.mubr.bf16.mxu0 %v1273_v42  ;;  %9674 = vmatpush3.bf16.msra.mxu1 %v10912_v28  ;;  %v10938_v28 = vld [vmem:[%s13468_s5 + $0x138] sm:$0xff]  }
 0x1e2   :  { %v1163_v59 = vpop.permute.xlu0 %1162  ;;  %9675 = vmatprep.subr.bf16.mxu1 %v10913_v39  ;;  %9571 = vmatprep.subr.bf16.mxu0 %v10917_v55 }
 0x1e3   :  { %v969_v0 = vpop.permute.xlu1 %968  ;;  %v1285_v8 = vsel %vm1170_vm1, %v10882_v41, %v1163_v59  ;;  %9572 = vmatpush3.bf16.msra.mxu0 %v10918_v38  ;;  %v10921_v59 = vld [vmem:[%s13468_s5 + $0x50] sm:$0xff]   ;;  %v10926_v41 = vld [vmem:[%s13468_s5] sm:$0xff]  }
 0x1e4   :  { %10321 = vmatmul.mubr.bf16.gmra.mxu1 %v2792_v44  ;;  %v1217_v7 = vsel %vm1170_vm1, %v10881_v40, %v969_v0 }
 0x1e5   :  { %10324 = vmatprep.mubr.bf16.mxu1 %v2796_v48  ;;  %9676 = vmatpush3.bf16.msra.mxu1 %v10914_v43  ;;  %v10945_v43 = vld [vmem:[%s13468_s5 + $0x170] sm:$0xff]  }
 0x1e6   :  { %v2771_v5 = vpop.permute.xlu0 %2770  ;;  %9677 = vmatprep.subr.bf16.mxu1 %v10915_v32 }
 0x1e7   :  { %v971_v6 = vpop.permute.xlu1 %970  ;;  %v2828_v26 = vsel %vm1170_vm1, %v10890_v15, %v2771_v5  ;;  %v10931_v15 = vld [vmem:[#allocation3 + $0x10] sm:$0xff]  }
 0x1e8   :  { %2464 = vmatmul.mubr.bf16.gmra.mxu0 %v1209_v51  ;;  %v1221_v16 = vsel %vm1170_vm1, %v10885_v14, %v971_v6  ;;  %v10895_v51 = vld [vmem:[#allocation2 + $0xb8] sm:$0xff]  }
 0x1e9   :  { %2471 = vmatprep.mubr.bf16.mxu0 %v1277_v52  ;;  %9678 = vmatpush3.bf16.msra.mxu1 %v10916_v47 }
 0x1ea   :  { %v1165_v11 = vpop.permute.xlu0 %1164 }
 0x1eb   :  { %v2773_v13 = vpop.permute.xlu1 %2772  ;;  %v1289_v21 = vsel %vm1170_vm1, %v10886_v46, %v1165_v11 }
 0x1ec   :  { %10325 = vmatmul.mubr.bf16.gmra.mxu1 %v2800_v18  ;;  %v2832_v12 = vsel %vm1170_vm1, %v10891_v29, %v2773_v13  ;;  %v10919_v18 = vld [vmem:[%s13468_s5 + $0x58] sm:$0xff]  }
 0x1ed   :  { %10328 = vmatprep.mubr.bf16.mxu1 %v2804_v57  ;;  %9679 = vmatprep.subr.bf16.mxu1 %v10919_v18  ;;  %v10955_v18 = vld [vmem:[%s13468_s5 + $0x168] sm:$0xff]  }
 0x1ee   :  { %v1167_v22 = vpop.permute.xlu0 %1166  ;;  %9680 = vmatpush3.bf16.msra.mxu1 %v10920_v31 }
 0x1ef   :  { %v973_v25 = vpop.permute.xlu1 %972  ;;  %v1293_v42 = vsel %vm1170_vm1, %v10889_v30, %v1167_v22  ;;  %9681 = vmatprep.subr.bf16.mxu1 %v10921_v59  ;;  %v10934_v22 = vld [vmem:[#allocation3 + $0x10] sm:$0xff]  }
 0x1f0   :  { %2472 = vmatmul.mubr.bf16.gmra.mxu0 %v1213_v60  ;;  %v1225_v36 = vsel %vm1170_vm1, %v10888_v56, %v973_v25  ;;  %v10935_v25 = vld [vmem:[#allocation3 + $0x18] sm:$0xff]  }
 0x1f1   :  { %2479 = vmatprep.mubr.bf16.mxu0 %v1281_v33  ;;  %v10923_v33 = vld [vmem:[%s13468_s5 + $0x48] sm:$0xff]  }
 0x1f2   :  { %v2775_v35 = vpop.permute.xlu0 %2774  ;;  %9682 = vmatpush3.bf16.msra.mxu1 %v10922_v62 }
 0x1f3   :  { %v975_v61 = vpop.permute.xlu1 %974  ;;  %v2836_v44 = vsel %vm1170_vm1, %v10894_v34, %v2775_v35  ;;  %9683 = vmatprep.subr.bf16.mxu1 %v10923_v33 }
 0x1f4   :  { %10329 = vmatmul.mubr.bf16.gmra.mxu1 %v2808_v3  ;;  %v1229_v54 = vsel %vm1170_vm1, %v10892_v49, %v975_v61  ;;  %v10925_v3 = vld [vmem:[%s13468_s5 + $0x40] sm:$0xff]  }
 0x1f5   :  { %10332 = vmatprep.mubr.bf16.mxu1 %v2812_v4 }
 0x1f6   :  { %v1169_v48 = vpop.permute.xlu0 %1168  ;;  %9684 = vmatpush3.bf16.msra.mxu1 %v10924_v37 }
 0x1f7   :  { %v2777_v52 = vpop.permute.xlu1 %2776  ;;  %v1297_v57 = vsel %vm1170_vm1, %v10893_v53, %v1169_v48  ;;  %9685 = vmatprep.subr.bf16.mxu1 %v10925_v3 }
 0x1f8   :  { %2480 = vmatmul.mubr.bf16.gmra.mxu0 %v1217_v7  ;;  %v2840_v58 = vsel %vm1170_vm1, %v10895_v51, %v2777_v52 }
 0x1f9   :  { %2487 = vmatprep.mubr.bf16.mxu0 %v1285_v8  ;;  %v10927_v8 = vld [vmem:[%s13468_s5 + $0xc0] sm:$0xff]  }
 0x1fa   :  { %9686 = vmatpush3.bf16.msra.mxu1 %v10926_v41  ;;  %9573 = vmatprep.subr.bf16.mxu0 %v10927_v8 }
 0x1fb   :  { %v977_v60 = vpop.permute.xlu1 %976  ;;  %9574 = vmatpush3.bf16.msra.mxu0 %v10929_v10 }
 0x1fc   :  { %10333 = vmatmul.mubr.bf16.gmra.mxu1 %v2816_v2  ;;  %v1233_v0 = vsel %vm1170_vm1, %v10896_v63, %v977_v60  ;;  %v10930_v2 = vld [vmem:[#allocation3] sm:$0xff]  }
 0x1fd   :  { %10336 = vmatprep.mubr.bf16.mxu1 %v2820_v45 }
 0x200   :  { %2488 = vmatmul.mubr.bf16.gmra.mxu0 %v1221_v16  ;;  %v10932_v16 = vld [vmem:[#allocation3 + $0x8] sm:$0xff]  }
 0x201   :  { %2495 = vmatprep.mubr.bf16.mxu0 %v1289_v21 }
 0x204   :  { %10337 = vmatmul.mubr.bf16.gmra.mxu1 %v2824_v27  ;;  %v10937_v27 = vld [vmem:[#allocation3 + $0x10] sm:$0xff]  }
 0x205   :  { %10340 = vmatprep.mubr.bf16.mxu1 %v2828_v26  ;;  %v10936_v26 = vld [vmem:[%s13468_s5 + $0x178] sm:$0xff]  }
 0x206   :  { %9783 = vmatprep.subr.bf16.mxu0 %v10936_v26 }
 0x208   :  { %2496 = vmatmul.mubr.bf16.gmra.mxu0 %v1225_v36 }
 0x209   :  { %2503 = vmatprep.mubr.bf16.mxu0 %v1293_v42 }
 0x20c   :  { %10341 = vmatmul.mubr.bf16.gmra.mxu1 %v2832_v12  ;;  %v10948_v12 = vld [vmem:[%s13468_s5 + $0x130] sm:$0xff]  }
 0x20d   :  { %10344 = vmatprep.mubr.bf16.mxu1 %v2836_v44 }
 0x210   :  { %2504 = vmatmul.mubr.bf16.gmra.mxu0 %v1229_v54 }
 0x211   :  { %2511 = vmatprep.mubr.bf16.mxu0 %v1297_v57  ;;  %v10958_v57 = vld [vmem:[%s13468_s5 + $0x128] sm:$0xff]  }
 0x214   :  { %10345 = vmatmul.mubr.bf16.gmra.mxu1 %v2840_v58 }
 0x215   :  { %4378 = vmatprep.mubr.bf16.mxu1 %v10928_v9 }
 0x218   :  { %2512 = vmatmul.mubr.bf16.gmra.mxu0 %v1233_v0 }
 0x219   :  { %4121 = vmatprep.mubr.bf16.mxu0 %v10933_v24  ;;  %v10975_v24 = vld [vmem:[%s13468_s5 + $0x158] sm:$0xff]  }
 0x21a   :  { %v9327_v1 = vpop.f32.mrf.mxu1 }
 0x21c   :  { %v9328_v4 = vpop.f32.mrf.mxu1  ;;  %4379 = vmatmul.mubr.bf16.vlgmr.msra.gmra.mxu1 %v10930_v2 }
 0x21d   :  { %v11927_v5 = vadd.f32 %v9328_v4, %v9327_v1  ;;  %4386 = vmatprep.mubr.bf16.mxu1 %v10931_v15 }
 0x21e   :  { %v11929_v40 = vpop.f32.mrf.mxu1 }
 0x220   :  { %v11931_v6 = vpop.f32.mrf.mxu1  ;;  %4122 = vmatmul.mubr.bf16.vlgmr.msra.gmra.mxu0 %v10934_v22 }
 0x221   :  { %9784 = vmatpush3.bf16.msra.mxu0 %v10938_v28 }
 0x222   :  { %9785 = vmatprep.subr.bf16.mxu0 %v10945_v43 }
 0x224   :  { %v9333_v7 = vpop.f32.mrf.mxu1  ;;  %4387 = vmatmul.mubr.bf16.gmra.mxu1 %v10932_v16  ;;  %v10965_v16 = vld [vmem:[%s13468_s5 + $0x160] sm:$0xff]  }
 0x225   :  { %4394 = vmatprep.mubr.bf16.mxu1 %v10935_v25  ;;  %9786 = vmatpush3.bf16.msra.mxu0 %v10948_v12 }
 0x226   :  { %v9334_v11 = vpop.f32.mrf.mxu1  ;;  %9787 = vmatprep.subr.bf16.mxu0 %v10955_v18 }
 0x227   :  { %v11942_v13 = vadd.f32 %v9334_v11, %v9333_v7 }
 0x228   :  { %v11944_v45 = vpop.f32.mrf.mxu1 }
 0x229   :  { %9788 = vmatpush3.bf16.msra.mxu0 %v10958_v57 }
 0x22a   :  { %v11946_v14 = vpop.f32.mrf.mxu1  ;;  %9789 = vmatprep.subr.bf16.mxu0 %v10965_v16 }
 0x22c   :  { %v9339_v46 = vpop.f32.mrf.mxu1  ;;  %4395 = vmatmul.mubr.bf16.gmra.mxu1 %v10937_v27 }
 0x22e   :  { %v9340_v17 = vpop.f32.mrf.mxu1 }
 0x22f   :  { %v11948_v19 = vadd.f32 %v9340_v17, %v9339_v46  ;;  %v10968_v17 = vld [vmem:[%s13468_s5 + $0x120] sm:$0xff]  }
 0x230   :  { %v11950_v20 = vpop.f32.mrf.mxu1  ;;  %9790 = vmatpush3.bf16.msra.mxu0 %v10968_v17  ;;  %v10988_v17 = vld [vmem:[%s13468_s5 + $0x110] sm:$0xff]  }
 0x231   :  { %9791 = vmatprep.subr.bf16.mxu0 %v10975_v24  ;;  %v10989_v24 = vld [vmem:[%s13468_s5 + $0x1f8] sm:$0xff]  }
 0x232   :  { %v11952_v21 = vpop.f32.mrf.mxu1  ;;  %9895 = vmatprep.subr.bf16.mxu1 %v10989_v24  ;;  %v11000_v24 = vld [vmem:[%s13468_s5 + $0x1a8] sm:$0xff]  }
 0x234   :  { %v9345_v23 = vpop.f32.mrf.mxu1 }
 0x236   :  { %v9346_v50 = vpop.f32.mrf.mxu1 }
 0x237   :  { %v11960_v56 = vadd.f32 %v9346_v50, %v9345_v23  ;;  %v10978_v50 = vld [vmem:[%s13468_s5 + $0x118] sm:$0xff]  }
 0x238   :  { %v11962_v29 = vpop.f32.mrf.mxu1  ;;  %9792 = vmatpush3.bf16.msra.mxu0 %v10978_v50  ;;  %v10993_v50 = vld [vmem:[%s13468_s5 + $0x1f0] sm:$0xff]  }
 0x23a   :  { %v11964_v30 = vpop.f32.mrf.mxu1 }
 0x23c   :  { %v9351_v34 = vpop.f32.mrf.mxu1 }
 0x23e   :  { %v9352_v35 = vpop.f32.mrf.mxu1 }
 0x23f   :  { %v11966_v36 = vadd.f32 %v9352_v35, %v9351_v34 }
 0x240   :  { %v11968_v39 = vpop.f32.mrf.mxu1 }
 0x242   :  { %v11970_v61 = vpop.f32.mrf.mxu1 }
 0x244   :  { %v9357_v42 = vpop.f32.mrf.mxu1 }
 0x246   :  { %v9358_v44 = vpop.f32.mrf.mxu1 }
 0x247   :  { %v11978_v32 = vadd.f32 %v9358_v44, %v9357_v42 }
 0x248   :  { %v11980_v47 = vpop.f32.mrf.mxu1 }
 0x24a   :  { %v11982_v48 = vpop.f32.mrf.mxu1 }
 0x24c   :  { %v9363_v49 = vpop.f32.mrf.mxu1 }
 0x24e   :  { %v9364_v51 = vpop.f32.mrf.mxu1 }
 0x24f   :  { %v11984_v52 = vadd.f32 %v9364_v51, %v9363_v49 }
 0x250   :  { %v11986_v53 = vpop.f32.mrf.mxu1 }
 0x251   :  { %13478 = vst [vmem:[#allocation5_spill] sm:$0xff] %v11984_v52 }
 0x252   :  { %v11988_v54 = vpop.f32.mrf.mxu1 }
 0x254   :  { %v9369_v55 = vpop.f32.mrf.mxu1 }
 0x256   :  { %v9370_v38 = vpop.f32.mrf.mxu1 }
 0x257   :  { %v11996_v31 = vadd.f32 %v9370_v38, %v9369_v55  ;;  %v10985_v55 = vld [vmem:[%s13468_s5 + $0x150] sm:$0xff]  }
 0x258   :  { %v11998_v58 = vpop.f32.mrf.mxu1  ;;  %9793 = vmatprep.subr.bf16.mxu0 %v10985_v55  ;;  %v10994_v55 = vld [vmem:[%s13468_s5 + $0x1b0] sm:$0xff]  }
 0x259   :  { %9794 = vmatpush3.bf16.msra.mxu0 %v10988_v17  ;;  %v10997_v17 = vld [vmem:[%s13468_s5 + $0x1e8] sm:$0xff]  }
 0x25a   :  { %v12000_v59 = vpop.f32.mrf.mxu1 }
 0x25c   :  { %v9375_v60 = vpop.f32.mrf.mxu1 }
 0x25e   :  { %v9376_v62 = vpop.f32.mrf.mxu1 }
 0x25f   :  { %v12002_v63 = vadd.f32 %v9376_v62, %v9375_v60 }
 0x260   :  { %v12004_v0 = vpop.f32.mrf.mxu1  ;;  %v12006_v33 = vpop.f32.mrf.mxu0 }
 0x261   :  { %13479 = vst [vmem:[#allocation6_spill] sm:$0xff] %v12002_v63  ;;  %13480 = vst [vmem:[#allocation7_spill] sm:$0xff] %v12004_v0 }
 0x262   :  { %v12008_v37 = vpop.f32.mrf.mxu1  ;;  %v12010_v1 = vpop.f32.mrf.mxu0 }
 0x263   :  { %13481 = vst [vmem:[#allocation8_spill] sm:$0xff] %v12008_v37  ;;  %v9441_v37 = vadd.f32 %v12010_v1, %v12006_v33  ;;  %v11020_v33 = vld [vmem:[%s13468_s5 + $0x180] sm:$0xff]  }
 0x264   :  { %v9381_v3 = vpop.f32.mrf.mxu1  ;;  %v12012_v4 = vpop.f32.mrf.mxu0 }
 0x266   :  { %v9382_v41 = vpop.f32.mrf.mxu1  ;;  %v12014_v7 = vpop.f32.mrf.mxu0 }
 0x267   :  { %v12016_v8 = vadd.f32 %v9382_v41, %v9381_v3 }
 0x268   :  { %v12018_v9 = vpop.f32.mrf.mxu1  ;;  %v12020_v10 = vpop.f32.mrf.mxu0 }
 0x269   :  { %13482 = vst [vmem:[#allocation9_spill] sm:$0xff] %v12016_v8  ;;  %13483 = vst [vmem:[#allocation10_spill] sm:$0xff] %v12018_v9 }
 0x26a   :  { %v12022_v11 = vpop.f32.mrf.mxu1  ;;  %v12024_v2 = vpop.f32.mrf.mxu0 }
 0x26b   :  { %13484 = vst [vmem:[#allocation11_spill] sm:$0xff] %v12022_v11  ;;  %v9447_v9 = vadd.f32 %v12024_v2, %v12020_v10  ;;  %v11021_v10 = vld [vmem:[%s13468_s5 + $0x140] sm:$0xff]  }
 0x26c   :  { %v9387_v46 = vpop.f32.mrf.mxu1  ;;  %v12026_v15 = vpop.f32.mrf.mxu0 }
 0x26e   :  { %v9388_v22 = vpop.f32.mrf.mxu1  ;;  %v12037_v23 = vpop.f32.mrf.mxu0 }
 0x26f   :  { %v12039_v25 = vadd.f32 %v9388_v22, %v9387_v46  ;;  %v10992_v22 = vld [vmem:[%s13468_s5 + $0x1b8] sm:$0xff]  }
 0x270   :  { %v12041_v26 = vpop.f32.mrf.mxu1  ;;  %v12043_v27 = vpop.f32.mrf.mxu0  ;;  %9896 = vmatpush3.bf16.msra.mxu1 %v10992_v22  ;;  %v11001_v22 = vld [vmem:[%s13468_s5 + $0x1e0] sm:$0xff]  }
 0x271   :  { %13485 = vst [vmem:[#allocation12_spill] sm:$0xff] %v12039_v25  ;;  %13486 = vst [vmem:[#allocation13_spill] sm:$0xff] %v12041_v26  ;;  %9897 = vmatprep.subr.bf16.mxu1 %v10993_v50 }
 0x272   :  { %v12048_v28 = vpop.f32.mrf.mxu1  ;;  %v12050_v34 = vpop.f32.mrf.mxu0 }
 0x273   :  { %13487 = vst [vmem:[#allocation14_spill] sm:$0xff] %v12048_v28 }
 0x274   :  { %v9393_v35 = vpop.f32.mrf.mxu1  ;;  %v12052_v42 = vpop.f32.mrf.mxu0  ;;  %9898 = vmatpush3.bf16.msra.mxu1 %v10994_v55  ;;  %v11003_v55 = vld [vmem:[%s13468_s5 + $0x148] sm:$0xff]  }
 0x275   :  { %9899 = vmatprep.subr.bf16.mxu1 %v10997_v17  ;;  %9795 = vmatprep.subr.bf16.mxu0 %v11003_v55 }
 0x276   :  { %v9394_v43 = vpop.f32.mrf.mxu1  ;;  %v12054_v12 = vpop.f32.mrf.mxu0 }
 0x277   :  { %v12056_v44 = vadd.f32 %v9394_v43, %v9393_v35 }
 0x278   :  { %v12058_v49 = vpop.f32.mrf.mxu1  ;;  %v12060_v51 = vpop.f32.mrf.mxu0  ;;  %9900 = vmatpush3.bf16.msra.mxu1 %v11000_v24  ;;  %v11006_v24 = vld [vmem:[%s13468_s5 + $0x108] sm:$0xff]  }
 0x279   :  { %13488 = vst [vmem:[#allocation15_spill] sm:$0xff] %v12056_v44  ;;  %13489 = vst [vmem:[#allocation16_spill] sm:$0xff] %v12058_v49  ;;  %9901 = vmatprep.subr.bf16.mxu1 %v11001_v22  ;;  %v11007_v44 = vld [vmem:[%s13468_s5 + $0x1d8] sm:$0xff]   ;;  %9796 = vmatpush3.bf16.msra.mxu0 %v11006_v24 }
 0x27a   :  { %v12065_v38 = vpop.f32.mrf.mxu1  ;;  %v12067_v18 = vpop.f32.mrf.mxu0  ;;  %v11010_v22 = vld [vmem:[%s13468_s5 + $0x198] sm:$0xff]   ;;  %9797 = vmatprep.subr.bf16.mxu0 %v11021_v10 }
 0x27b   :  { %13490 = vst [vmem:[#allocation17_spill] sm:$0xff] %v12065_v38  ;;  %v9459_v10 = vadd.f32 %v12067_v18, %v12060_v51  ;;  %v9344_v18 = vadd.f32 %v11952_v21, %v11950_v20 }
 0x27c   :  { %v9399_v57 = vpop.f32.mrf.mxu1  ;;  %v12069_v60 = vpop.f32.mrf.mxu0 }
 0x27e   :  { %v9400_v62 = vpop.f32.mrf.mxu1  ;;  %v12071_v3 = vpop.f32.mrf.mxu0 }
 0x27f   :  { %v12073_v41 = vadd.f32 %v9400_v62, %v9399_v57 }
 0x280   :  { %v12075_v46 = vpop.f32.mrf.mxu1  ;;  %v12077_v16 = vpop.f32.mrf.mxu0 }
 0x281   :  { %13491 = vst [vmem:[#allocation18_spill] sm:$0xff] %v12073_v41  ;;  %13492 = vst [vmem:[#allocation19_spill] sm:$0xff] %v12075_v46 }
 0x282   :  { %v12091_v35 = vpop.f32.mrf.mxu1  ;;  %v12093_v43 = vpop.f32.mrf.mxu0 }
 0x283   :  { %13493 = vst [vmem:[#allocation20_spill] sm:$0xff] %v12091_v35 }
 0x284   :  { %v9405_v57 = vpop.f32.mrf.mxu1  ;;  %v12098_v62 = vpop.f32.mrf.mxu0 }
 0x286   :  { %v9406_v41 = vpop.f32.mrf.mxu1  ;;  %v12100_v46 = vpop.f32.mrf.mxu0 }
 0x287   :  { %v12102_v28 = vadd.f32 %v9406_v41, %v9405_v57  ;;  %v11002_v57 = vld [vmem:[%s13468_s5 + $0x1a0] sm:$0xff]  }
 0x288   :  { %v12104_v35 = vpop.f32.mrf.mxu1  ;;  %v12106_v26 = vpop.f32.mrf.mxu0  ;;  %9902 = vmatpush3.bf16.msra.mxu1 %v11002_v57  ;;  %v11012_v57 = vld [vmem:[%s13468_s5 + $0x190] sm:$0xff]  }
 0x289   :  { %13494 = vst [vmem:[#allocation21_spill] sm:$0xff] %v12102_v28  ;;  %13495 = vst [vmem:[#allocation22_spill] sm:$0xff] %v12104_v35  ;;  %9903 = vmatprep.subr.bf16.mxu1 %v11007_v44 }
 0x28a   :  { %v12117_v50 = vpop.f32.mrf.mxu1  ;;  %v12119_v41 = vpop.f32.mrf.mxu0 }
 0x28b   :  { %13496 = vst [vmem:[#allocation23_spill] sm:$0xff] %v12117_v50 }
 0x28c   :  { %v9411_v28 = vpop.f32.mrf.mxu1  ;;  %v12127_v35 = vpop.f32.mrf.mxu0  ;;  %9904 = vmatpush3.bf16.msra.mxu1 %v11010_v22  ;;  %v11015_v22 = vld [vmem:[%s13468_s5 + $0x1c8] sm:$0xff]  }
 0x28e   :  { %v9412_v25 = vpop.f32.mrf.mxu1  ;;  %v12129_v38 = vpop.f32.mrf.mxu0 }
 0x28f   :  { %v12131_v50 = vadd.f32 %v9412_v25, %v9411_v28  ;;  %v11011_v25 = vld [vmem:[%s13468_s5 + $0x1d0] sm:$0xff]  }
 0x290   :  { %v12133_v17 = vpop.f32.mrf.mxu1  ;;  %v12135_v49 = vpop.f32.mrf.mxu0  ;;  %9905 = vmatprep.subr.bf16.mxu1 %v11011_v25  ;;  %v11017_v25 = vld [vmem:[%s13468_s5 + $0x188] sm:$0xff]  }
 0x291   :  { %13497 = vst [vmem:[#allocation24_spill] sm:$0xff] %v12131_v50  ;;  %13498 = vst [vmem:[#allocation25_spill] sm:$0xff] %v12133_v17  ;;  %9906 = vmatpush3.bf16.msra.mxu1 %v11012_v57  ;;  %v9450_v57 = vadd.f32 %v12037_v23, %v12026_v15  ;;  %v9338_v15 = vadd.f32 %v11946_v14, %v11944_v45  ;;  %v11023_v45 = vld [vmem:[%s13468_s5 + $0x100] sm:$0xff]   ;;  %v9453_v14 = vadd.f32 %v12050_v34, %v12043_v27 }
 0x292   :  { %v12149_v28 = vpop.f32.mrf.mxu1  ;;  %v12151_v55 = vpop.f32.mrf.mxu0  ;;  %9907 = vmatprep.subr.bf16.mxu1 %v11015_v22  ;;  %9798 = vmatpush3.bf16.msra.mxu0 %v11023_v45 }
 0x293   :  { %13499 = vst [vmem:[#allocation26_spill] sm:$0xff] %v12149_v28  ;;  %v2405_v52 = vadd.f32 %v9450_v57, %v9338_v15  ;;  %v2418_v57 = vadd.f32 %v9459_v10, %v11960_v56  ;;  %v9471_v56 = vadd.f32 %v12119_v41, %v12106_v26  ;;  %v9356_v26 = vadd.f32 %v11970_v61, %v11968_v39 }
 0x294   :  { %v9417_v50 = vpop.f32.mrf.mxu1  ;;  %v12156_v17 = vpop.f32.mrf.mxu0  ;;  %v12256_v39 = vadd.f32 %v11988_v54, %v11986_v53  ;;  %v9474_v61 = vadd.f32 %v12129_v38, %v12127_v35  ;;  %v9468_v53 = vadd.f32 %v12100_v46, %v12098_v62 }
 0x295   :  { %9908 = vmatpush3.bf16.msra.mxu1 %v11017_v25 }
 0x296   :  { %v9418_v63 = vpop.f32.mrf.mxu1  ;;  %v12158_v11 = vpop.f32.mrf.mxu0 }
 0x297   :  { %v12162_v28 = vadd.f32 %v9418_v63, %v9417_v50  ;;  %v11019_v63 = vld [vmem:[%s13468_s5 + $0x1c0] sm:$0xff]  }
 0x298   :  { %v12164_v24 = vpop.f32.mrf.mxu1  ;;  %v12166_v44 = vpop.f32.mrf.mxu0  ;;  %9909 = vmatprep.subr.bf16.mxu1 %v11019_v63 }
 0x299   :  { %13500 = vst [vmem:[#allocation27_spill] sm:$0xff] %v12162_v28  ;;  %13501 = vst [vmem:[#allocation28_spill] sm:$0xff] %v12164_v24  ;;  %v2402_v24 = vadd.f32 %v9447_v9, %v11942_v13  ;;  %v2394_v13 = vadd.f32 %v9441_v37, %v11927_v5  ;;  %v9444_v9 = vadd.f32 %v12014_v7, %v12012_v4  ;;  %9910 = vmatpush3.bf16.msra.mxu1 %v11020_v33 }
 0x29a   :  { %v12182_v2 = vpop.f32.mrf.mxu1  ;;  %v12184_v50 = vpop.f32.mrf.mxu0  ;;  %v9332_v5 = vadd.f32 %v11931_v6, %v11929_v40  ;;  %v9462_v7 = vadd.f32 %v12071_v3, %v12069_v60  ;;  %v9350_v6 = vadd.f32 %v11964_v30, %v11962_v29  ;;  %v9465_v29 = vadd.f32 %v12093_v43, %v12077_v16 }
 0x29b   :  { %13502 = vst [vmem:[#allocation29_spill] sm:$0xff] %v12182_v2  ;;  %v12197_v2 = vld [vmem:[%s13469_s4] ss:$0 sm:$0xff]  ;;  %v9362_v43 = vadd.f32 %v11982_v48, %v11980_v47  ;;  %v2434_v48 = vadd.f32 %v9471_v56, %v11978_v32  ;;  %v9483_v54 = vadd.f32 %v12184_v50, %v12166_v44 }
 0x29c   :  { %v12192_v1 = vpop.f32.mrf.mxu0  ;;  %v10318_v28 = vpop.f32.mrf.mxu1  ;;  %v2397_v63 = vadd.f32 %v9444_v9, %v9332_v5  ;;  %v2421_v15 = vadd.f32 %v9462_v7, %v9350_v6 }
 0x29d   :  { %v3069_v23 = vadd.f32 %v10318_v28, %v2402_v24 }
 0x29e   :  { %v12204_v22 = vpop.f32.mrf.mxu0  ;;  %v2940_v25 = vpop.f32.mrf.mxu1 }
 0x29f   :  { %v3108_v0 = vadd.f32 %v12197_v2, %v3069_v23  ;;  %v3067_v8 = vadd.f32 %v2940_v25, %v2394_v13 }
 0x2a0   :  { %v12216_v37 = vpop.f32.mrf.mxu0  ;;  %v10319_v4 = vpop.f32.mrf.mxu1 }
 0x2a1   :  { %v3070_v51 = vadd.f32 %v10319_v4, %v2405_v52  ;;  %v3106_v28 = vadd.f32 %v12197_v2, %v3067_v8  ;;  %v3172_v27 = vmul.f32 0.2, %v3108_v0  ;;  %v9456_v52 = vadd.f32 %v12054_v12, %v12052_v42 }
 0x2a2   :  { %v12223_v24 = vpop.f32.mrf.mxu0  ;;  %v2943_v40 = vpop.f32.mrf.mxu1  ;;  %vm3140_vm4 = vcmp.gt.f32.partialorder %v3108_v0, 0.0  ;;  %v2410_v8 = vadd.f32 %v9453_v14, %v11948_v19 }
 0x2a3   :  { %v3109_v34 = vadd.f32 %v12197_v2, %v3070_v51  ;;  %v3068_v60 = vadd.f32 %v2943_v40, %v2397_v63  ;;  %v3170_v30 = vmul.f32 0.2, %v3106_v28  ;;  %v3204_v13 = vsel %vm3140_vm4, %v3108_v0, %v3172_v27  ;;  %v11031_v0 = vld [vmem:[%s13468_s5 + $0x278] sm:$0xff]  }
 0x2a4   :  { %v12231_v20 = vpop.f32.mrf.mxu0  ;;  %v10322_v21 = vpop.f32.mrf.mxu1  ;;  %vm3138_vm6 = vcmp.gt.f32.partialorder %v3106_v28, 0.0  ;;  %v2413_v63 = vadd.f32 %v9456_v52, %v9344_v18  ;;  %10007 = vmatprep.subr.bf16.mxu0 %v11031_v0  ;;  %v2426_v18 = vadd.f32 %v9465_v29, %v11966_v36 }
 0x2a5   :  { %vm3141_vm5 = vcmp.gt.f32.partialorder %v3109_v34, 0.0  ;;  %v3173_v3 = vmul.f32 0.2, %v3109_v34  ;;  %v3073_v33 = vadd.f32 %v10322_v21, %v2418_v57  ;;  %v3107_v42 = vadd.f32 %v12197_v2, %v3068_v60 }
 0x2a6   :  { %v12239_v12 = vpop.f32.mrf.mxu0  ;;  %v2956_v23 = vpop.f32.mrf.mxu1  ;;  %v3202_v14 = vsel %vm3138_vm6, %v3106_v28, %v3170_v30  ;;  %v2429_v30 = vadd.f32 %v9468_v53, %v9356_v26  ;;  %v9374_v26 = vadd.f32 %v12000_v59, %v11998_v58 }
 0x2a7   :  { %v3205_v9 = vsel %vm3141_vm5, %v3109_v34, %v3173_v3  ;;  %v3071_v19 = vadd.f32 %v2956_v23, %v2410_v8  ;;  %vm3139_vm7 = vcmp.gt.f32.partialorder %v3107_v42, 0.0  ;;  %v3171_v10 = vmul.f32 0.2, %v3107_v42 }
 0x2a8   :  { %v9207_v25 = vpack.c.bf16 %v3205_v9, %v3204_v13  ;;  %v3112_v45 = vadd.f32 %v12197_v2, %v3073_v33  ;;  %v12242_v5 = vpop.f32.mrf.mxu0  ;;  %v10323_v16 = vpop.f32.mrf.mxu1  ;;  %v2437_v3 = vadd.f32 %v9474_v61, %v9362_v43 }
 0x2a9   :  { %v3074_v41 = vadd.f32 %v10323_v16, %v2421_v15  ;;  %v3203_v4 = vsel %vm3139_vm7, %v3107_v42, %v3171_v10  ;;  %v3110_v7 = vadd.f32 %v12197_v2, %v3071_v19  ;;  %v9477_v15 = vadd.f32 %v12151_v55, %v12135_v49  ;;  %v10941_v42 = vld [vmem:[#allocation3 + $0x18] sm:$0xff]  }
 0x2aa   :  { %9279 = vst [vmem:[#allocation3 + $0x28] sm:$0xff] %v9207_v25   ;;  %v12252_v51 = vpop.f32.mrf.mxu0  ;;  %v2959_v40 = vpop.f32.mrf.mxu1  ;;  %v9202_v47 = vpack.c.bf16 %v3203_v4, %v3202_v14  ;;  %v3176_v28 = vmul.f32 0.2, %v3112_v45  ;;  %vm3144_vm8 = vcmp.gt.f32.partialorder %v3112_v45, 0.0  ;;  %v2450_v10 = vadd.f32 %v9483_v54, %v11996_v31 }
 0x2ab   :  { %v3113_v6 = vadd.f32 %v12197_v2, %v3074_v41  ;;  %v3072_v27 = vadd.f32 %v2959_v40, %v2413_v63  ;;  %v3174_v32 = vmul.f32 0.2, %v3110_v7  ;;  %vm3142_vm10 = vcmp.gt.f32.partialorder %v3110_v7, 0.0 }
 0x2ac   :  { %v12262_v34 = vpop.f32.mrf.mxu0  ;;  %v10326_v57 = vpop.f32.mrf.mxu1  ;;  %9203 = vst [vmem:[#allocation3 + $0x20] sm:$0xff] %v9202_v47   ;;  %v3208_v46 = vsel %vm3144_vm8, %v3112_v45, %v3176_v28  ;;  %v10942_v45 = vld [vmem:[#allocation3 + $0x18] sm:$0xff]   ;;  %v9486_v16 = vadd.f32 %v12204_v22, %v12192_v1  ;;  %v9480_v63 = vadd.f32 %v12158_v11, %v12156_v17  ;;  %v13503_v22 = vld [vmem:[#allocation5_spill] sm:$0xff]  ;;  %v9495_v58 = vadd.f32 %v12252_v51, %v12242_v5 }
 0x2ad   :  { %v3077_v38 = vadd.f32 %v10326_v57, %v2434_v48  ;;  %vm3145_vm9 = vcmp.gt.f32.partialorder %v3113_v6, 0.0  ;;  %v3177_v35 = vmul.f32 0.2, %v3113_v6  ;;  %v3111_v52 = vadd.f32 %v12197_v2, %v3072_v27 }
 0x2ae   :  { %v12270_v60 = vpop.f32.mrf.mxu0  ;;  %v2972_v21 = vpop.f32.mrf.mxu1  ;;  %v3206_v23 = vsel %vm3142_vm10, %v3110_v7, %v3174_v32  ;;  %v2442_v40 = vadd.f32 %v9477_v15, %v13503_v22  ;;  %v2453_v27 = vadd.f32 %v9486_v16, %v9374_v26  ;;  %v9489_v54 = vadd.f32 %v12223_v24, %v12216_v37  ;;  %v13505_v15 = vld [vmem:[#allocation7_spill] sm:$0xff] }
 0x2af   :  { %v3116_v36 = vadd.f32 %v12197_v2, %v3077_v38  ;;  %v3075_v8 = vadd.f32 %v2972_v21, %v2426_v18  ;;  %v3209_v62 = vsel %vm3145_vm9, %v3113_v6, %v3177_v35  ;;  %vm3143_vm11 = vcmp.gt.f32.partialorder %v3111_v52, 0.0 }
 0x2b0   :  { %v3175_v44 = vmul.f32 0.2, %v3111_v52  ;;  %v12273_v50 = vpop.f32.mrf.mxu0  ;;  %v10327_v33 = vpop.f32.mrf.mxu1  ;;  %v9217_v29 = vpack.c.bf16 %v3209_v62, %v3208_v46  ;;  %v2445_v35 = vadd.f32 %v9480_v63, %v12256_v39  ;;  %v13504_v46 = vld [vmem:[#allocation9_spill] sm:$0xff] }
 0x2b1   :  { %v3114_v56 = vadd.f32 %v12197_v2, %v3075_v8  ;;  %v3078_v9 = vadd.f32 %v10327_v33, %v2437_v3  ;;  %v3180_v49 = vmul.f32 0.2, %v3116_v36  ;;  %vm3148_vm12 = vcmp.gt.f32.partialorder %v3116_v36, 0.0  ;;  %v10943_v31 = vld [vmem:[#allocation3 + $0x28] sm:$0xff]  }
 0x2b2   :  { %v3207_v13 = vsel %vm3143_vm11, %v3111_v52, %v3175_v44  ;;  %v12278_v19 = vpop.f32.mrf.mxu0  ;;  %v2975_v25 = vpop.f32.mrf.mxu1  ;;  %9281 = vst [vmem:[#allocation3 + $0x38] sm:$0xff] %v9217_v29   ;;  %v10944_v6 = vld [vmem:[#allocation3 + $0x28] sm:$0xff]   ;;  %v2466_v62 = vadd.f32 %v9495_v58, %v13504_v46  ;;  %v9498_v44 = vadd.f32 %v12270_v60, %v12262_v34  ;;  %v13509_v60 = vld [vmem:[#allocation6_spill] sm:$0xff] }
 0x2b3   :  { %v9212_v43 = vpack.c.bf16 %v3207_v13, %v3206_v23  ;;  %v3178_v55 = vmul.f32 0.2, %v3114_v56  ;;  %v3117_v41 = vadd.f32 %v12197_v2, %v3078_v9  ;;  %v3076_v0 = vadd.f32 %v2975_v25, %v2429_v30  ;;  %v10939_v7 = vld [vmem:[#allocation3 + $0x20] sm:$0xff]   ;;  %v13507_v25 = vld [vmem:[#allocation10_spill] sm:$0xff] }
 0x2b4   :  { %v12286_v14 = vpop.f32.mrf.mxu0  ;;  %v10330_v4 = vpop.f32.mrf.mxu1  ;;  %vm3146_vm13 = vcmp.gt.f32.partialorder %v3114_v56, 0.0  ;;  %v10940_v61 = vld [vmem:[#allocation3 + $0x20] sm:$0xff]   ;;  %4129 = vmatprep.mubr.bf16.mxu0 %v10939_v7  ;;  %v3212_v57 = vsel %vm3148_vm12, %v3116_v36, %v3180_v49  ;;  %v2458_v16 = vadd.f32 %v9489_v54, %v13509_v60  ;;  %v9492_v49 = vadd.f32 %v12239_v12, %v12231_v20  ;;  %v10951_v54 = vld [vmem:[#allocation3 + $0x28] sm:$0xff]  }
 0x2b5   :  { %9280 = vst [vmem:[#allocation3 + $0x30] sm:$0xff] %v9212_v43   ;;  %v3081_v1 = vadd.f32 %v10330_v4, %v2450_v10  ;;  %vm3149_vm14 = vcmp.gt.f32.partialorder %v3117_v41, 0.0  ;;  %v3181_v59 = vmul.f32 0.2, %v3117_v41  ;;  %v3115_v47 = vadd.f32 %v12197_v2, %v3076_v0  ;;  %4402 = vmatprep.mubr.bf16.mxu1 %v10940_v61  ;;  %4130 = vmatmul.mubr.bf16.gmra.mxu0 %v10941_v42  ;;  %v10946_v24 = vld [vmem:[#allocation3 + $0x20] sm:$0xff]  }
 0x2b6   :  { %v12294_v48 = vpop.f32.mrf.mxu0  ;;  %v2988_v28 = vpop.f32.mrf.mxu1  ;;  %4403 = vmatmul.mubr.bf16.gmra.mxu1 %v10942_v45  ;;  %4137 = vmatprep.mubr.bf16.mxu0 %v10943_v31  ;;  %v3210_v52 = vsel %vm3146_vm13, %v3114_v56, %v3178_v55  ;;  %v13506_v29 = vld [vmem:[#allocation8_spill] sm:$0xff]  ;;  %v13508_v10 = vld [vmem:[#allocation11_spill] sm:$0xff]  ;;  %v9501_v58 = vadd.f32 %v12278_v19, %v12273_v50  ;;  %v13512_v50 = vld [vmem:[#allocation17_spill] sm:$0xff] }
 0x2b7   :  { %v3120_v11 = vadd.f32 %v12197_v2, %v3081_v1  ;;  %v3079_v17 = vadd.f32 %v2988_v28, %v2442_v40  ;;  %v3213_v18 = vsel %vm3149_vm14, %v3117_v41, %v3181_v59  ;;  %vm3147_vm15 = vcmp.gt.f32.partialorder %v3115_v47, 0.0  ;;  %4410 = vmatprep.mubr.bf16.mxu1 %v10944_v6  ;;  %v10947_v9 = vld [vmem:[#allocation3 + $0x20] sm:$0xff]  }
 0x2b8   :  { %v3179_v5 = vmul.f32 0.2, %v3115_v47  ;;  %v9505_v51 = vpop.f32.mrf.mxu0  ;;  %v10331_v53 = vpop.f32.mrf.mxu1  ;;  %v9227_v38 = vpack.c.bf16 %v3213_v18, %v3212_v57  ;;  %v9380_v30 = vadd.f32 %v13506_v29, %v13505_v15  ;;  %v9386_v45 = vadd.f32 %v13508_v10, %v13507_v25 }
 0x2b9   :  { %v3118_v32 = vadd.f32 %v12197_v2, %v3079_v17  ;;  %v3082_v36 = vadd.f32 %v10331_v53, %v2453_v27  ;;  %vm3152_vm0 = vcmp.gt.f32.partialorder %v3120_v11, 0.0  ;;  %v3184_v37 = vmul.f32 0.2, %v3120_v11 }
 0x2ba   :  { %v3211_v21 = vsel %vm3147_vm15, %v3115_v47, %v3179_v5  ;;  %v9506_v8 = vpop.f32.mrf.mxu0  ;;  %v2991_v3 = vpop.f32.mrf.mxu1  ;;  %9283 = vst [vmem:[#allocation3 + $0x48] sm:$0xff] %v9227_v38   ;;  %v2469_v1 = vadd.f32 %v9498_v44, %v9386_v45  ;;  %v13511_v38 = vld [vmem:[#allocation16_spill] sm:$0xff]  ;;  %v9504_v46 = vadd.f32 %v12294_v48, %v12286_v14 }
 0x2bb   :  { %v9222_v33 = vpack.c.bf16 %v3211_v21, %v3210_v52  ;;  %v3182_v39 = vmul.f32 0.2, %v3118_v32  ;;  %v3121_v56 = vadd.f32 %v12197_v2, %v3082_v36  ;;  %v3080_v42 = vadd.f32 %v2991_v3, %v2445_v35  ;;  %v10953_v3 = vld [vmem:[#allocation3 + $0x38] sm:$0xff]  }
 0x2bc   :  { %v9508_v23 = vpop.f32.mrf.mxu0  ;;  %v10334_v13 = vpop.f32.mrf.mxu1  ;;  %vm3150_vm2 = vcmp.gt.f32.partialorder %v3118_v32, 0.0  ;;  %v10949_v43 = vld [vmem:[#allocation3 + $0x30] sm:$0xff]   ;;  %v9507_v7 = vadd.f32 %v9506_v8, %v9505_v51  ;;  %v3216_v22 = vsel %vm3152_vm0, %v3120_v11, %v3184_v37  ;;  %v2461_v11 = vadd.f32 %v9492_v49, %v9380_v30  ;;  %v13510_v51 = vld [vmem:[#allocation15_spill] sm:$0xff]  ;;  %v10952_v8 = vld [vmem:[#allocation3 + $0x28] sm:$0xff]  }
 0x2bd   :  { %9282 = vst [vmem:[#allocation3 + $0x40] sm:$0xff] %v9222_v33   ;;  %v3085_v34 = vadd.f32 %v10334_v13, %v2466_v62  ;;  %vm3153_vm3 = vcmp.gt.f32.partialorder %v3121_v56, 0.0  ;;  %v3185_v55 = vmul.f32 0.2, %v3121_v56  ;;  %v3119_v26 = vadd.f32 %v12197_v2, %v3080_v42  ;;  %v10950_v4 = vld [vmem:[#allocation3 + $0x30] sm:$0xff]   ;;  %4138 = vmatmul.mubr.bf16.gmra.mxu0 %v10946_v24  ;;  %v13513_v33 = vld [vmem:[#allocation12_spill] sm:$0xff] }
 0x2be   :  { %v9509_v41 = vpop.f32.mrf.mxu0  ;;  %v3004_v0 = vpop.f32.mrf.mxu1  ;;  %4411 = vmatmul.mubr.bf16.gmra.mxu1 %v10947_v9  ;;  %4145 = vmatprep.mubr.bf16.mxu0 %v10949_v43  ;;  %v3214_v28 = vsel %vm3150_vm2, %v3118_v32, %v3182_v39  ;;  %v2482_v53 = vadd.f32 %v9507_v7, %v13510_v51  ;;  %v9398_v19 = vadd.f32 %v13512_v50, %v13511_v38  ;;  %v10954_v24 = vld [vmem:[#allocation3 + $0x38] sm:$0xff]  }
 0x2bf   :  { %v3124_v31 = vadd.f32 %v12197_v2, %v3085_v34  ;;  %v3083_v63 = vadd.f32 %v3004_v0, %v2458_v16  ;;  %v3217_v40 = vsel %vm3153_vm3, %v3121_v56, %v3185_v55  ;;  %vm3151_vm1 = vcmp.gt.f32.partialorder %v3119_v26, 0.0  ;;  %4418 = vmatprep.mubr.bf16.mxu1 %v10950_v4  ;;  %v13514_v56 = vld [vmem:[#allocation13_spill] sm:$0xff]  ;;  %v13515_v42 = vld [vmem:[#allocation14_spill] sm:$0xff]  ;;  %v13516_v7 = vld [vmem:[#allocation19_spill] sm:$0xff] }
 0x2c0   :  { %v3183_v61 = vmul.f32 0.2, %v3119_v26  ;;  %v9511_v20 = vpop.f32.mrf.mxu0  ;;  %v10335_v12 = vpop.f32.mrf.mxu1  ;;  %v9237_v59 = vpack.c.bf16 %v3217_v40, %v3216_v22  ;;  %v9510_v5 = vadd.f32 %v9509_v41, %v9508_v23  ;;  %v2474_v37 = vadd.f32 %v9501_v58, %v13513_v33  ;;  %v10956_v40 = vld [vmem:[#allocation3 + $0x30] sm:$0xff]  }
 0x2c1   :  { %v3122_v47 = vadd.f32 %v12197_v2, %v3083_v63  ;;  %v3086_v17 = vadd.f32 %v10335_v12, %v2469_v1  ;;  %vm3156_vm4 = vcmp.gt.f32.partialorder %v3124_v31, 0.0  ;;  %v3188_v35 = vmul.f32 0.2, %v3124_v31 }
 0x2c2   :  { %v3215_v6 = vsel %vm3151_vm1, %v3119_v26, %v3183_v61  ;;  %v9512_v27 = vpop.f32.mrf.mxu0  ;;  %v3007_v57 = vpop.f32.mrf.mxu1  ;;  %9285 = vst [vmem:[#allocation3 + $0x58] sm:$0xff] %v9237_v59   ;;  %v9392_v23 = vadd.f32 %v13515_v42, %v13514_v56  ;;  %v2485_v14 = vadd.f32 %v9510_v5, %v9398_v19 }
 0x2c3   :  { %v9232_v18 = vpack.c.bf16 %v3215_v6, %v3214_v28  ;;  %v3125_v52 = vadd.f32 %v12197_v2, %v3086_v17  ;;  %v3084_v21 = vadd.f32 %v3007_v57, %v2461_v11  ;;  %v3186_v62 = vmul.f32 0.2, %v3122_v47  ;;  %v13518_v28 = vld [vmem:[#allocation22_spill] sm:$0xff]  ;;  %v13519_v6 = vld [vmem:[#allocation23_spill] sm:$0xff] }
 0x2c4   :  { %v9514_v32 = vpop.f32.mrf.mxu0  ;;  %v10338_v36 = vpop.f32.mrf.mxu1  ;;  %vm3154_vm5 = vcmp.gt.f32.partialorder %v3122_v47, 0.0  ;;  %v3220_v48 = vsel %vm3156_vm4, %v3124_v31, %v3188_v35  ;;  %v9513_v16 = vadd.f32 %v9512_v27, %v9511_v20  ;;  %v2477_v0 = vadd.f32 %v9504_v46, %v9392_v23  ;;  %v13517_v31 = vld [vmem:[#allocation20_spill] sm:$0xff]  ;;  %v13520_v57 = vld [vmem:[#allocation18_spill] sm:$0xff] }
 0x2c5   :  { %9284 = vst [vmem:[#allocation3 + $0x50] sm:$0xff] %v9232_v18   ;;  %v3089_v44 = vadd.f32 %v10338_v36, %v2482_v53  ;;  %vm3157_vm6 = vcmp.gt.f32.partialorder %v3125_v52, 0.0  ;;  %v3189_v15 = vmul.f32 0.2, %v3125_v52  ;;  %v3123_v29 = vadd.f32 %v12197_v2, %v3084_v21  ;;  %4146 = vmatmul.mubr.bf16.gmra.mxu0 %v10951_v54  ;;  %v13521_v53 = vld [vmem:[#allocation21_spill] sm:$0xff]  ;;  %v10959_v19 = vld [vmem:[#allocation3 + $0x40] sm:$0xff]  }
 0x2c6   :  { %v9515_v30 = vpop.f32.mrf.mxu0  ;;  %v3020_v39 = vpop.f32.mrf.mxu1  ;;  %4419 = vmatmul.mubr.bf16.gmra.mxu1 %v10952_v8  ;;  %4153 = vmatprep.mubr.bf16.mxu0 %v10953_v3  ;;  %v3218_v49 = vsel %vm3154_vm5, %v3122_v47, %v3186_v62  ;;  %v9404_v63 = vadd.f32 %v13517_v31, %v13516_v7  ;;  %v10957_v47 = vld [vmem:[#allocation3 + $0x30] sm:$0xff]   ;;  %v9410_v17 = vadd.f32 %v13519_v6, %v13518_v28  ;;  %v10960_v36 = vld [vmem:[#allocation3 + $0x40] sm:$0xff]   ;;  %v10964_v31 = vld [vmem:[#allocation3 + $0x48] sm:$0xff]   ;;  %vm11279_vm4 = vmmov 0  }
 0x2c7   :  { %v3128_v13 = vadd.f32 %v12197_v2, %v3089_v44  ;;  %v3087_v9 = vadd.f32 %v3020_v39, %v2474_v37  ;;  %v3221_v25 = vsel %vm3157_vm6, %v3125_v52, %v3189_v15  ;;  %vm3155_vm7 = vcmp.gt.f32.partialorder %v3123_v29, 0.0  ;;  %4426 = vmatprep.mubr.bf16.mxu1 %v10954_v24 }
 0x2c8   :  { %v3187_v10 = vmul.f32 0.2, %v3123_v29  ;;  %v9517_v45 = vpop.f32.mrf.mxu0  ;;  %v10339_v34 = vpop.f32.mrf.mxu1  ;;  %v9247_v60 = vpack.c.bf16 %v3221_v25, %v3220_v48  ;;  %v9516_v27 = vadd.f32 %v9515_v30, %v9514_v32  ;;  %v2490_v18 = vadd.f32 %v9513_v16, %v13520_v57 }
 0x2c9   :  { %v3126_v43 = vadd.f32 %v12197_v2, %v3087_v9  ;;  %v3090_v26 = vadd.f32 %v10339_v34, %v2485_v14  ;;  %v3192_v22 = vmul.f32 0.2, %v3128_v13  ;;  %vm3160_vm8 = vcmp.gt.f32.partialorder %v3128_v13, 0.0  ;;  %v10963_v34 = vld [vmem:[#allocation3 + $0x48] sm:$0xff]  }
 0x2ca   :  { %v3219_v55 = vsel %vm3155_vm7, %v3123_v29, %v3187_v10  ;;  %v9518_v41 = vpop.f32.mrf.mxu0  ;;  %v3023_v4 = vpop.f32.mrf.mxu1  ;;  %9287 = vst [vmem:[#allocation3 + $0x68] sm:$0xff] %v9247_v60   ;;  %v2493_v39 = vadd.f32 %v9516_v27, %v9404_v63 }
 0x2cb   :  { %v9242_v1 = vpack.c.bf16 %v3219_v55, %v3218_v49  ;;  %v3129_v61 = vadd.f32 %v12197_v2, %v3090_v26  ;;  %v9519_v20 = vadd.f32 %v9518_v41, %v9517_v45  ;;  %v3088_v12 = vadd.f32 %v3023_v4, %v2477_v0  ;;  %v10962_v45 = vld [vmem:[#allocation3 + $0x38] sm:$0xff]   ;;  %v13524_v0 = vld [vmem:[#allocation24_spill] sm:$0xff] }
 0x2cc   :  { %v9520_v58 = vpop.f32.mrf.mxu0  ;;  %v10342_v59 = vpop.f32.mrf.mxu1  ;;  %v3190_v11 = vmul.f32 0.2, %v3126_v43  ;;  %v3224_v35 = vsel %vm3160_vm8, %v3128_v13, %v3192_v22  ;;  %vm3158_vm10 = vcmp.gt.f32.partialorder %v3126_v43, 0.0  ;;  %v10961_v13 = vld [vmem:[#allocation3 + $0x38] sm:$0xff]  }
 0x2cd   :  { %9286 = vst [vmem:[#allocation3 + $0x60] sm:$0xff] %v9242_v1   ;;  %vm3161_vm9 = vcmp.gt.f32.partialorder %v3129_v61, 0.0  ;;  %v3193_v5 = vmul.f32 0.2, %v3129_v61  ;;  %v3127_v51 = vadd.f32 %v12197_v2, %v3088_v12  ;;  %v2498_v54 = vadd.f32 %v9519_v20, %v13521_v53  ;;  %4154 = vmatmul.mubr.bf16.gmra.mxu0 %v10956_v40  ;;  %v13523_v49 = vld [vmem:[#allocation26_spill] sm:$0xff]  ;;  %v10966_v53 = vld [vmem:[#allocation3 + $0x40] sm:$0xff]  }
 0x2ce   :  { %v9521_v38 = vpop.f32.mrf.mxu0  ;;  %v3036_v50 = vpop.f32.mrf.mxu1  ;;  %4427 = vmatmul.mubr.bf16.gmra.mxu1 %v10957_v47  ;;  %4161 = vmatprep.mubr.bf16.mxu0 %v10959_v19  ;;  %v3222_v24 = vsel %vm3158_vm10, %v3126_v43, %v3190_v11  ;;  %v13522_v43 = vld [vmem:[#allocation25_spill] sm:$0xff] }
 0x2cf   :  { %v9522_v52 = vadd.f32 %v9521_v38, %v9520_v58  ;;  %v3091_v21 = vadd.f32 %v3036_v50, %v2490_v18  ;;  %v3225_v32 = vsel %vm3161_vm9, %v3129_v61, %v3193_v5  ;;  %vm3159_vm11 = vcmp.gt.f32.partialorder %v3127_v51, 0.0  ;;  %4434 = vmatprep.mubr.bf16.mxu1 %v10960_v36  ;;  %v13525_v50 = vld [vmem:[#allocation27_spill] sm:$0xff] }
 0x2d0   :  { %v3191_v8 = vmul.f32 0.2, %v3127_v51  ;;  %v3093_v3 = vadd.f32 %v10342_v59, %v2498_v54  ;;  %v9523_v46 = vpop.f32.mrf.mxu0  ;;  %v10343_v62 = vpop.f32.mrf.mxu1  ;;  %v9257_v44 = vpack.c.bf16 %v3225_v32, %v3224_v35  ;;  %v9416_v55 = vadd.f32 %v13523_v49, %v13522_v43  ;;  %v10967_v54 = vld [vmem:[#allocation3 + $0x40] sm:$0xff]   ;;  %v10977_v49 = vld [vmem:[#allocation3 + $0x50] sm:$0xff]  }
 0x2d1   :  { %v3130_v33 = vadd.f32 %v12197_v2, %v3091_v21  ;;  %v2501_v37 = vadd.f32 %v9522_v52, %v9410_v17  ;;  %v13526_v52 = vld [vmem:[#allocation28_spill] sm:$0xff]  ;;  %v13527_v21 = vld [vmem:[#allocation29_spill] sm:$0xff] }
 0x2d2   :  { %v3223_v15 = vsel %vm3159_vm11, %v3127_v51, %v3191_v8  ;;  %v3132_v29 = vadd.f32 %v12197_v2, %v3093_v3  ;;  %v9524_v30 = vpop.f32.mrf.mxu0  ;;  %v3039_v56 = vpop.f32.mrf.mxu1  ;;  %9289 = vst [vmem:[#allocation3 + $0x78] sm:$0xff] %v9257_v44   ;;  %v9422_v36 = vadd.f32 %v13527_v21, %v13526_v52  ;;  %v10969_v8 = vld [vmem:[#allocation3 + $0x50] sm:$0xff]  }
 0x2d3   :  { %v9252_v42 = vpack.c.bf16 %v3223_v15, %v3222_v24  ;;  %v3094_v23 = vadd.f32 %v10343_v62, %v2501_v37  ;;  %v3194_v9 = vmul.f32 0.2, %v3130_v33  ;;  %v9525_v14 = vadd.f32 %v9524_v30, %v9523_v46  ;;  %v10970_v44 = vld [vmem:[#allocation3 + $0x50] sm:$0xff]  }
 0x2d4   :  { %v3092_v48 = vadd.f32 %v3039_v56, %v2493_v39  ;;  %v9526_v25 = vpop.f32.mrf.mxu0  ;;  %v10346_v10 = vpop.f32.mrf.mxu1  ;;  %v3196_v60 = vmul.f32 0.2, %v3132_v29  ;;  %vm3164_vm12 = vcmp.gt.f32.partialorder %v3132_v29, 0.0  ;;  %vm3162_vm13 = vcmp.gt.f32.partialorder %v3130_v33, 0.0  ;;  %v10971_v39 = vld [vmem:[#allocation3 + $0x48] sm:$0xff]  }
 0x2d5   :  { %9288 = vst [vmem:[#allocation3 + $0x70] sm:$0xff] %v9252_v42   ;;  %v3133_v16 = vadd.f32 %v12197_v2, %v3094_v23  ;;  %v2506_v4 = vadd.f32 %v9525_v14, %v13524_v0  ;;  %4162 = vmatmul.mubr.bf16.gmra.mxu0 %v10961_v13  ;;  %v3226_v47 = vsel %vm3162_vm13, %v3130_v33, %v3194_v9  ;;  %v10972_v56 = vld [vmem:[#allocation3 + $0x48] sm:$0xff]   ;;  %v10973_v13 = vld [vmem:[#allocation3 + $0x58] sm:$0xff]  }
 0x2d6   :  { %v3131_v26 = vadd.f32 %v12197_v2, %v3092_v48  ;;  %v9527_v41 = vpop.f32.mrf.mxu0  ;;  %v3052_v7 = vpop.f32.mrf.mxu1  ;;  %4435 = vmatmul.mubr.bf16.gmra.mxu1 %v10962_v45  ;;  %4169 = vmatprep.mubr.bf16.mxu0 %v10963_v34  ;;  %v3228_v12 = vsel %vm3164_vm12, %v3132_v29, %v3196_v60  ;;  %v10974_v14 = vld [vmem:[#allocation3 + $0x58] sm:$0xff]  }
 0x2d7   :  { %vm3165_vm14 = vcmp.gt.f32.partialorder %v3133_v16, 0.0  ;;  %v3197_v63 = vmul.f32 0.2, %v3133_v16  ;;  %v9528_v1 = vadd.f32 %v9527_v41, %v9526_v25  ;;  %v3095_v40 = vadd.f32 %v3052_v7, %v2506_v4  ;;  %4442 = vmatprep.mubr.bf16.mxu1 %v10964_v31  ;;  %v10981_v7 = vld [vmem:[#allocation3 + $0x58] sm:$0xff]  }
 0x2d8   :  { %vm3163_vm15 = vcmp.gt.f32.partialorder %v3131_v26, 0.0  ;;  %v3195_v22 = vmul.f32 0.2, %v3131_v26  ;;  %v9529_v61 = vpop.f32.mrf.mxu0  ;;  %v10347_v20 = vpop.f32.mrf.mxu1 }
 0x2d9   :  { %v3229_v58 = vsel %vm3165_vm14, %v3133_v16, %v3197_v63  ;;  %v2509_v59 = vadd.f32 %v9528_v1, %v9416_v55  ;;  %v3134_v17 = vadd.f32 %v12197_v2, %v3095_v40  ;;  %v10976_v16 = vld [vmem:[#allocation3 + $0x50] sm:$0xff]   ;;  %v10982_v63 = vld [vmem:[#allocation3 + $0x58] sm:$0xff]   ;;  %v10983_v1 = vld [vmem:[#allocation3 + $0x68] sm:$0xff]  }
 0x2da   :  { %v9267_v28 = vpack.c.bf16 %v3229_v58, %v3228_v12  ;;  %v3227_v6 = vsel %vm3163_vm15, %v3131_v26, %v3195_v22  ;;  %v9530_v27 = vpop.f32.mrf.mxu0  ;;  %v3055_v11 = vpop.f32.mrf.mxu1  ;;  %v10980_v26 = vld [vmem:[#allocation3 + $0x60] sm:$0xff]  }
 0x2db   :  { %v9262_v57 = vpack.c.bf16 %v3227_v6, %v3226_v47  ;;  %v9531_v18 = vadd.f32 %v9530_v27, %v9529_v61  ;;  %v3096_v5 = vadd.f32 %v3055_v11, %v2509_v59  ;;  %v3198_v38 = vmul.f32 0.2, %v3134_v17  ;;  %v10984_v61 = vld [vmem:[#allocation3 + $0x68] sm:$0xff]   ;;  %v10986_v27 = vld [vmem:[#allocation3 + $0x60] sm:$0xff]  }
 0x2dc   :  { %9291 = vst [vmem:[#allocation3 + $0x88] sm:$0xff] %v9267_v28   ;;  %v9532_v51 = vpop.f32.mrf.mxu0  ;;  %vm3166_vm0 = vcmp.gt.f32.partialorder %v3134_v17, 0.0  ;;  %v9687_v48 = vpop.f32.mrf.mxu1  ;;  %v11005_v52 = vld [vmem:[#allocation3 + $0x70] sm:$0xff]  }
 0x2dd   :  { %9290 = vst [vmem:[#allocation3 + $0x80] sm:$0xff] %v9262_v57   ;;  %v2514_v19 = vadd.f32 %v9531_v18, %v13525_v50  ;;  %v3135_v35 = vadd.f32 %v12197_v2, %v3096_v5  ;;  %4170 = vmatmul.mubr.bf16.gmra.mxu0 %v10966_v53  ;;  %v3230_v33 = vsel %vm3166_vm0, %v3134_v17, %v3198_v38  ;;  %v10987_v57 = vld [vmem:[#allocation3 + $0x60] sm:$0xff]   ;;  %v10990_v5 = vld [vmem:[#allocation3 + $0x70] sm:$0xff]   ;;  %v10996_v38 = vld [vmem:[#allocation3 + $0x68] sm:$0xff]  }
 0x2de   :  { %v9533_v32 = vpop.f32.mrf.mxu0  ;;  %4443 = vmatmul.mubr.bf16.gmra.mxu1 %v10967_v54  ;;  %4177 = vmatprep.mubr.bf16.mxu0 %v10969_v8  ;;  %v9688_v34 = vpop.f32.mrf.mxu1  ;;  %v10995_v54 = vld [vmem:[#allocation3 + $0x68] sm:$0xff]   ;;  %v10998_v50 = vld [vmem:[#allocation3 + $0x78] sm:$0xff]  }
 0x2df   :  { %v3097_v3 = vadd.f32 %v10346_v10, %v2514_v19  ;;  %vm3167_vm2 = vcmp.gt.f32.partialorder %v3135_v35, 0.0  ;;  %v3199_v46 = vmul.f32 0.2, %v3135_v35  ;;  %v9534_v62 = vadd.f32 %v9533_v32, %v9532_v51  ;;  %4450 = vmatprep.mubr.bf16.mxu1 %v10970_v44  ;;  %v10991_v51 = vld [vmem:[#allocation3 + $0x70] sm:$0xff]   ;;  %v10999_v19 = vld [vmem:[#allocation3 + $0x78] sm:$0xff]  }
 0x2e0   :  { %v9689_v60 = vadd.f32 %v9688_v34, %v9687_v48  ;;  %v9690_v43 = vpop.f32.mrf.mxu1  ;;  %v9575_v22 = vpop.f32.mrf.mxu0  ;;  %v11013_v32 = vld [vmem:[#allocation3 + $0x78] sm:$0xff]   ;;  %v11024_v44 = vld [vmem:[#allocation3 + $0x30] sm:$0xff]   ;;  %v11051_v48 = vld [vmem:[%s13468_s5 + $0x268] sm:$0xff]  }
 0x2e1   :  { %v3136_v37 = vadd.f32 %v12197_v2, %v3097_v3  ;;  %v3231_v24 = vsel %vm3167_vm2, %v3135_v35, %v3199_v46  ;;  %v2517_v15 = vadd.f32 %v9534_v62, %v9422_v36  ;;  %v11004_v35 = vld [vmem:[#allocation3 + $0x70] sm:$0xff]   ;;  %v11014_v8 = vld [vmem:[#allocation3 + $0x78] sm:$0xff]   ;;  %v11054_v34 = vld [vmem:[%s13468_s5 + $0x228] sm:$0xff]  }
 0x2e2   :  { %v9272_v29 = vpack.c.bf16 %v3231_v24, %v3230_v33  ;;  %v9691_v55 = vpop.f32.mrf.mxu1  ;;  %v11018_v46 = vld [vmem:[#allocation3 + $0x38] sm:$0xff]  }
 0x2e3   :  { %v3098_v30 = vadd.f32 %v10347_v20, %v2517_v15  ;;  %v3200_v42 = vmul.f32 0.2, %v3136_v37  ;;  %vm3168_vm3 = vcmp.gt.f32.partialorder %v3136_v37, 0.0  ;;  %v9576_v20 = vpop.f32.mrf.mxu0  ;;  %v9692_v28 = vadd.f32 %v9691_v55, %v9690_v43  ;;  %v11016_v3 = vld [vmem:[#allocation3 + $0x88] sm:$0xff]   ;;  %v11028_v15 = vld [vmem:[#allocation3 + $0x38] sm:$0xff]   ;;  %v11043_v55 = vld [vmem:[#allocation3 + $0x50] sm:$0xff]  }
 0x2e4   :  { %9292 = vst [vmem:[#allocation3 + $0x90] sm:$0xff] %v9272_v29   ;;  %v9693_v41 = vpop.f32.mrf.mxu1  ;;  %v9577_v58 = vadd.f32 %v9576_v20, %v9575_v22  ;;  %v11008_v21 = vld [vmem:[#allocation3 + $0x80] sm:$0xff]   ;;  %v11027_v24 = vld [vmem:[#allocation3 + $0x88] sm:$0xff]   ;;  %v11064_v43 = vld [vmem:[%s13468_s5 + $0x220] sm:$0xff]  }
 0x2e5   :  { %v3137_v23 = vadd.f32 %v12197_v2, %v3098_v30  ;;  %4178 = vmatmul.mubr.bf16.gmra.mxu0 %v10971_v39  ;;  %v3232_v25 = vsel %vm3168_vm3, %v3136_v37, %v3200_v42  ;;  %v10979_v2 = vld [vmem:[#allocation3 + $0x60] sm:$0xff]   ;;  %v9578_v59 = vpop.f32.mrf.mxu0  ;;  %v11029_v29 = vld [vmem:[#allocation3 + $0x28] sm:$0xff]   ;;  %v11034_v39 = vld [vmem:[%s13468_s5 + $0x238] sm:$0xff]  }
 0x2e6   :  { %4451 = vmatmul.mubr.bf16.gmra.mxu1 %v10972_v56  ;;  %4185 = vmatprep.mubr.bf16.mxu0 %v10973_v13  ;;  %v9694_v0 = vpop.f32.mrf.mxu1  ;;  %v12367_v6 = vadd.f32 %v9689_v60, %v9577_v58  ;;  %v11009_v36 = vld [vmem:[#allocation3 + $0x80] sm:$0xff]   ;;  %v11030_v30 = vld [vmem:[#allocation3 + $0x48] sm:$0xff]   ;;  %v11061_v60 = vld [vmem:[%s13468_s5 + $0x260] sm:$0xff]  }
 0x2e7   :  { %vm3169_vm1 = vcmp.gt.f32.partialorder %v3137_v23, 0.0  ;;  %v3201_v9 = vmul.f32 0.2, %v3137_v23  ;;  %4458 = vmatprep.mubr.bf16.mxu1 %v10974_v14  ;;  %v12361_v4 = vadd.f32 %v9694_v0, %v9693_v41  ;;  %v9579_v11 = vpop.f32.mrf.mxu0  ;;  %v11022_v62 = vld [vmem:[#allocation3 + $0x80] sm:$0xff]   ;;  %v11041_v13 = vld [vmem:[%s13468_s5 + $0x270] sm:$0xff]   ;;  %v11074_v41 = vld [vmem:[%s13468_s5 + $0x218] sm:$0xff]  }
 0x2e8   :  { %v12363_v31 = vpop.f32.mrf.mxu1  ;;  %v9580_v18 = vadd.f32 %v9579_v11, %v9578_v59  ;;  %v11026_v37 = vld [vmem:[#allocation3 + $0x40] sm:$0xff]   ;;  %v11044_v14 = vld [vmem:[%s13468_s5 + $0x230] sm:$0xff]   ;;  %v11047_v22 = vld [vmem:[#allocation3 + $0x38] sm:$0xff]  }
 0x2e9   :  { %v3233_v10 = vsel %vm3169_vm1, %v3137_v23, %v3201_v9  ;;  %v11032_v56 = vld [vmem:[#allocation3 + $0x20] sm:$0xff]   ;;  %v11035_v23 = vld [vmem:[#allocation3 + $0x30] sm:$0xff]   ;;  %v11081_v0 = vld [vmem:[%s13468_s5 + $0x250] sm:$0xff]  }
 0x2ea   :  { %v9277_v45 = vpack.c.bf16 %v3233_v10, %v3232_v25  ;;  %v12365_v40 = vpop.f32.mrf.mxu1  ;;  %v12371_v53 = vadd.f32 %v9692_v28, %v9580_v18  ;;  %v11033_v42 = vld [vmem:[#allocation3 + $0x40] sm:$0xff]   ;;  %v11036_v9 = vld [vmem:[#allocation3 + $0x50] sm:$0xff]   ;;  %v11037_v25 = vld [vmem:[#allocation3 + $0x28] sm:$0xff]  }
 0x2eb   :  { %v11025_v33 = vld [vmem:[#allocation3 + $0x90] sm:$0xff]   ;;  %v11038_v10 = vld [vmem:[#allocation3 + $0x48] sm:$0xff]   ;;  %v11092_v20 = vld [vmem:[%s13468_s5 + $0x208] sm:$0xff]  }
 0x2ec   :  { %9293 = vst [vmem:[#allocation3 + $0x98] sm:$0xff] %v9277_v45   ;;  %v9699_v12 = vpop.f32.mrf.mxu1  ;;  %v11039_v45 = vld [vmem:[#allocation3 + $0x38] sm:$0xff]   ;;  %v11050_v59 = vld [vmem:[#allocation3 + $0x68] sm:$0xff]   ;;  %v11052_v28 = vld [vmem:[#allocation3 + $0x40] sm:$0xff]  }
 0x2ed   :  { %4186 = vmatmul.mubr.bf16.gmra.mxu0 %v10976_v16  ;;  %v11040_v16 = vld [vmem:[#allocation3 + $0x58] sm:$0xff]   ;;  %v11055_v11 = vld [vmem:[#allocation3 + $0x50] sm:$0xff]   ;;  %v11057_v18 = vld [vmem:[#allocation3 + $0x48] sm:$0xff]  }
 0x2ee   :  { %4459 = vmatmul.mubr.bf16.gmra.mxu1 %v10977_v49  ;;  %4193 = vmatprep.mubr.bf16.mxu0 %v10979_v2  ;;  %v9700_v47 = vpop.f32.mrf.mxu1  ;;  %v11071_v49 = vld [vmem:[%s13468_s5 + $0x258] sm:$0xff]   ;;  %v11096_v58 = vld [vmem:[%s13468_s5 + $0x240] sm:$0xff]  }
 0x2ef   :  { %4466 = vmatprep.mubr.bf16.mxu1 %v10980_v26  ;;  %v12369_v17 = vadd.f32 %v9700_v47, %v9699_v12  ;;  %v11042_v2 = vld [vmem:[#allocation3 + $0x30] sm:$0xff]   ;;  %v11045_v26 = vld [vmem:[#allocation3 + $0x40] sm:$0xff]   ;;  %v11049_v12 = vld [vmem:[#allocation3 + $0x48] sm:$0xff]  }
 0x2f0   :  { %v11098_v47 = vld [vmem:[%s13468_s5 + $0x200] sm:$0xff]  }
 0x2f5   :  { %4194 = vmatmul.mubr.bf16.gmra.mxu0 %v10981_v7  ;;  %v11046_v7 = vld [vmem:[#allocation3 + $0x60] sm:$0xff]  }
 0x2f6   :  { %4467 = vmatmul.mubr.bf16.gmra.mxu1 %v10982_v63  ;;  %4201 = vmatprep.mubr.bf16.mxu0 %v10983_v1  ;;  %v11084_v63 = vld [vmem:[%s13468_s5 + $0x210] sm:$0xff]   ;;  %v11090_v1 = vld [vmem:[%s13468_s5 + $0x248] sm:$0xff]  }
 0x2f7   :  { %4474 = vmatprep.mubr.bf16.mxu1 %v10984_v61  ;;  %v11048_v61 = vld [vmem:[#allocation3 + $0x58] sm:$0xff]  }
 0x2fd   :  { %4202 = vmatmul.mubr.bf16.gmra.mxu0 %v10986_v27  ;;  %v11053_v27 = vld [vmem:[#allocation3 + $0x60] sm:$0xff]  }
 0x2fe   :  { %4475 = vmatmul.mubr.bf16.gmra.mxu1 %v10987_v57  ;;  %4209 = vmatprep.mubr.bf16.mxu0 %v10990_v5  ;;  %v11056_v57 = vld [vmem:[#allocation3 + $0x70] sm:$0xff]   ;;  %v11058_v5 = vld [vmem:[#allocation3 + $0x68] sm:$0xff]  }
 0x2ff   :  { %4482 = vmatprep.mubr.bf16.mxu1 %v10991_v51  ;;  %v11059_v51 = vld [vmem:[#allocation3 + $0x58] sm:$0xff]  }
 0x305   :  { %4210 = vmatmul.mubr.bf16.gmra.mxu0 %v10995_v54  ;;  %v11060_v54 = vld [vmem:[#allocation3 + $0x78] sm:$0xff]  }
 0x306   :  { %4483 = vmatmul.mubr.bf16.gmra.mxu1 %v10996_v38  ;;  %4217 = vmatprep.mubr.bf16.mxu0 %v10998_v50  ;;  %v11062_v38 = vld [vmem:[#allocation3 + $0x50] sm:$0xff]  }
 0x307   :  { %4490 = vmatprep.mubr.bf16.mxu1 %v10999_v19  ;;  %v11063_v50 = vld [vmem:[#allocation3 + $0x70] sm:$0xff]   ;;  %v11065_v19 = vld [vmem:[#allocation3 + $0x60] sm:$0xff]  }
 0x30d   :  { %4218 = vmatmul.mubr.bf16.gmra.mxu0 %v11004_v35  ;;  %v11066_v35 = vld [vmem:[#allocation3 + $0x80] sm:$0xff]  }
 0x30e   :  { %4491 = vmatmul.mubr.bf16.gmra.mxu1 %v11005_v52  ;;  %4225 = vmatprep.mubr.bf16.mxu0 %v11008_v21  ;;  %v11067_v52 = vld [vmem:[#allocation3 + $0x58] sm:$0xff]  }
 0x30f   :  { %4498 = vmatprep.mubr.bf16.mxu1 %v11009_v36  ;;  %v11068_v21 = vld [vmem:[#allocation3 + $0x78] sm:$0xff]   ;;  %v11069_v36 = vld [vmem:[#allocation3 + $0x68] sm:$0xff]  }
 0x315   :  { %4226 = vmatmul.mubr.bf16.gmra.mxu0 %v11013_v32  ;;  %v11070_v32 = vld [vmem:[#allocation3 + $0x88] sm:$0xff]  }
 0x316   :  { %4499 = vmatmul.mubr.bf16.gmra.mxu1 %v11014_v8  ;;  %4233 = vmatprep.mubr.bf16.mxu0 %v11016_v3  ;;  %v11072_v8 = vld [vmem:[#allocation3 + $0x60] sm:$0xff]  }
 0x317   :  { %5503 = vmatprep.mubr.bf16.mxu1 %v11018_v46  ;;  %v11073_v3 = vld [vmem:[#allocation3 + $0x80] sm:$0xff]   ;;  %v11075_v46 = vld [vmem:[#allocation3 + $0x70] sm:$0xff]  }
 0x31d   :  { %4234 = vmatmul.mubr.bf16.gmra.mxu0 %v11022_v62  ;;  %v11076_v62 = vld [vmem:[#allocation3 + $0x90] sm:$0xff]  }
 0x31e   :  { %5504 = vmatmul.mubr.bf16.vlgmr.msra.gmra.mxu1 %v11024_v44  ;;  %4241 = vmatprep.mubr.bf16.mxu0 %v11025_v33  ;;  %v9702_v44 = vpop.f32.mrf.mxu1 }
 0x31f   :  { %5511 = vmatprep.mubr.bf16.mxu1 %v11026_v37  ;;  %v11077_v37 = vld [vmem:[#allocation3 + $0x68] sm:$0xff]  }
 0x320   :  { %v9703_v33 = vpop.f32.mrf.mxu1 }
 0x325   :  { %4242 = vmatmul.mubr.bf16.gmra.mxu0 %v11027_v24  ;;  %v11078_v24 = vld [vmem:[#allocation3 + $0x88] sm:$0xff]  }
 0x326   :  { %5512 = vmatmul.mubr.bf16.gmra.mxu1 %v11028_v15  ;;  %4924 = vmatprep.mubr.bf16.mxu0 %v11029_v29  ;;  %v11079_v15 = vld [vmem:[#allocation3 + $0x78] sm:$0xff]  }
 0x327   :  { %5519 = vmatprep.mubr.bf16.mxu1 %v11030_v30  ;;  %v11080_v30 = vld [vmem:[#allocation3 + $0x98] sm:$0xff]  }
 0x32d   :  { %4925 = vmatmul.mubr.bf16.vlgmr.msra.gmra.mxu0 %v11032_v56 }
 0x32e   :  { %5520 = vmatmul.mubr.bf16.gmra.mxu1 %v11033_v42  ;;  %10008 = vmatpush3.bf16.msra.mxu0 %v11034_v39 }
 0x32f   :  { %4932 = vmatprep.mubr.bf16.mxu0 %v11035_v23  ;;  %5527 = vmatprep.mubr.bf16.mxu1 %v11036_v9 }
 0x330   :  { %10009 = vmatprep.subr.bf16.mxu0 %v11041_v13 }
 0x332   :  { %10010 = vmatpush3.bf16.msra.mxu0 %v11044_v14  ;;  %v9698_v14 = vadd.f32 %v12365_v40, %v12363_v31 }
 0x333   :  { %10011 = vmatprep.subr.bf16.mxu0 %v11051_v48 }
 0x335   :  { %4933 = vmatmul.mubr.bf16.gmra.mxu0 %v11037_v25 }
 0x336   :  { %5528 = vmatmul.mubr.bf16.gmra.mxu1 %v11038_v10  ;;  %4940 = vmatprep.mubr.bf16.mxu0 %v11039_v45  ;;  %v11082_v45 = vld [vmem:[#allocation3 + $0x70] sm:$0xff]  }
 0x337   :  { %5535 = vmatprep.mubr.bf16.mxu1 %v11040_v16  ;;  %10012 = vmatpush3.bf16.msra.mxu0 %v11054_v34  ;;  %v11086_v34 = vld [vmem:[#allocation3 + $0xa0] sm:$0xff]  }
 0x338   :  { %10013 = vmatprep.subr.bf16.mxu0 %v11061_v60 }
 0x33b   :  { %10014 = vmatpush3.bf16.msra.mxu0 %v11064_v43  ;;  %v11083_v43 = vld [vmem:[#allocation3 + $0x90] sm:$0xff]  }
 0x33c   :  { %10015 = vmatprep.subr.bf16.mxu0 %v11071_v49  ;;  %v11085_v49 = vld [vmem:[#allocation3 + $0x80] sm:$0xff]  }
 0x33d   :  { %4941 = vmatmul.mubr.bf16.gmra.mxu0 %v11042_v2 }
 0x33e   :  { %5536 = vmatmul.mubr.bf16.gmra.mxu1 %v11043_v55  ;;  %4948 = vmatprep.mubr.bf16.mxu0 %v11045_v26 }
 0x33f   :  { %5543 = vmatprep.mubr.bf16.mxu1 %v11046_v7  ;;  %10016 = vmatpush3.bf16.msra.mxu0 %v11074_v41 }
 0x340   :  { %10017 = vmatprep.subr.bf16.mxu0 %v11081_v0 }
 0x343   :  { %10018 = vmatpush3.bf16.msra.mxu0 %v11084_v63  ;;  %v9704_v63 = vadd.f32 %v9703_v33, %v9702_v44 }
 0x344   :  { %10019 = vmatprep.subr.bf16.mxu0 %v11090_v1 }
 0x345   :  { %4949 = vmatmul.mubr.bf16.gmra.mxu0 %v11047_v22 }
 0x346   :  { %5544 = vmatmul.mubr.bf16.gmra.mxu1 %v11048_v61  ;;  %4956 = vmatprep.mubr.bf16.mxu0 %v11049_v12  ;;  %v11099_v12 = vld [vmem:[#allocation3 + $0xa8] sm:$0xff]  }
 0x347   :  { %5551 = vmatprep.mubr.bf16.mxu1 %v11050_v59  ;;  %10020 = vmatpush3.bf16.msra.mxu0 %v11092_v20  ;;  %v11087_v20 = vld [vmem:[#allocation3 + $0x78] sm:$0xff]  }
 0x348   :  { %10021 = vmatprep.subr.bf16.mxu0 %v11096_v58 }
 0x34b   :  { %10022 = vmatpush3.bf16.msra.mxu0 %v11098_v47  ;;  %v11088_v47 = vld [vmem:[#allocation3 + $0x98] sm:$0xff]  }
 0x34d   :  { %4957 = vmatmul.mubr.bf16.gmra.mxu0 %v11052_v28  ;;  %v11089_v28 = vld [vmem:[#allocation3 + $0x88] sm:$0xff]  }
 0x34e   :  { %5552 = vmatmul.mubr.bf16.gmra.mxu1 %v11053_v27  ;;  %4964 = vmatprep.mubr.bf16.mxu0 %v11055_v11 }
 0x34f   :  { %5559 = vmatprep.mubr.bf16.mxu1 %v11056_v57 }
 0x355   :  { %4965 = vmatmul.mubr.bf16.gmra.mxu0 %v11057_v18 }
 0x356   :  { %5560 = vmatmul.mubr.bf16.gmra.mxu1 %v11058_v5  ;;  %4972 = vmatprep.mubr.bf16.mxu0 %v11059_v51  ;;  %v13476_v5 = vmov 0.0  }
 0x357   :  { %5567 = vmatprep.mubr.bf16.mxu1 %v11060_v54  ;;  %10348 = vmatprep.subr.bf16.mxu1 %v13476_v5 }
 0x358   :  { %10428 = vmatprep.subr.bf16.mxu0 %v13476_v5 }
 0x35d   :  { %4973 = vmatmul.mubr.bf16.gmra.mxu0 %v11062_v38 }
 0x35e   :  { %5568 = vmatmul.mubr.bf16.gmra.mxu1 %v11063_v50  ;;  %4980 = vmatprep.mubr.bf16.mxu0 %v11065_v19  ;;  %v11091_v50 = vld [vmem:[#allocation3 + $0x80] sm:$0xff]  }
 0x35f   :  { %5575 = vmatprep.mubr.bf16.mxu1 %v11066_v35 }
 0x365   :  { %4981 = vmatmul.mubr.bf16.gmra.mxu0 %v11067_v52  ;;  %v11093_v52 = vld [vmem:[#allocation3 + $0x90] sm:$0xff]  }
 0x366   :  { %5576 = vmatmul.mubr.bf16.gmra.mxu1 %v11068_v21  ;;  %4988 = vmatprep.mubr.bf16.mxu0 %v11069_v36  ;;  %v11100_v21 = vld [vmem:[#allocation3 + $0xa0] sm:$0xff]   ;;  %v11103_v36 = vld [vmem:[#allocation3 + $0xb0] sm:$0xff]  }
 0x367   :  { %5583 = vmatprep.mubr.bf16.mxu1 %v11070_v32 }
 0x36d   :  { %4989 = vmatmul.mubr.bf16.gmra.mxu0 %v11072_v8  ;;  %v11129_v8 = vld [vmem:[%s13470_s7 + $0x78] sm:$0xff]  }
 0x36e   :  { %5584 = vmatmul.mubr.bf16.gmra.mxu1 %v11073_v3  ;;  %4996 = vmatprep.mubr.bf16.mxu0 %v11075_v46 }
 0x36f   :  { %5591 = vmatprep.mubr.bf16.mxu1 %v11076_v62  ;;  %10349 = vmatpush3.bf16.msra.mxu1 %v11129_v8 }
 0x370   :  { %10350 = vmatprep.subr.bf16.mxu1 %v13476_v5 }
 0x375   :  { %v9581_v29 = vpop.f32.mrf.mxu0  ;;  %4997 = vmatmul.mubr.bf16.gmra.mxu0 %v11077_v37 }
 0x376   :  { %v9705_v39 = vpop.f32.mrf.mxu1  ;;  %5592 = vmatmul.mubr.bf16.gmra.mxu1 %v11078_v24  ;;  %5004 = vmatprep.mubr.bf16.mxu0 %v11079_v15 }
 0x377   :  { %5599 = vmatprep.mubr.bf16.mxu1 %v11080_v30  ;;  %v9582_v56 = vpop.f32.mrf.mxu0 }
 0x378   :  { %v9583_v42 = vadd.f32 %v9582_v56, %v9581_v29  ;;  %v9706_v23 = vpop.f32.mrf.mxu1  ;;  %v11105_v29 = vld [vmem:[#allocation3 + $0xa8] sm:$0xff]  }
 0x379   :  { %v9707_v13 = vadd.f32 %v9706_v23, %v9705_v39  ;;  %v9584_v9 = vpop.f32.mrf.mxu0  ;;  %v11094_v56 = vld [vmem:[#allocation3 + $0x88] sm:$0xff]  }
 0x37a   :  { %v12421_v48 = vadd.f32 %v12361_v4, %v9583_v42  ;;  %v9708_v25 = vpop.f32.mrf.mxu1 }
 0x37b   :  { %v9585_v10 = vpop.f32.mrf.mxu0 }
 0x37c   :  { %v9586_v60 = vadd.f32 %v9585_v10, %v9584_v9  ;;  %v9709_v16 = vpop.f32.mrf.mxu1 }
 0x37d   :  { %v9710_v2 = vadd.f32 %v9709_v16, %v9708_v25  ;;  %v9587_v55 = vpop.f32.mrf.mxu0  ;;  %5005 = vmatmul.mubr.bf16.gmra.mxu0 %v11082_v45 }
 0x37e   :  { %v12423_v26 = vadd.f32 %v9698_v14, %v9586_v60  ;;  %v9711_v41 = vpop.f32.mrf.mxu1  ;;  %5600 = vmatmul.mubr.bf16.gmra.mxu1 %v11083_v43  ;;  %5012 = vmatprep.mubr.bf16.mxu0 %v11085_v49 }
 0x37f   :  { %v9588_v31 = vpop.f32.mrf.mxu0  ;;  %5607 = vmatprep.mubr.bf16.mxu1 %v11086_v34 }
 0x380   :  { %v9589_v4 = vadd.f32 %v9588_v31, %v9587_v55  ;;  %v9712_v40 = vpop.f32.mrf.mxu1  ;;  %v11097_v31 = vld [vmem:[#allocation3 + $0x90] sm:$0xff]  }
 0x381   :  { %v9713_v0 = vadd.f32 %v9712_v40, %v9711_v41  ;;  %v9590_v7 = vpop.f32.mrf.mxu0 }
 0x382   :  { %v12426_v1 = vadd.f32 %v12369_v17, %v9589_v4  ;;  %v9714_v22 = vpop.f32.mrf.mxu1 }
 0x383   :  { %v9591_v61 = vpop.f32.mrf.mxu0 }
 0x384   :  { %v9592_v58 = vadd.f32 %v9591_v61, %v9590_v7  ;;  %v9715_v59 = vpop.f32.mrf.mxu1 }
 0x385   :  { %v9593_v27 = vpop.f32.mrf.mxu0  ;;  %5013 = vmatmul.mubr.bf16.gmra.mxu0 %v11087_v20  ;;  %v9716_v14 = vadd.f32 %v9715_v59, %v9714_v22 }
 0x386   :  { %v12428_v11 = vadd.f32 %v9704_v63, %v9592_v58  ;;  %v9717_v57 = vpop.f32.mrf.mxu1  ;;  %5608 = vmatmul.mubr.bf16.gmra.mxu1 %v11088_v47  ;;  %5020 = vmatprep.mubr.bf16.mxu0 %v11089_v28 }
 0x387   :  { %v9594_v18 = vpop.f32.mrf.mxu0  ;;  %5615 = vmatprep.mubr.bf16.mxu1 %v11099_v12 }
 0x388   :  { %v9595_v17 = vadd.f32 %v9594_v18, %v9593_v27  ;;  %v9718_v51 = vpop.f32.mrf.mxu1  ;;  %v11102_v18 = vld [vmem:[#allocation3 + $0x98] sm:$0xff]  }
 0x389   :  { %v9719_v54 = vadd.f32 %v9718_v51, %v9717_v57  ;;  %v9596_v38 = vpop.f32.mrf.mxu0 }
 0x38a   :  { %v12432_v19 = vadd.f32 %v9707_v13, %v9595_v17  ;;  %v9720_v35 = vpop.f32.mrf.mxu1  ;;  %v11095_v13 = vld [vmem:[#allocation3 + $0x98] sm:$0xff]  }
 0x38b   :  { %v9597_v32 = vpop.f32.mrf.mxu0 }
 0x38c   :  { %v9598_v3 = vadd.f32 %v9597_v32, %v9596_v38  ;;  %v9721_v46 = vpop.f32.mrf.mxu1 }
 0x38d   :  { %v9599_v62 = vpop.f32.mrf.mxu0  ;;  %5021 = vmatmul.mubr.bf16.gmra.mxu0 %v11091_v50  ;;  %v9722_v63 = vadd.f32 %v9721_v46, %v9720_v35 }
 0x38e   :  { %v12437_v44 = vadd.f32 %v9710_v2, %v9598_v3  ;;  %v9723_v33 = vpop.f32.mrf.mxu1  ;;  %5028 = vmatprep.mubr.bf16.mxu0 %v11093_v52  ;;  %5616 = vmatmul.mubr.bf16.gmra.mxu1 %v11100_v21  ;;  %v11101_v2 = vld [vmem:[#allocation3 + $0xa0] sm:$0xff]  }
 0x38f   :  { %v9600_v37 = vpop.f32.mrf.mxu0  ;;  %5623 = vmatprep.mubr.bf16.mxu1 %v11103_v36 }
 0x390   :  { %v9601_v24 = vadd.f32 %v9600_v37, %v9599_v62  ;;  %v9724_v15 = vpop.f32.mrf.mxu1  ;;  %v11106_v37 = vld [vmem:[#allocation3 + $0x40] sm:$0xff]  }
 0x391   :  { %v9725_v30 = vadd.f32 %v9724_v15, %v9723_v33  ;;  %v9602_v39 = vpop.f32.mrf.mxu0 }
 0x392   :  { %v12440_v42 = vadd.f32 %v9713_v0, %v9601_v24  ;;  %v9726_v23 = vpop.f32.mrf.mxu1  ;;  %v11134_v0 = vld [vmem:[%s13470_s7 + $0x70] sm:$0xff]  }
 0x393   :  { %v9603_v9 = vpop.f32.mrf.mxu0  ;;  %10351 = vmatpush3.bf16.msra.mxu1 %v11134_v0 }
 0x394   :  { %v9604_v25 = vadd.f32 %v9603_v9, %v9602_v39  ;;  %v9727_v10 = vpop.f32.mrf.mxu1  ;;  %10352 = vmatprep.subr.bf16.mxu1 %v13476_v5 }
 0x395   :  { %v9605_v45 = vpop.f32.mrf.mxu0  ;;  %5029 = vmatmul.mubr.bf16.gmra.mxu0 %v11094_v56  ;;  %v9728_v50 = vadd.f32 %v9727_v10, %v9726_v23 }
 0x396   :  { %v12442_v34 = vadd.f32 %v9716_v14, %v9604_v25  ;;  %v9729_v60 = vpop.f32.mrf.mxu1  ;;  %5036 = vmatprep.mubr.bf16.mxu0 %v11095_v13  ;;  %5624 = vmatmul.mubr.bf16.gmra.mxu1 %v11105_v29  ;;  %v11107_v29 = vld [vmem:[#allocation3 + $0x50] sm:$0xff]  }
 0x397   :  { %v9606_v16 = vpop.f32.mrf.mxu0 }
 0x398   :  { %v9607_v43 = vadd.f32 %v9606_v16, %v9605_v45  ;;  %v9730_v49 = vpop.f32.mrf.mxu1 }
 0x399   :  { %v9731_v55 = vadd.f32 %v9730_v49, %v9729_v60  ;;  %v9608_v41 = vpop.f32.mrf.mxu0  ;;  %v11108_v49 = vld [vmem:[#allocation3 + $0x48] sm:$0xff]  }
 0x39a   :  { %v12444_v4 = vadd.f32 %v9719_v54, %v9607_v43  ;;  %v9732_v40 = vpop.f32.mrf.mxu1  ;;  %v11104_v54 = vld [vmem:[#allocation3 + $0x48] sm:$0xff]  }
 0x39b   :  { %v9609_v7 = vpop.f32.mrf.mxu0 }
 0x39c   :  { %v9610_v22 = vadd.f32 %v9609_v7, %v9608_v41  ;;  %v9733_v61 = vpop.f32.mrf.mxu1  ;;  %v11109_v41 = vld [vmem:[#allocation3 + $0x58] sm:$0xff]  }
 0x39d   :  { %v9611_v20 = vpop.f32.mrf.mxu0  ;;  %5037 = vmatmul.mubr.bf16.gmra.mxu0 %v11097_v31  ;;  %v9734_v56 = vadd.f32 %v9733_v61, %v9732_v40 }
 0x39e   :  { %v12450_v12 = vadd.f32 %v9722_v63, %v9610_v22  ;;  %v9735_v58 = vpop.f32.mrf.mxu1  ;;  %5044 = vmatprep.mubr.bf16.mxu0 %v11101_v2 }
 0x39f   :  { %v9612_v59 = vpop.f32.mrf.mxu0 }
 0x3a0   :  { %v9613_v47 = vadd.f32 %v9612_v59, %v9611_v20  ;;  %v9736_v28 = vpop.f32.mrf.mxu1 }
 0x3a1   :  { %v9737_v27 = vadd.f32 %v9736_v28, %v9735_v58  ;;  %v9614_v57 = vpop.f32.mrf.mxu0 }
 0x3a2   :  { %v12452_v17 = vadd.f32 %v9725_v30, %v9613_v47  ;;  %v9738_v51 = vpop.f32.mrf.mxu1  ;;  %v11139_v30 = vld [vmem:[%s13470_s7 + $0x68] sm:$0xff]  }
 0x3a3   :  { %v9615_v38 = vpop.f32.mrf.mxu0  ;;  %10353 = vmatpush3.bf16.msra.mxu1 %v11139_v30 }
 0x3a4   :  { %v9616_v35 = vadd.f32 %v9615_v38, %v9614_v57  ;;  %v9739_v52 = vpop.f32.mrf.mxu1  ;;  %10354 = vmatprep.subr.bf16.mxu1 %v13476_v5  ;;  %v11110_v57 = vld [vmem:[#allocation3 + $0x50] sm:$0xff]  }
 0x3a5   :  { %v9617_v21 = vpop.f32.mrf.mxu0  ;;  %5045 = vmatmul.mubr.bf16.gmra.mxu0 %v11102_v18  ;;  %v9740_v40 = vadd.f32 %v9739_v52, %v9738_v51  ;;  %v11140_v51 = vld [vmem:[%s13470_s7 + $0x60] sm:$0xff]  }
 0x3a6   :  { %v12454_v36 = vadd.f32 %v9728_v50, %v9616_v35  ;;  %v9741_v32 = vpop.f32.mrf.mxu1  ;;  %6082 = vmatprep.mubr.bf16.mxu0 %v11104_v54  ;;  %v11111_v54 = vld [vmem:[#allocation3 + $0x60] sm:$0xff]  }
 0x3a7   :  { %v9618_v8 = vpop.f32.mrf.mxu0  ;;  %10355 = vmatpush3.bf16.msra.mxu1 %v11140_v51 }
 0x3a8   :  { %v9619_v3 = vadd.f32 %v9618_v8, %v9617_v21  ;;  %v9742_v46 = vpop.f32.mrf.mxu1  ;;  %10356 = vmatprep.subr.bf16.mxu1 %v13476_v5 }
 0x3a9   :  { %v9743_v62 = vadd.f32 %v9742_v46, %v9741_v32  ;;  %v9620_v33 = vpop.f32.mrf.mxu0 }
 0x3aa   :  { %v12456_v24 = vadd.f32 %v9731_v55, %v9619_v3  ;;  %v9744_v15 = vpop.f32.mrf.mxu1 }
 0x3ab   :  { %v9621_v39 = vpop.f32.mrf.mxu0 }
 0x3ac   :  { %v9622_v23 = vadd.f32 %v9621_v39, %v9620_v33  ;;  %v9745_v13 = vpop.f32.mrf.mxu1  ;;  %v11113_v39 = vld [vmem:[#allocation3 + $0x68] sm:$0xff]  }
 0x3ad   :  { %v9623_v9 = vpop.f32.mrf.mxu0  ;;  %6083 = vmatmul.mubr.bf16.vlgmr.msra.gmra.mxu0 %v11106_v37  ;;  %v9746_v50 = vadd.f32 %v9745_v13, %v9744_v15 }
 0x3ae   :  { %v12462_v14 = vadd.f32 %v9734_v56, %v9622_v23  ;;  %v9747_v25 = vpop.f32.mrf.mxu1  ;;  %6090 = vmatprep.mubr.bf16.mxu0 %v11107_v29  ;;  %v11112_v29 = vld [vmem:[#allocation3 + $0x58] sm:$0xff]  }
 0x3af   :  { %v9624_v10 = vpop.f32.mrf.mxu0 }
 0x3b0   :  { %v9625_v45 = vadd.f32 %v9624_v10, %v9623_v9  ;;  %v9748_v60 = vpop.f32.mrf.mxu1 }
 0x3b1   :  { %v9749_v16 = vadd.f32 %v9748_v60, %v9747_v25  ;;  %v9626_v43 = vpop.f32.mrf.mxu0 }
 0x3b2   :  { %v12464_v2 = vadd.f32 %v9737_v27, %v9625_v45  ;;  %v9750_v55 = vpop.f32.mrf.mxu1 }
 0x3b3   :  { %v9627_v31 = vpop.f32.mrf.mxu0 }
 0x3b4   :  { %v9628_v0 = vadd.f32 %v9627_v31, %v9626_v43  ;;  %v9751_v7 = vpop.f32.mrf.mxu1 }
 0x3b5   :  { %v9629_v63 = vpop.f32.mrf.mxu0  ;;  %6091 = vmatmul.mubr.bf16.gmra.mxu0 %v11108_v49  ;;  %v9752_v23 = vadd.f32 %v9751_v7, %v9750_v55  ;;  %v11141_v55 = vld [vmem:[%s13470_s7 + $0x58] sm:$0xff]  }
 0x3b6   :  { %v12466_v22 = vadd.f32 %v9740_v40, %v9628_v0  ;;  %v9753_v61 = vpop.f32.mrf.mxu1  ;;  %6098 = vmatprep.mubr.bf16.mxu0 %v11109_v41  ;;  %v11114_v40 = vld [vmem:[#allocation3 + $0x60] sm:$0xff]   ;;  %10357 = vmatpush3.bf16.msra.mxu1 %v11141_v55 }
 0x3b7   :  { %v9630_v20 = vpop.f32.mrf.mxu0  ;;  %10358 = vmatprep.subr.bf16.mxu1 %v13476_v5 }
 0x3b8   :  { %v9631_v58 = vadd.f32 %v9630_v20, %v9629_v63  ;;  %v9754_v59 = vpop.f32.mrf.mxu1  ;;  %v11115_v63 = vld [vmem:[#allocation3 + $0x70] sm:$0xff]  }
 0x3b9   :  { %v9755_v47 = vadd.f32 %v9754_v59, %v9753_v61  ;;  %v9632_v28 = vpop.f32.mrf.mxu0 }
 0x3ba   :  { %v12468_v27 = vadd.f32 %v9743_v62, %v9631_v58  ;;  %v9756_v18 = vpop.f32.mrf.mxu1 }
 0x3bb   :  { %v9633_v38 = vpop.f32.mrf.mxu0 }
 0x3bc   :  { %v9634_v35 = vadd.f32 %v9633_v38, %v9632_v28  ;;  %v9757_v52 = vpop.f32.mrf.mxu1 }
 0x3bd   :  { %v9635_v21 = vpop.f32.mrf.mxu0  ;;  %6099 = vmatmul.mubr.bf16.gmra.mxu0 %v11110_v57  ;;  %v9758_v61 = vadd.f32 %v9757_v52, %v9756_v18  ;;  %v11117_v52 = vld [vmem:[#allocation3 + $0x78] sm:$0xff]  }
 0x3be   :  { %v12474_v32 = vadd.f32 %v9746_v50, %v9634_v35  ;;  %v9759_v8 = vpop.f32.mrf.mxu1  ;;  %6106 = vmatprep.mubr.bf16.mxu0 %v11111_v54  ;;  %v11116_v35 = vld [vmem:[#allocation3 + $0x68] sm:$0xff]  }
 0x3bf   :  { %v9636_v3 = vpop.f32.mrf.mxu0 }
 0x3c0   :  { %v9637_v46 = vadd.f32 %v9636_v3, %v9635_v21  ;;  %v9760_v62 = vpop.f32.mrf.mxu1 }
 0x3c1   :  { %v9761_v33 = vadd.f32 %v9760_v62, %v9759_v8  ;;  %v9638_v37 = vpop.f32.mrf.mxu0 }
 0x3c2   :  { %v12476_v30 = vadd.f32 %v9749_v16, %v9637_v46  ;;  %v9762_v15 = vpop.f32.mrf.mxu1 }
 0x3c3   :  { %v9639_v56 = vpop.f32.mrf.mxu0 }
 0x3c4   :  { %v9640_v13 = vadd.f32 %v9639_v56, %v9638_v37  ;;  %v9763_v9 = vpop.f32.mrf.mxu1 }
 0x3c5   :  { %v9641_v25 = vpop.f32.mrf.mxu0  ;;  %6107 = vmatmul.mubr.bf16.gmra.mxu0 %v11112_v29  ;;  %v9764_v3 = vadd.f32 %v9763_v9, %v9762_v15  ;;  %v11142_v15 = vld [vmem:[%s13470_s7 + $0x50] sm:$0xff]  }
 0x3c6   :  { %v12478_v10 = vadd.f32 %v9752_v23, %v9640_v13  ;;  %v9765_v45 = vpop.f32.mrf.mxu1  ;;  %6114 = vmatprep.mubr.bf16.mxu0 %v11113_v39  ;;  %10359 = vmatpush3.bf16.msra.mxu1 %v11142_v15 }
 0x3c7   :  { %v9642_v60 = vpop.f32.mrf.mxu0  ;;  %10360 = vmatprep.subr.bf16.mxu1 %v13476_v5 }
 0x3c8   :  { %v9643_v43 = vadd.f32 %v9642_v60, %v9641_v25  ;;  %v9766_v49 = vpop.f32.mrf.mxu1 }
 0x3c9   :  { %v9767_v41 = vadd.f32 %v9766_v49, %v9765_v45  ;;  %v9644_v31 = vpop.f32.mrf.mxu0 }
 0x3ca   :  { %v12480_v16 = vadd.f32 %v9755_v47, %v9643_v43  ;;  %v9768_v0 = vpop.f32.mrf.mxu1 }
 0x3cb   :  { %v9645_v7 = vpop.f32.mrf.mxu0 }
 0x3cc   :  { %v9646_v20 = vadd.f32 %v9645_v7, %v9644_v31  ;;  %v9769_v58 = vpop.f32.mrf.mxu1  ;;  %v11119_v31 = vld [vmem:[#allocation3 + $0x80] sm:$0xff]  }
 0x3cd   :  { %v9647_v59 = vpop.f32.mrf.mxu0  ;;  %6115 = vmatmul.mubr.bf16.gmra.mxu0 %v11114_v40  ;;  %v9770_v40 = vadd.f32 %v9769_v58, %v9768_v0 }
 0x3ce   :  { %v12486_v28 = vadd.f32 %v9758_v61, %v9646_v20  ;;  %v9771_v57 = vpop.f32.mrf.mxu1  ;;  %6122 = vmatprep.mubr.bf16.mxu0 %v11115_v63 }
 0x3cf   :  { %v9648_v47 = vpop.f32.mrf.mxu0 }
 0x3d0   :  { %v9649_v54 = vadd.f32 %v9648_v47, %v9647_v59  ;;  %v9772_v51 = vpop.f32.mrf.mxu1 }
 0x3d1   :  { %v9773_v38 = vadd.f32 %v9772_v51, %v9771_v57  ;;  %v9650_v50 = vpop.f32.mrf.mxu0  ;;  %v11120_v51 = vld [vmem:[#allocation3 + $0x78] sm:$0xff]  }
 0x3d2   :  { %v12488_v21 = vadd.f32 %v9761_v33, %v9649_v54  ;;  %v9774_v18 = vpop.f32.mrf.mxu1  ;;  %v11118_v33 = vld [vmem:[#allocation3 + $0x70] sm:$0xff]  }
 0x3d3   :  { %v9651_v8 = vpop.f32.mrf.mxu0 }
 0x3d4   :  { %v9652_v46 = vadd.f32 %v9651_v8, %v9650_v50  ;;  %v9775_v62 = vpop.f32.mrf.mxu1  ;;  %v11121_v50 = vld [vmem:[#allocation3 + $0x88] sm:$0xff]  }
 0x3d5   :  { %v9776_v37 = vadd.f32 %v9775_v62, %v9774_v18  ;;  %v9653_v29 = vpop.f32.mrf.mxu0  ;;  %6123 = vmatmul.mubr.bf16.gmra.mxu0 %v11116_v35 }
 0x3d6   :  { %v12490_v39 = vadd.f32 %v9764_v3, %v9652_v46  ;;  %v9777_v56 = vpop.f32.mrf.mxu1  ;;  %6130 = vmatprep.mubr.bf16.mxu0 %v11117_v52 }
 0x3d7   :  { %v9654_v23 = vpop.f32.mrf.mxu0 }
 0x3d8   :  { %v9655_v13 = vadd.f32 %v9654_v23, %v9653_v29  ;;  %v9778_v25 = vpop.f32.mrf.mxu1 }
 0x3d9   :  { %v9779_v45 = vadd.f32 %v9778_v25, %v9777_v56  ;;  %v9656_v60 = vpop.f32.mrf.mxu0  ;;  %v11143_v25 = vld [vmem:[%s13470_s7 + $0x48] sm:$0xff]  }
 0x3da   :  { %v12492_v43 = vadd.f32 %v9767_v41, %v9655_v13  ;;  %v9780_v49 = vpop.f32.mrf.mxu1  ;;  %10361 = vmatpush3.bf16.msra.mxu1 %v11143_v25 }
 0x3db   :  { %v9657_v9 = vpop.f32.mrf.mxu0  ;;  %10362 = vmatprep.subr.bf16.mxu1 %v13476_v5 }
 0x3dc   :  { %v9658_v63 = vadd.f32 %v9657_v9, %v9656_v60  ;;  %v9781_v55 = vpop.f32.mrf.mxu1 }
 0x3dd   :  { %v9782_v7 = vadd.f32 %v9781_v55, %v9780_v49  ;;  %v9659_v61 = vpop.f32.mrf.mxu0  ;;  %6131 = vmatmul.mubr.bf16.gmra.mxu0 %v11118_v33  ;;  %v11122_v33 = vld [vmem:[#allocation3 + $0x80] sm:$0xff]  }
 0x3de   :  { %v12498_v20 = vadd.f32 %v9770_v40, %v9658_v63  ;;  %v12500_v41 = vpop.f32.mrf.mxu1  ;;  %6138 = vmatprep.mubr.bf16.mxu0 %v11119_v31  ;;  %v11123_v31 = vld [vmem:[#allocation3 + $0x90] sm:$0xff]  }
 0x3df   :  { %v9660_v59 = vpop.f32.mrf.mxu0 }
 0x3e0   :  { %v9661_v57 = vadd.f32 %v9660_v59, %v9659_v61  ;;  %v12502_v47 = vpop.f32.mrf.mxu1 }
 0x3e1   :  { %v9662_v54 = vpop.f32.mrf.mxu0 }
 0x3e2   :  { %v12504_v0 = vadd.f32 %v9773_v38, %v9661_v57  ;;  %v12506_v58 = vpop.f32.mrf.mxu1 }
 0x3e3   :  { %v9663_v35 = vpop.f32.mrf.mxu0 }
 0x3e4   :  { %v9664_v18 = vadd.f32 %v9663_v35, %v9662_v54  ;;  %v12508_v52 = vpop.f32.mrf.mxu1 }
 0x3e5   :  { %v9665_v8 = vpop.f32.mrf.mxu0  ;;  %6139 = vmatmul.mubr.bf16.gmra.mxu0 %v11120_v51  ;;  %v11124_v51 = vld [vmem:[#allocation3 + $0x88] sm:$0xff]  }
 0x3e6   :  { %v12510_v3 = vadd.f32 %v9776_v37, %v9664_v18  ;;  %v12512_v46 = vpop.f32.mrf.mxu1  ;;  %6146 = vmatprep.mubr.bf16.mxu0 %v11121_v50 }
 0x3e7   :  { %v9666_v62 = vpop.f32.mrf.mxu0 }
 0x3e8   :  { %v9667_v29 = vadd.f32 %v9666_v62, %v9665_v8  ;;  %v12514_v56 = vpop.f32.mrf.mxu1 }
 0x3e9   :  { %v9668_v38 = vpop.f32.mrf.mxu0 }
 0x3ea   :  { %v12516_v23 = vadd.f32 %v9779_v45, %v9667_v29  ;;  %v12518_v13 = vpop.f32.mrf.mxu1 }
 0x3eb   :  { %v9669_v60 = vpop.f32.mrf.mxu0 }
 0x3ec   :  { %v9670_v37 = vadd.f32 %v9669_v60, %v9668_v38  ;;  %v12523_v49 = vpop.f32.mrf.mxu1 }
 0x3ed   :  { %v9799_v15 = vpop.f32.mrf.mxu0  ;;  %6147 = vmatmul.mubr.bf16.gmra.mxu0 %v11122_v33 }
 0x3ee   :  { %v12526_v9 = vadd.f32 %v9782_v7, %v9670_v37  ;;  %v12528_v45 = vpop.f32.mrf.mxu1  ;;  %6154 = vmatprep.mubr.bf16.mxu0 %v11123_v31  ;;  %v11125_v7 = vld [vmem:[#allocation3 + $0x98] sm:$0xff]   ;;  %v11127_v31 = vld [vmem:[#allocation3 + $0xa0] sm:$0xff]  }
 0x3ef   :  { %v9800_v40 = vpop.f32.mrf.mxu0 }
 0x3f0   :  { %v9801_v63 = vadd.f32 %v9800_v40, %v9799_v15  ;;  %v12530_v55 = vpop.f32.mrf.mxu1  ;;  %v11126_v40 = vld [vmem:[#allocation3 + $0x90] sm:$0xff]  }
 0x3f1   :  { %v9802_v61 = vpop.f32.mrf.mxu0 }
 0x3f2   :  { %v12533_v59 = vadd.f32 %v9801_v63, %v12367_v6  ;;  %v12535_v57 = vpop.f32.mrf.mxu1 }
 0x3f3   :  { %v9803_v54 = vpop.f32.mrf.mxu0 }
 0x3f4   :  { %v9804_v50 = vadd.f32 %v9803_v54, %v9802_v61  ;;  %v12537_v35 = vpop.f32.mrf.mxu1 }
 0x3f5   :  { %v9805_v18 = vpop.f32.mrf.mxu0  ;;  %6155 = vmatmul.mubr.bf16.gmra.mxu0 %v11124_v51 }
 0x3f6   :  { %v12540_v8 = vadd.f32 %v9804_v50, %v12371_v53  ;;  %v9929_v62 = vpop.f32.mrf.mxu1  ;;  %6162 = vmatprep.mubr.bf16.mxu0 %v11125_v7 }
 0x3f7   :  { %v9806_v29 = vpop.f32.mrf.mxu0 }
 0x3f8   :  { %v9807_v38 = vadd.f32 %v9806_v29, %v9805_v18  ;;  %v9930_v25 = vpop.f32.mrf.mxu1 }
 0x3f9   :  { %v9931_v6 = vadd.f32 %v9930_v25, %v9929_v62  ;;  %v9808_v60 = vpop.f32.mrf.mxu0 }
 0x3fa   :  { %v12543_v33 = vadd.f32 %v9807_v38, %v12421_v48  ;;  %v9932_v37 = vpop.f32.mrf.mxu1  ;;  %v11144_v48 = vld [vmem:[%s13470_s7 + $0x40] sm:$0xff]  }
 0x3fb   :  { %v9809_v15 = vpop.f32.mrf.mxu0  ;;  %10363 = vmatpush3.bf16.msra.mxu1 %v11144_v48 }
 0x3fc   :  { %v9810_v63 = vadd.f32 %v9809_v15, %v9808_v60  ;;  %v9933_v61 = vpop.f32.mrf.mxu1  ;;  %v11130_v60 = vld [vmem:[#allocation3 + $0xa8] sm:$0xff]   ;;  %10368 = vmatprep.subr.bf16.mxu1 %v13476_v5  ;;  %v11131_v5 = vld [vmem:[#allocation3 + $0xa0] sm:$0xff]  }
 0x3fd   :  { %v9934_v54 = vadd.f32 %v9933_v61, %v9932_v37  ;;  %v9811_v51 = vpop.f32.mrf.mxu0  ;;  %6163 = vmatmul.mubr.bf16.gmra.mxu0 %v11126_v40  ;;  %v11128_v37 = vld [vmem:[#allocation3 + $0x98] sm:$0xff]  }
 0x3fe   :  { %v12546_v53 = vadd.f32 %v9810_v63, %v12423_v26  ;;  %v12548_v50 = vpop.f32.mrf.mxu1  ;;  %6170 = vmatprep.mubr.bf16.mxu0 %v11127_v31 }
 0x3ff   :  { %v9812_v7 = vpop.f32.mrf.mxu0 }
 0x400   :  { %v9813_v18 = vadd.f32 %v9812_v7, %v9811_v51  ;;  %v12550_v62 = vpop.f32.mrf.mxu1 }
 0x401   :  { %13528 = vst [vmem:[#allocation5_spill] sm:$0xff] %v12550_v62  ;;  %v9814_v29 = vpop.f32.mrf.mxu0 }
 0x402   :  { %v12556_v38 = vadd.f32 %v9813_v18, %v12426_v1  ;;  %v12558_v25 = vpop.f32.mrf.mxu1  ;;  %v11145_v18 = vld [vmem:[%s13470_s7 + $0x138] sm:$0xff]  }
 0x403   :  { %13529 = vst [vmem:[#allocation9_spill] sm:$0xff] %v12558_v25  ;;  %v9815_v26 = vpop.f32.mrf.mxu0  ;;  %10429 = vmatpush3.bf16.msra.mxu0 %v11145_v18 }
 0x404   :  { %v9816_v31 = vadd.f32 %v9815_v26, %v9814_v29  ;;  %v12561_v15 = vpop.f32.mrf.mxu1 }
 0x405   :  { %13530 = vst [vmem:[#allocation7_spill] sm:$0xff] %v12561_v15  ;;  %v9817_v40 = vpop.f32.mrf.mxu0  ;;  %6171 = vmatmul.mubr.bf16.gmra.mxu0 %v11128_v37  ;;  %v11132_v15 = vld [vmem:[#allocation3 + $0xb0] sm:$0xff]  }
 0x406   :  { %v12564_v63 = vadd.f32 %v9816_v31, %v12428_v11  ;;  %v9941_v61 = vpop.f32.mrf.mxu1  ;;  %6178 = vmatprep.mubr.bf16.mxu0 %v11130_v60  ;;  %v13531_v11 = vmov 0.0  }
 0x407   :  { %v9818_v1 = vpop.f32.mrf.mxu0  ;;  %10430 = vmatprep.subr.bf16.mxu0 %v13531_v11  ;;  %10364 = vmatprep.mubr.msk.bf16.mxu1 %vm11279_vm4, %v13531_v11 }
 0x408   :  { %v9819_v51 = vadd.f32 %v9818_v1, %v9817_v40  ;;  %v9942_v7 = vpop.f32.mrf.mxu1 }
 0x409   :  { %v9943_v48 = vadd.f32 %v9942_v7, %v9941_v61  ;;  %v9820_v25 = vpop.f32.mrf.mxu0  ;;  %v11146_v61 = vld [vmem:[%s13470_s7 + $0x130] sm:$0xff]  }
 0x40a   :  { %v5059_v29 = vadd.f32 %v9819_v51, %v12432_v19  ;;  %v9944_v26 = vpop.f32.mrf.mxu1  ;;  %10431 = vmatpush3.bf16.msra.mxu0 %v11146_v61 }
 0x40b   :  { %v9821_v37 = vpop.f32.mrf.mxu0  ;;  %10432 = vmatprep.subr.bf16.mxu0 %v13531_v11 }
 0x40c   :  { %v9822_v31 = vadd.f32 %v9821_v37, %v9820_v25  ;;  %v9945_v60 = vpop.f32.mrf.mxu1  ;;  %v12571_v62 = vadd.f32 %v9931_v6, %v5059_v29  ;;  %v11133_v29 = vld [vmem:[#allocation3 + $0xa8] sm:$0xff]   ;;  %v11135_v37 = vld [vmem:[#allocation3 + $0xb8] sm:$0xff]  }
 0x40d   :  { %v12573_v40 = vadd.f32 %v9945_v60, %v9944_v26  ;;  %v9823_v1 = vpop.f32.mrf.mxu0  ;;  %6179 = vmatmul.mubr.bf16.gmra.mxu0 %v11131_v5  ;;  %v11148_v5 = vld [vmem:[%s13470_s7 + $0x128] sm:$0xff]  }
 0x40e   :  { %v5060_v19 = vadd.f32 %v9822_v31, %v12437_v44  ;;  %v12579_v51 = vpop.f32.mrf.mxu1  ;;  %6186 = vmatprep.mubr.bf16.mxu0 %v11132_v15  ;;  %10433 = vmatpush3.bf16.msra.mxu0 %v11148_v5 }
 0x40f   :  { %13532 = vst [vmem:[#allocation8_spill] sm:$0xff] %v12579_v51  ;;  %v9824_v25 = vpop.f32.mrf.mxu0  ;;  %10434 = vmatprep.subr.bf16.mxu0 %v13531_v11 }
 0x410   :  { %v9825_v6 = vadd.f32 %v9824_v25, %v9823_v1  ;;  %v12583_v7 = vpop.f32.mrf.mxu1  ;;  %v12589_v18 = vadd.f32 %v9934_v54, %v5060_v19  ;;  %v11150_v54 = vld [vmem:[%s13470_s7 + $0x120] sm:$0xff]  }
 0x411   :  { %13533 = vst [vmem:[#allocation10_spill] sm:$0xff] %v12583_v7  ;;  %v9826_v44 = vpop.f32.mrf.mxu0 }
 0x412   :  { %v12592_v15 = vadd.f32 %v9825_v6, %v12440_v42  ;;  %v12594_v26 = vpop.f32.mrf.mxu1  ;;  %10435 = vmatpush3.bf16.msra.mxu0 %v11150_v54 }
 0x413   :  { %13534 = vst [vmem:[#allocation11_spill] sm:$0xff] %v12594_v26  ;;  %v9827_v31 = vpop.f32.mrf.mxu0  ;;  %10436 = vmatprep.subr.bf16.mxu0 %v13531_v11 }
 0x414   :  { %v9828_v60 = vadd.f32 %v9827_v31, %v9826_v44  ;;  %v12596_v1 = vpop.f32.mrf.mxu1  ;;  %v11152_v44 = vld [vmem:[%s13470_s7 + $0x118] sm:$0xff]  }
 0x415   :  { %13535 = vst [vmem:[#allocation6_spill] sm:$0xff] %v12596_v1  ;;  %v9829_v61 = vpop.f32.mrf.mxu0  ;;  %6187 = vmatmul.mubr.bf16.gmra.mxu0 %v11133_v29  ;;  %v11136_v1 = vld [vmem:[#allocation3 + $0xb0] sm:$0xff]  }
 0x416   :  { %v12603_v19 = vadd.f32 %v9828_v60, %v12442_v34  ;;  %v9953_v42 = vpop.f32.mrf.mxu1  ;;  %6194 = vmatprep.mubr.bf16.mxu0 %v11135_v37  ;;  %v11137_v34 = vld [vmem:[#allocation3 + $0xc0] sm:$0xff]   ;;  %10437 = vmatpush3.bf16.msra.mxu0 %v11152_v44 }
 0x417   :  { %v9830_v25 = vpop.f32.mrf.mxu0  ;;  %10438 = vmatprep.subr.bf16.mxu0 %v13531_v11 }
 0x418   :  { %v9831_v6 = vadd.f32 %v9830_v25, %v9829_v61  ;;  %v9954_v5 = vpop.f32.mrf.mxu1 }
 0x419   :  { %v9955_v29 = vadd.f32 %v9954_v5, %v9953_v42  ;;  %v9832_v31 = vpop.f32.mrf.mxu0  ;;  %v11154_v42 = vld [vmem:[%s13470_s7 + $0x110] sm:$0xff]  }
 0x41a   :  { %v5063_v26 = vadd.f32 %v9831_v6, %v12444_v4  ;;  %v9956_v7 = vpop.f32.mrf.mxu1  ;;  %10439 = vmatpush3.bf16.msra.mxu0 %v11154_v42 }
 0x41b   :  { %v9833_v60 = vpop.f32.mrf.mxu0  ;;  %10440 = vmatprep.subr.bf16.mxu0 %v13531_v11 }
 0x41c   :  { %v9834_v37 = vadd.f32 %v9833_v60, %v9832_v31  ;;  %v9957_v51 = vpop.f32.mrf.mxu1  ;;  %v12611_v61 = vadd.f32 %v9943_v48, %v5063_v26  ;;  %v11156_v48 = vld [vmem:[%s13470_s7 + $0x108] sm:$0xff]   ;;  %v11138_v26 = vld [vmem:[#allocation3 + $0xb8] sm:$0xff]  }
 0x41d   :  { %v9958_v54 = vadd.f32 %v9957_v51, %v9956_v7  ;;  %v9835_v25 = vpop.f32.mrf.mxu0  ;;  %6195 = vmatmul.mubr.bf16.gmra.mxu0 %v11136_v1 }
 0x41e   :  { %v5064_v5 = vadd.f32 %v9834_v37, %v12450_v12  ;;  %v12617_v4 = vpop.f32.mrf.mxu1  ;;  %6202 = vmatprep.mubr.bf16.mxu0 %v11137_v34  ;;  %10441 = vmatpush3.bf16.msra.mxu0 %v11156_v48 }
 0x41f   :  { %13536 = vst [vmem:[#allocation15_spill] sm:$0xff] %v12617_v4  ;;  %v9836_v6 = vpop.f32.mrf.mxu0  ;;  %10442 = vmatprep.subr.bf16.mxu0 %v13531_v11 }
 0x420   :  { %v9837_v44 = vadd.f32 %v9836_v6, %v9835_v25  ;;  %v12619_v31 = vpop.f32.mrf.mxu1  ;;  %v12626_v51 = vadd.f32 %v12573_v40, %v5064_v5  ;;  %v11158_v40 = vld [vmem:[%s13470_s7 + $0x100] sm:$0xff]  }
 0x421   :  { %13537 = vst [vmem:[#allocation16_spill] sm:$0xff] %v12619_v31  ;;  %v9838_v7 = vpop.f32.mrf.mxu0 }
 0x422   :  { %v12629_v12 = vadd.f32 %v9837_v44, %v12452_v17  ;;  %v12631_v1 = vpop.f32.mrf.mxu1  ;;  %10443 = vmatpush3.bf16.msra.mxu0 %v11158_v40 }
 0x423   :  { %13539 = vst [vmem:[#allocation12_spill] sm:$0xff] %v12631_v1  ;;  %v9839_v34 = vpop.f32.mrf.mxu0  ;;  %10468 = vmatprep.subr.bf16.mxu0 %v13531_v11 }
 0x424   :  { %13538 = vst [vmem:[#allocation17_spill] sm:$0xff] %v12629_v12  ;;  %v9840_v60 = vadd.f32 %v9839_v34, %v9838_v7  ;;  %v12633_v37 = vpop.f32.mrf.mxu1 }
 0x425   :  { %13540 = vst [vmem:[#allocation13_spill] sm:$0xff] %v12633_v37  ;;  %v9841_v25 = vpop.f32.mrf.mxu0  ;;  %6203 = vmatmul.mubr.bf16.gmra.mxu0 %v11138_v26 }
 0x426   :  { %v12640_v42 = vadd.f32 %v9840_v60, %v12454_v36  ;;  %v9965_v17 = vpop.f32.mrf.mxu1  ;;  %10444 = vmatprep.mubr.msk.bf16.mxu0 %vm11279_vm4, %v13531_v11 }
 0x427   :  { %v9842_v5 = vpop.f32.mrf.mxu0 }
 0x428   :  { %13541 = vst [vmem:[#allocation14_spill] sm:$0xff] %v12640_v42  ;;  %v9843_v6 = vadd.f32 %v9842_v5, %v9841_v25  ;;  %v9966_v44 = vpop.f32.mrf.mxu1 }
 0x429   :  { %v9967_v48 = vadd.f32 %v9966_v44, %v9965_v17  ;;  %v9844_v7 = vpop.f32.mrf.mxu0 }
 0x42a   :  { %v5067_v26 = vadd.f32 %v9843_v6, %v12456_v24  ;;  %v9968_v34 = vpop.f32.mrf.mxu1 }
 0x42b   :  { %v9845_v37 = vpop.f32.mrf.mxu0 }
 0x42c   :  { %v9846_v1 = vadd.f32 %v9845_v37, %v9844_v7  ;;  %v9969_v31 = vpop.f32.mrf.mxu1  ;;  %v12646_v36 = vadd.f32 %v9955_v29, %v5067_v26 }
 0x42d   :  { %v9970_v60 = vadd.f32 %v9969_v31, %v9968_v34  ;;  %v9847_v4 = vpop.f32.mrf.mxu0 }
 0x42e   :  { %v5068_v42 = vadd.f32 %v9846_v1, %v12462_v14  ;;  %v12649_v12 = vpop.f32.mrf.mxu1 }
 0x42f   :  { %13542 = vst [vmem:[#allocation19_spill] sm:$0xff] %v12649_v12  ;;  %v9848_v25 = vpop.f32.mrf.mxu0 }
 0x430   :  { %v9849_v40 = vadd.f32 %v9848_v25, %v9847_v4  ;;  %v12651_v5 = vpop.f32.mrf.mxu1  ;;  %v12653_v17 = vadd.f32 %v9958_v54, %v5068_v42 }
 0x431   :  { %13543 = vst [vmem:[#allocation20_spill] sm:$0xff] %v12651_v5  ;;  %v9850_v44 = vpop.f32.mrf.mxu0 }
 0x432   :  { %v12656_v24 = vadd.f32 %v9849_v40, %v12464_v2  ;;  %v12658_v37 = vpop.f32.mrf.mxu1 }
 0x433   :  { %13544 = vst [vmem:[#allocation22_spill] sm:$0xff] %v12658_v37  ;;  %v9851_v29 = vpop.f32.mrf.mxu0 }
 0x434   :  { %v9852_v6 = vadd.f32 %v9851_v29, %v9850_v44  ;;  %v12660_v31 = vpop.f32.mrf.mxu1 }
 0x435   :  { %13545 = vst [vmem:[#allocation23_spill] sm:$0xff] %v12660_v31  ;;  %v9853_v7 = vpop.f32.mrf.mxu0 }
 0x436   :  { %v12663_v14 = vadd.f32 %v9852_v6, %v12466_v22  ;;  %v9977_v1 = vpop.f32.mrf.mxu1 }
 0x437   :  { %v9854_v4 = vpop.f32.mrf.mxu0 }
 0x438   :  { %13546 = vst [vmem:[#allocation18_spill] sm:$0xff] %v12663_v14  ;;  %v9855_v26 = vadd.f32 %v9854_v4, %v9853_v7  ;;  %v9978_v34 = vpop.f32.mrf.mxu1 }
 0x439   :  { %v9979_v54 = vadd.f32 %v9978_v34, %v9977_v1  ;;  %v9856_v42 = vpop.f32.mrf.mxu0 }
 0x43a   :  { %v5071_v25 = vadd.f32 %v9855_v26, %v12468_v27  ;;  %v9980_v2 = vpop.f32.mrf.mxu1 }
 0x43b   :  { %v9857_v40 = vpop.f32.mrf.mxu0 }
 0x43c   :  { %v9858_v5 = vadd.f32 %v9857_v40, %v9856_v42  ;;  %v9981_v37 = vpop.f32.mrf.mxu1  ;;  %v12666_v12 = vadd.f32 %v9967_v48, %v5071_v25 }
 0x43d   :  { %v9982_v44 = vadd.f32 %v9981_v37, %v9980_v2  ;;  %v9859_v29 = vpop.f32.mrf.mxu0 }
 0x43e   :  { %v5072_v31 = vadd.f32 %v9858_v5, %v12474_v32  ;;  %v12669_v22 = vpop.f32.mrf.mxu1 }
 0x43f   :  { %13547 = vst [vmem:[#allocation21_spill] sm:$0xff] %v12669_v22  ;;  %v9860_v6 = vpop.f32.mrf.mxu0 }
 0x440   :  { %v9861_v14 = vadd.f32 %v9860_v6, %v9859_v29  ;;  %v12671_v7 = vpop.f32.mrf.mxu1  ;;  %v12673_v1 = vadd.f32 %v9970_v60, %v5072_v31 }
 0x441   :  { %13548 = vst [vmem:[#allocation25_spill] sm:$0xff] %v12671_v7  ;;  %v9862_v4 = vpop.f32.mrf.mxu0 }
 0x442   :  { %v12676_v27 = vadd.f32 %v9861_v14, %v12476_v30  ;;  %v12678_v26 = vpop.f32.mrf.mxu1 }
 0x443   :  { %13549 = vst [vmem:[#allocation26_spill] sm:$0xff] %v12678_v26  ;;  %v9863_v48 = vpop.f32.mrf.mxu0 }
 0x444   :  { %v9864_v34 = vadd.f32 %v9863_v48, %v9862_v4  ;;  %v12680_v37 = vpop.f32.mrf.mxu1 }
 0x445   :  { %13550 = vst [vmem:[#allocation24_spill] sm:$0xff] %v12680_v37  ;;  %v9865_v42 = vpop.f32.mrf.mxu0 }
 0x446   :  { %v12683_v32 = vadd.f32 %v9864_v34, %v12478_v10  ;;  %v9989_v5 = vpop.f32.mrf.mxu1 }
 0x447   :  { %v9866_v25 = vpop.f32.mrf.mxu0 }
 0x448   :  { %v9867_v2 = vadd.f32 %v9866_v25, %v9865_v42  ;;  %v9990_v40 = vpop.f32.mrf.mxu1 }
 0x449   :  { %v9991_v60 = vadd.f32 %v9990_v40, %v9989_v5  ;;  %v9868_v31 = vpop.f32.mrf.mxu0 }
 0x44a   :  { %v5075_v29 = vadd.f32 %v9867_v2, %v12480_v16  ;;  %v9992_v30 = vpop.f32.mrf.mxu1 }
 0x44b   :  { %v9869_v14 = vpop.f32.mrf.mxu0 }
 0x44c   :  { %v9870_v6 = vadd.f32 %v9869_v14, %v9868_v31  ;;  %v9993_v26 = vpop.f32.mrf.mxu1  ;;  %v12686_v7 = vadd.f32 %v9979_v54, %v5075_v29 }
 0x44d   :  { %v9994_v4 = vadd.f32 %v9993_v26, %v9992_v30  ;;  %v9871_v48 = vpop.f32.mrf.mxu0 }
 0x44e   :  { %v5076_v37 = vadd.f32 %v9870_v6, %v12486_v28  ;;  %v12689_v10 = vpop.f32.mrf.mxu1 }
 0x44f   :  { %v9872_v34 = vpop.f32.mrf.mxu0 }
 0x450   :  { %v9873_v22 = vadd.f32 %v9872_v34, %v9871_v48  ;;  %v12691_v42 = vpop.f32.mrf.mxu1  ;;  %v12693_v5 = vadd.f32 %v9982_v44, %v5076_v37 }
 0x451   :  { %13551 = vst [vmem:[#allocation27_spill] sm:$0xff] %v12691_v42  ;;  %v9874_v25 = vpop.f32.mrf.mxu0 }
 0x452   :  { %v12696_v16 = vadd.f32 %v9873_v22, %v12488_v21  ;;  %v12698_v2 = vpop.f32.mrf.mxu1 }
 0x453   :  { %13552 = vst [vmem:[#allocation28_spill] sm:$0xff] %v12698_v2  ;;  %v9875_v54 = vpop.f32.mrf.mxu0 }
 0x454   :  { %v9876_v40 = vadd.f32 %v9875_v54, %v9874_v25  ;;  %v12700_v26 = vpop.f32.mrf.mxu1 }
 0x455   :  { %13553 = vst [vmem:[#allocation29_spill] sm:$0xff] %v12700_v26  ;;  %v9877_v31 = vpop.f32.mrf.mxu0 }
 0x456   :  { %v12703_v28 = vadd.f32 %v9876_v40, %v12490_v39  ;;  %v10001_v29 = vpop.f32.mrf.mxu1 }
 0x457   :  { %v9878_v30 = vpop.f32.mrf.mxu0 }
 0x458   :  { %v9879_v14 = vadd.f32 %v9878_v30, %v9877_v31  ;;  %v10002_v6 = vpop.f32.mrf.mxu1 }
 0x459   :  { %v9880_v44 = vpop.f32.mrf.mxu0  ;;  %v10003_v37 = vadd.f32 %v10002_v6, %v10001_v29 }
 0x45a   :  { %v5079_v48 = vadd.f32 %v9879_v14, %v12492_v43  ;;  %v10004_v6 = vpop.f32.mrf.mxu1 }
 0x45b   :  { %v9881_v21 = vpop.f32.mrf.mxu0 }
 0x45c   :  { %v9882_v22 = vadd.f32 %v9881_v21, %v9880_v44  ;;  %v12706_v34 = vadd.f32 %v9991_v60, %v5079_v48  ;;  %v10005_v48 = vpop.f32.mrf.mxu1 }
 0x45d   :  { %v9883_v2 = vpop.f32.mrf.mxu0 }
 0x45e   :  { %v5080_v25 = vadd.f32 %v9882_v22, %v12498_v20  ;;  %v10006_v22 = vadd.f32 %v10005_v48, %v10004_v6 }
 0x45f   :  { %v9884_v54 = vpop.f32.mrf.mxu0 }
 0x460   :  { %v9885_v26 = vadd.f32 %v9884_v54, %v9883_v2  ;;  %v12709_v42 = vadd.f32 %v9994_v4, %v5080_v25 }
 0x461   :  { %v9886_v39 = vpop.f32.mrf.mxu0 }
 0x462   :  { %v12712_v40 = vadd.f32 %v9885_v26, %v12504_v0  ;;  %v9913_v26 = vadd.f32 %v12502_v47, %v12500_v41 }
 0x463   :  { %v9887_v31 = vpop.f32.mrf.mxu0 }
 0x464   :  { %v9888_v30 = vadd.f32 %v9887_v31, %v9886_v39  ;;  %v5632_v39 = vadd.f32 %v9913_v26, %v12533_v59  ;;  %v9919_v59 = vadd.f32 %v12514_v56, %v12512_v46 }
 0x465   :  { %v9889_v29 = vpop.f32.mrf.mxu0 }
 0x466   :  { %v12715_v43 = vadd.f32 %v9888_v30, %v12510_v3  ;;  %v9916_v30 = vadd.f32 %v12508_v52, %v12506_v58  ;;  %v9922_v58 = vadd.f32 %v12523_v49, %v12518_v13  ;;  %v9925_v13 = vadd.f32 %v12530_v55, %v12528_v45 }
 0x467   :  { %v9890_v60 = vpop.f32.mrf.mxu0 }
 0x468   :  { %v9891_v14 = vadd.f32 %v9890_v60, %v9889_v29  ;;  %v5633_v47 = vadd.f32 %v9916_v30, %v12540_v8  ;;  %v5636_v30 = vadd.f32 %v9925_v13, %v12556_v38  ;;  %v11147_v38 = vld [vmem:[%s13470_s7 + $0x38] sm:$0xff]   ;;  %v11151_v13 = vld [vmem:[%s13470_s7 + $0x28] sm:$0xff]  }
 0x469   :  { %v9892_v44 = vpop.f32.mrf.mxu0 }
 0x46a   :  { %v5083_v20 = vadd.f32 %v9891_v14, %v12516_v23  ;;  %v12729_v23 = vld [vmem:[%s13471_s6] ss:$0 sm:$0xff] }
 0x46b   :  { %v9893_v2 = vpop.f32.mrf.mxu0 }
 0x46c   :  { %v12718_v4 = vadd.f32 %v10003_v37, %v5083_v20  ;;  %v9894_v21 = vadd.f32 %v9893_v2, %v9892_v44  ;;  %v5634_v2 = vadd.f32 %v9919_v59, %v12543_v33 }
 0x46d   :  { %v10023_v0 = vpop.f32.mrf.mxu0 }
 0x46e   :  { %v5084_v25 = vadd.f32 %v9894_v21, %v12526_v9 }
 0x46f   :  { %v10024_v54 = vpop.f32.mrf.mxu0 }
 0x470   :  { %v12723_v3 = vadd.f32 %v10006_v22, %v5084_v25  ;;  %v10025_v31 = vadd.f32 %v10024_v54, %v10023_v0  ;;  %v5635_v0 = vadd.f32 %v9922_v58, %v12546_v53 }
 0x471   :  { %v10026_v37 = vpop.f32.mrf.mxu0 }
 0x472   :  { %v6211_v29 = vadd.f32 %v10025_v31, %v5632_v39 }
 0x473   :  { %v10027_v6 = vpop.f32.mrf.mxu0 }
 0x474   :  { %v6250_v41 = vadd.f32 %v12729_v23, %v6211_v29  ;;  %v10028_v9 = vadd.f32 %v10027_v6, %v10026_v37  ;;  %v9928_v6 = vadd.f32 %v12537_v35, %v12535_v57 }
 0x475   :  { %v10029_v60 = vpop.f32.mrf.mxu0 }
 0x476   :  { %v6212_v14 = vadd.f32 %v10028_v9, %v5633_v47  ;;  %v6314_v48 = vmul.f32 0.2, %v6250_v41  ;;  %vm6282_vm5 = vcmp.gt.f32.partialorder %v6250_v41, 0.0 }
 0x477   :  { %v10030_v44 = vpop.f32.mrf.mxu0 }
 0x478   :  { %v6251_v20 = vadd.f32 %v12729_v23, %v6212_v14  ;;  %v10031_v21 = vadd.f32 %v10030_v44, %v10029_v60  ;;  %v12742_v46 = vsel %vm6282_vm5, %v6250_v41, %v6314_v48  ;;  %v5637_v60 = vadd.f32 %v9928_v6, %v12564_v63  ;;  %v11149_v63 = vld [vmem:[%s13470_s7 + $0x30] sm:$0xff]  }
 0x479   :  { %v10032_v52 = vpop.f32.mrf.mxu0 }
 0x47a   :  { %vm6283_vm6 = vcmp.gt.f32.partialorder %v6251_v20, 0.0  ;;  %v6315_v8 = vmul.f32 0.2, %v6251_v20  ;;  %v6213_v22 = vadd.f32 %v10031_v21, %v5634_v2 }
 0x47b   :  { %v10033_v26 = vpop.f32.mrf.mxu0 }
 0x47c   :  { %v12744_v56 = vsel %vm6283_vm6, %v6251_v20, %v6315_v8  ;;  %v6252_v25 = vadd.f32 %v12729_v23, %v6213_v22  ;;  %v10034_v54 = vadd.f32 %v10033_v26, %v10032_v52 }
 0x47d   :  { %v6378_v33 = vpack.c.bf16 %v12744_v56, %v12742_v46  ;;  %v10035_v39 = vpop.f32.mrf.mxu0 }
 0x47e   :  { %v6214_v49 = vadd.f32 %v10034_v54, %v5635_v0  ;;  %v6316_v37 = vmul.f32 0.2, %v6252_v25  ;;  %vm6284_vm7 = vcmp.gt.f32.partialorder %v6252_v25, 0.0 }
 0x47f   :  { %v10036_v31 = vpop.f32.mrf.mxu0 }
 0x480   :  { %v6253_v53 = vadd.f32 %v12729_v23, %v6214_v49  ;;  %v10037_v29 = vadd.f32 %v10036_v31, %v10035_v39  ;;  %v6348_v45 = vsel %vm6284_vm7, %v6252_v25, %v6316_v37 }
 0x481   :  { %v10038_v41 = vpop.f32.mrf.mxu0 }
 0x482   :  { %vm6285_vm8 = vcmp.gt.f32.partialorder %v6253_v53, 0.0  ;;  %v6317_v47 = vmul.f32 0.2, %v6253_v53  ;;  %v6215_v9 = vadd.f32 %v10037_v29, %v5636_v30 }
 0x483   :  { %v10039_v59 = vpop.f32.mrf.mxu0 }
 0x484   :  { %v6349_v55 = vsel %vm6285_vm8, %v6253_v53, %v6317_v47  ;;  %v6254_v14 = vadd.f32 %v12729_v23, %v6215_v9  ;;  %v10040_v44 = vadd.f32 %v10039_v59, %v10038_v41  ;;  %v11153_v9 = vld [vmem:[%s13470_s7 + $0x20] sm:$0xff]  }
 0x485   :  { %v6379_v48 = vpack.c.bf16 %v6349_v55, %v6348_v45  ;;  %v10041_v20 = vpop.f32.mrf.mxu0  ;;  %v13556_v59 = vld [vmem:[#allocation7_spill] sm:$0xff] }
 0x486   :  { %v6216_v57 = vadd.f32 %v10040_v44, %v5637_v60  ;;  %v6318_v2 = vmul.f32 0.2, %v6254_v14  ;;  %vm6286_vm9 = vcmp.gt.f32.partialorder %v6254_v14, 0.0  ;;  %v13555_v60 = vld [vmem:[#allocation9_spill] sm:$0xff] }
 0x487   :  { %v10042_v35 = vpop.f32.mrf.mxu0  ;;  %10365 = vmatmul.mubr.bf16.vlgmr.msra.gmra.mxu1 %v6379_v48  ;;  %v9940_v45 = vadd.f32 %v13556_v59, %v13555_v60 }
 0x488   :  { %v6255_v21 = vadd.f32 %v12729_v23, %v6216_v57  ;;  %v10043_v58 = vadd.f32 %v10042_v35, %v10041_v20  ;;  %10369 = vmatpush3.bf16.msra.mxu1 %v11147_v38  ;;  %10384 = vmatprep.mubr.msk.bf16.mxu1 %vm11279_vm4, %v13531_v11  ;;  %v12768_v26 = vsel %vm6286_vm9, %v6254_v14, %v6318_v2  ;;  %v11155_v57 = vld [vmem:[%s13470_s7 + $0x18] sm:$0xff]  }
 0x489   :  { %v10044_v52 = vpop.f32.mrf.mxu0  ;;  %10370 = vmatprep.subr.bf16.mxu1 %v13531_v11  ;;  %v5641_v14 = vadd.f32 %v9940_v45, %v12603_v19 }
 0x48a   :  { %vm6287_vm10 = vcmp.gt.f32.partialorder %v6255_v21, 0.0  ;;  %v6319_v8 = vmul.f32 0.2, %v6255_v21  ;;  %v6217_v22 = vadd.f32 %v10043_v58, %v12571_v62  ;;  %v13554_v62 = vld [vmem:[#allocation5_spill] sm:$0xff] }
 0x48b   :  { %v10045_v0 = vpop.f32.mrf.mxu0  ;;  %v9937_v37 = vadd.f32 %v13554_v62, %v12548_v50 }
 0x48c   :  { %v12770_v25 = vsel %vm6287_vm10, %v6255_v21, %v6319_v8  ;;  %v6256_v54 = vadd.f32 %v12729_v23, %v6217_v22  ;;  %v10046_v39 = vadd.f32 %v10045_v0, %v10044_v52  ;;  %10371 = vmatpush3.bf16.msra.mxu1 %v11149_v63  ;;  %v11157_v8 = vld [vmem:[%s13470_s7 + $0x10] sm:$0xff]  }
 0x48d   :  { %v6380_v49 = vpack.c.bf16 %v12770_v25, %v12768_v26  ;;  %v10047_v31 = vpop.f32.mrf.mxu0  ;;  %10372 = vmatprep.subr.bf16.mxu1 %v13531_v11  ;;  %v5640_v41 = vadd.f32 %v9937_v37, %v12592_v15 }
 0x48e   :  { %v6218_v53 = vadd.f32 %v10046_v39, %v12589_v18  ;;  %v6320_v29 = vmul.f32 0.2, %v6256_v54  ;;  %vm6288_vm11 = vcmp.gt.f32.partialorder %v6256_v54, 0.0 }
 0x48f   :  { %v10048_v30 = vpop.f32.mrf.mxu0 }
 0x490   :  { %v6257_v6 = vadd.f32 %v12729_v23, %v6218_v53  ;;  %v10049_v47 = vadd.f32 %v10048_v30, %v10047_v31  ;;  %10373 = vmatpush3.bf16.msra.mxu1 %v11151_v13  ;;  %v12791_v15 = vsel %vm6288_vm11, %v6256_v54, %v6320_v29  ;;  %v11159_v53 = vld [vmem:[%s13470_s7 + $0x8] sm:$0xff]   ;;  %v11160_v30 = vld [vmem:[%s13470_s7 + $0x1b8] sm:$0xff]  }
 0x491   :  { %v10050_v55 = vpop.f32.mrf.mxu0  ;;  %10374 = vmatprep.subr.bf16.mxu1 %v13531_v11 }
 0x492   :  { %vm6289_vm12 = vcmp.gt.f32.partialorder %v6257_v6, 0.0  ;;  %v6321_v50 = vmul.f32 0.2, %v6257_v6  ;;  %v6219_v18 = vadd.f32 %v10049_v47, %v5640_v41  ;;  %v13558_v41 = vld [vmem:[#allocation10_spill] sm:$0xff] }
 0x493   :  { %v10051_v44 = vpop.f32.mrf.mxu0 }
 0x494   :  { %v12793_v38 = vsel %vm6289_vm12, %v6257_v6, %v6321_v50  ;;  %v6258_v48 = vadd.f32 %v12729_v23, %v6219_v18  ;;  %v10052_v20 = vadd.f32 %v10051_v44, %v10050_v55  ;;  %10375 = vmatpush3.bf16.msra.mxu1 %v11153_v9  ;;  %v13559_v55 = vld [vmem:[#allocation17_spill] sm:$0xff] }
 0x495   :  { %v6381_v35 = vpack.c.bf16 %v12793_v38, %v12791_v15  ;;  %v10053_v2 = vpop.f32.mrf.mxu0  ;;  %10376 = vmatprep.subr.bf16.mxu1 %v13531_v11  ;;  %v11162_v44 = vld [vmem:[%s13470_s7 + $0x1b0] sm:$0xff]  }
 0x496   :  { %v6220_v19 = vadd.f32 %v10052_v20, %v5641_v14  ;;  %v6322_v58 = vmul.f32 0.2, %v6258_v48  ;;  %vm6290_vm13 = vcmp.gt.f32.partialorder %v6258_v48, 0.0  ;;  %v11161_v14 = vld [vmem:[%s13470_s7] sm:$0xff]  }
 0x497   :  { %v10054_v21 = vpop.f32.mrf.mxu0 }
 0x498   :  { %v6259_v63 = vadd.f32 %v12729_v23, %v6220_v19  ;;  %v10055_v52 = vadd.f32 %v10054_v21, %v10053_v2  ;;  %10377 = vmatpush3.bf16.msra.mxu1 %v11155_v57  ;;  %v6354_v13 = vsel %vm6290_vm13, %v6258_v48, %v6322_v58  ;;  %v13561_v48 = vld [vmem:[#allocation6_spill] sm:$0xff] }
 0x499   :  { %v10056_v22 = vpop.f32.mrf.mxu0  ;;  %10378 = vmatprep.subr.bf16.mxu1 %v13531_v11  ;;  %v13562_v58 = vld [vmem:[#allocation14_spill] sm:$0xff] }
 0x49a   :  { %vm6291_vm14 = vcmp.gt.f32.partialorder %v6259_v63, 0.0  ;;  %v6323_v0 = vmul.f32 0.2, %v6259_v63  ;;  %v6221_v54 = vadd.f32 %v10055_v52, %v12611_v61  ;;  %v13557_v61 = vld [vmem:[#allocation8_spill] sm:$0xff] }
 0x49b   :  { %v10057_v39 = vpop.f32.mrf.mxu0  ;;  %v9949_v47 = vadd.f32 %v13558_v41, %v13557_v61  ;;  %v11166_v61 = vld [vmem:[%s13470_s7 + $0x1a0] sm:$0xff]  }
 0x49c   :  { %v6355_v31 = vsel %vm6291_vm14, %v6259_v63, %v6323_v0  ;;  %v6260_v62 = vadd.f32 %v12729_v23, %v6221_v54  ;;  %v10058_v37 = vadd.f32 %v10057_v39, %v10056_v22  ;;  %10379 = vmatpush3.bf16.msra.mxu1 %v11157_v8  ;;  %v11163_v54 = vld [vmem:[%s13470_s7 + $0xb8] sm:$0xff]   ;;  %v11164_v39 = vld [vmem:[%s13470_s7 + $0x1a8] sm:$0xff]  }
 0x49d   :  { %v6382_v29 = vpack.c.bf16 %v6355_v31, %v6354_v13  ;;  %v10059_v6 = vpop.f32.mrf.mxu0  ;;  %10380 = vmatprep.subr.bf16.mxu1 %v13531_v11  ;;  %v5644_v50 = vadd.f32 %v9949_v47, %v13559_v55 }
 0x49e   :  { %v6222_v9 = vadd.f32 %v10058_v37, %v12626_v51  ;;  %v6324_v60 = vmul.f32 0.2, %v6260_v62  ;;  %vm6292_vm15 = vcmp.gt.f32.partialorder %v6260_v62, 0.0  ;;  %v13560_v51 = vld [vmem:[#allocation11_spill] sm:$0xff] }
 0x49f   :  { %v10060_v59 = vpop.f32.mrf.mxu0  ;;  %10445 = vmatmul.mubr.bf16.vlgmr.msra.gmra.mxu0 %v6382_v29  ;;  %v9952_v20 = vadd.f32 %v13561_v48, %v13560_v51 }
 0x4a0   :  { %v6261_v45 = vadd.f32 %v12729_v23, %v6222_v9  ;;  %v10061_v18 = vadd.f32 %v10060_v59, %v10059_v6  ;;  %10381 = vmatpush3.bf16.msra.mxu1 %v11159_v53  ;;  %10469 = vmatpush3.bf16.msra.mxu0 %v11160_v30  ;;  %v12834_v21 = vsel %vm6292_vm15, %v6260_v62, %v6324_v60  ;;  %v11165_v6 = vld [vmem:[%s13470_s7 + $0xb0] sm:$0xff]  }
 0x4a1   :  { %v10062_v57 = vpop.f32.mrf.mxu0  ;;  %10382 = vmatprep.subr.bf16.mxu1 %v13531_v11  ;;  %10470 = vmatprep.subr.bf16.mxu0 %v13531_v11  ;;  %v5645_v63 = vadd.f32 %v9952_v20, %v13562_v58  ;;  %v11169_v58 = vld [vmem:[%s13470_s7 + $0xa0] sm:$0xff]  }
 0x4a2   :  { %vm6293_vm0 = vcmp.gt.f32.partialorder %v6261_v45, 0.0  ;;  %v6325_v2 = vmul.f32 0.2, %v6261_v45  ;;  %v6223_v19 = vadd.f32 %v10061_v18, %v5644_v50  ;;  %10484 = vmatprep.mubr.msk.bf16.mxu0 %vm11279_vm4, %v13531_v11  ;;  %v13563_v18 = vld [vmem:[#allocation15_spill] sm:$0xff] }
 0x4a3   :  { %v10063_v52 = vpop.f32.mrf.mxu0 }
 0x4a4   :  { %v12837_v8 = vsel %vm6293_vm0, %v6261_v45, %v6325_v2  ;;  %v6262_v22 = vadd.f32 %v12729_v23, %v6223_v19  ;;  %v10064_v0 = vadd.f32 %v10063_v52, %v10062_v57  ;;  %10383 = vmatpush3.bf16.msra.mxu1 %v11161_v14  ;;  %10471 = vmatpush3.bf16.msra.mxu0 %v11162_v44  ;;  %v11167_v45 = vld [vmem:[%s13470_s7 + $0xa8] sm:$0xff]  }
 0x4a5   :  { %v6383_v13 = vpack.c.bf16 %v12837_v8, %v12834_v21  ;;  %v10065_v31 = vpop.f32.mrf.mxu0  ;;  %10388 = vmatprep.subr.bf16.mxu1 %v13531_v11  ;;  %10472 = vmatprep.subr.bf16.mxu0 %v13531_v11  ;;  %v13564_v14 = vld [vmem:[#allocation16_spill] sm:$0xff]  ;;  %v11216_v8 = vld [vmem:[%s13470_s7 + $0x318] sm:$0xff]  }
 0x4a6   :  { %v6224_v62 = vadd.f32 %v10064_v0, %v5645_v63  ;;  %v6326_v37 = vmul.f32 0.2, %v6262_v22  ;;  %vm6294_vm2 = vcmp.gt.f32.partialorder %v6262_v22, 0.0  ;;  %v9961_v44 = vadd.f32 %v13564_v14, %v13563_v18  ;;  %v11170_v63 = vld [vmem:[%s13470_s7 + $0x190] sm:$0xff]   ;;  %v11215_v21 = vld [vmem:[%s13470_s7 + $0x1e8] sm:$0xff]  }
 0x4a7   :  { %10385 = vmatmul.mubr.bf16.vlgmr.msra.gmra.mxu1 %v6378_v33  ;;  %v10066_v53 = vpop.f32.mrf.mxu0  ;;  %v13565_v52 = vld [vmem:[#allocation12_spill] sm:$0xff] }
 0x4a8   :  { %v6263_v30 = vadd.f32 %v12729_v23, %v6224_v62  ;;  %v10067_v29 = vadd.f32 %v10066_v53, %v10065_v31  ;;  %10389 = vmatpush3.bf16.msra.mxu1 %v11163_v54  ;;  %10473 = vmatpush3.bf16.msra.mxu0 %v11164_v39  ;;  %v12865_v33 = vsel %vm6294_vm2, %v6262_v22, %v6326_v37  ;;  %v13567_v31 = vld [vmem:[#allocation18_spill] sm:$0xff] }
 0x4a9   :  { %v10068_v41 = vpop.f32.mrf.mxu0  ;;  %10390 = vmatprep.subr.bf16.mxu1 %v13531_v11  ;;  %10474 = vmatprep.subr.bf16.mxu0 %v13531_v11  ;;  %v5648_v2 = vadd.f32 %v9961_v44, %v12656_v24 }
 0x4aa   :  { %vm6295_vm3 = vcmp.gt.f32.partialorder %v6263_v30, 0.0  ;;  %v6327_v46 = vmul.f32 0.2, %v6263_v30  ;;  %v6225_v56 = vadd.f32 %v10067_v29, %v12646_v36  ;;  %10404 = vmatprep.mubr.msk.bf16.mxu1 %vm11279_vm4, %v13531_v11  ;;  %v11168_v36 = vld [vmem:[%s13470_s7 + $0x198] sm:$0xff]  }
 0x4ab   :  { %v10069_v47 = vpop.f32.mrf.mxu0 }
 0x4ac   :  { %v12867_v9 = vsel %vm6295_vm3, %v6263_v30, %v6327_v46  ;;  %v6264_v60 = vadd.f32 %v12729_v23, %v6225_v56  ;;  %v10070_v59 = vadd.f32 %v10069_v47, %v10068_v41  ;;  %10391 = vmatpush3.bf16.msra.mxu1 %v11165_v6  ;;  %10475 = vmatpush3.bf16.msra.mxu0 %v11166_v61  ;;  %v11171_v6 = vld [vmem:[%s13470_s7 + $0x98] sm:$0xff]   ;;  %v11172_v61 = vld [vmem:[%s13470_s7 + $0x188] sm:$0xff]  }
 0x4ad   :  { %v6384_v55 = vpack.c.bf16 %v12867_v9, %v12865_v33  ;;  %v10071_v50 = vpop.f32.mrf.mxu0  ;;  %10392 = vmatprep.subr.bf16.mxu1 %v13531_v11  ;;  %10476 = vmatprep.subr.bf16.mxu0 %v13531_v11  ;;  %v13571_v33 = vld [vmem:[#allocation23_spill] sm:$0xff] }
 0x4ae   :  { %v6226_v51 = vadd.f32 %v10070_v59, %v12653_v17  ;;  %v6328_v48 = vmul.f32 0.2, %v6264_v60  ;;  %vm6296_vm1 = vcmp.gt.f32.partialorder %v6264_v60, 0.0  ;;  %v13566_v17 = vld [vmem:[#allocation13_spill] sm:$0xff] }
 0x4af   :  { %v10072_v20 = vpop.f32.mrf.mxu0  ;;  %v9964_v22 = vadd.f32 %v13566_v17, %v13565_v52  ;;  %v13568_v52 = vld [vmem:[#allocation19_spill] sm:$0xff]  ;;  %v13569_v17 = vld [vmem:[#allocation20_spill] sm:$0xff] }
 0x4b0   :  { %v6265_v57 = vadd.f32 %v12729_v23, %v6226_v51  ;;  %v10073_v19 = vadd.f32 %v10072_v20, %v10071_v50  ;;  %10393 = vmatpush3.bf16.msra.mxu1 %v11167_v45  ;;  %10477 = vmatpush3.bf16.msra.mxu0 %v11168_v36  ;;  %v12895_v39 = vsel %vm6296_vm1, %v6264_v60, %v6328_v48  ;;  %v11173_v36 = vld [vmem:[%s13470_s7 + $0x90] sm:$0xff]   ;;  %v11174_v50 = vld [vmem:[%s13470_s7 + $0x180] sm:$0xff]  }
 0x4b1   :  { %v10074_v0 = vpop.f32.mrf.mxu0  ;;  %10394 = vmatprep.subr.bf16.mxu1 %v13531_v11  ;;  %10478 = vmatprep.subr.bf16.mxu0 %v13531_v11  ;;  %v5649_v62 = vadd.f32 %v9964_v22, %v13567_v31  ;;  %v9973_v22 = vadd.f32 %v13569_v17, %v13568_v52 }
 0x4b2   :  { %vm6297_vm5 = vcmp.gt.f32.partialorder %v6265_v57, 0.0  ;;  %v6329_v24 = vmul.f32 0.2, %v6265_v57  ;;  %v6227_v54 = vadd.f32 %v10073_v19, %v5648_v2  ;;  %v11175_v19 = vld [vmem:[%s13470_s7 + $0x88] sm:$0xff]  }
 0x4b3   :  { %v10075_v37 = vpop.f32.mrf.mxu0 }
 0x4b4   :  { %v12898_v53 = vsel %vm6297_vm5, %v6265_v57, %v6329_v24  ;;  %v6266_v30 = vadd.f32 %v12729_v23, %v6227_v54  ;;  %v10076_v29 = vadd.f32 %v10075_v37, %v10074_v0  ;;  %10395 = vmatpush3.bf16.msra.mxu1 %v11169_v58  ;;  %10479 = vmatpush3.bf16.msra.mxu0 %v11170_v63  ;;  %v11176_v58 = vld [vmem:[%s13470_s7 + $0x238] sm:$0xff]  }
 0x4b5   :  { %v6385_v41 = vpack.c.bf16 %v12898_v53, %v12895_v39  ;;  %v10077_v46 = vpop.f32.mrf.mxu0  ;;  %10396 = vmatprep.subr.bf16.mxu1 %v13531_v11  ;;  %10480 = vmatprep.subr.bf16.mxu0 %v13531_v11  ;;  %v11231_v39 = vld [vmem:[%s13470_s7 + $0x268] sm:$0xff]   ;;  %v11232_v53 = vld [vmem:[%s13470_s7 + $0x398] sm:$0xff]  }
 0x4b6   :  { %v6228_v56 = vadd.f32 %v10076_v29, %v5649_v62  ;;  %v6330_v47 = vmul.f32 0.2, %v6266_v30  ;;  %vm6298_vm6 = vcmp.gt.f32.partialorder %v6266_v30, 0.0  ;;  %v5652_v62 = vadd.f32 %v9973_v22, %v12676_v27  ;;  %v13570_v29 = vld [vmem:[#allocation22_spill] sm:$0xff] }
 0x4b7   :  { %v10078_v60 = vpop.f32.mrf.mxu0  ;;  %v9976_v9 = vadd.f32 %v13571_v33, %v13570_v29 }
 0x4b8   :  { %v6267_v59 = vadd.f32 %v12729_v23, %v6228_v56  ;;  %v10079_v45 = vadd.f32 %v10078_v60, %v10077_v46  ;;  %10397 = vmatpush3.bf16.msra.mxu1 %v11171_v6  ;;  %10481 = vmatpush3.bf16.msra.mxu0 %v11172_v61  ;;  %v12921_v51 = vsel %vm6298_vm6, %v6266_v30, %v6330_v47  ;;  %v11177_v30 = vld [vmem:[%s13470_s7 + $0x80] sm:$0xff]  }
 0x4b9   :  { %v10080_v18 = vpop.f32.mrf.mxu0  ;;  %10398 = vmatprep.subr.bf16.mxu1 %v13531_v11  ;;  %10482 = vmatprep.subr.bf16.mxu0 %v13531_v11  ;;  %v5653_v46 = vadd.f32 %v9976_v9, %v12683_v32 }
 0x4ba   :  { %vm6299_vm7 = vcmp.gt.f32.partialorder %v6267_v59, 0.0  ;;  %v6331_v14 = vmul.f32 0.2, %v6267_v59  ;;  %v6229_v44 = vadd.f32 %v10079_v45, %v12666_v12  ;;  %v11179_v45 = vld [vmem:[%s13470_s7 + $0xf8] sm:$0xff]  }
 0x4bb   :  { %v10081_v48 = vpop.f32.mrf.mxu0 }
 0x4bc   :  { %v12923_v20 = vsel %vm6299_vm7, %v6267_v59, %v6331_v14  ;;  %v6268_v57 = vadd.f32 %v12729_v23, %v6229_v44  ;;  %v10082_v2 = vadd.f32 %v10081_v48, %v10080_v18  ;;  %10399 = vmatpush3.bf16.msra.mxu1 %v11173_v36  ;;  %10483 = vmatpush3.bf16.msra.mxu0 %v11174_v50  ;;  %v11180_v36 = vld [vmem:[%s13470_s7 + $0x228] sm:$0xff]  }
 0x4bd   :  { %v6386_v12 = vpack.c.bf16 %v12923_v20, %v12921_v51  ;;  %v10083_v63 = vpop.f32.mrf.mxu0  ;;  %10400 = vmatprep.subr.bf16.mxu1 %v13531_v11  ;;  %10508 = vmatprep.subr.bf16.mxu0 %v13531_v11 }
 0x4be   :  { %v6230_v0 = vadd.f32 %v10082_v2, %v12673_v1  ;;  %v6332_v24 = vmul.f32 0.2, %v6268_v57  ;;  %vm6300_vm8 = vcmp.gt.f32.partialorder %v6268_v57, 0.0  ;;  %v11178_v1 = vld [vmem:[%s13470_s7 + $0x230] sm:$0xff]  }
 0x4bf   :  { %10485 = vmatmul.mubr.bf16.vlgmr.msra.gmra.mxu0 %v6384_v55  ;;  %v10084_v54 = vpop.f32.mrf.mxu0  ;;  %v11181_v2 = vld [vmem:[%s13470_s7 + $0xf0] sm:$0xff]  }
 0x4c0   :  { %v6269_v31 = vadd.f32 %v12729_v23, %v6230_v0  ;;  %v10085_v37 = vadd.f32 %v10084_v54, %v10083_v63  ;;  %10401 = vmatpush3.bf16.msra.mxu1 %v11175_v19  ;;  %10509 = vmatpush3.bf16.msra.mxu0 %v11176_v58  ;;  %v12957_v61 = vsel %vm6300_vm8, %v6268_v57, %v6332_v24  ;;  %v11182_v19 = vld [vmem:[%s13470_s7 + $0x220] sm:$0xff]   ;;  %v11183_v0 = vld [vmem:[%s13470_s7 + $0xe8] sm:$0xff]   ;;  %vm8156_vm8 = vcmask 261120  }
 0x4c1   :  { %v10086_v55 = vpop.f32.mrf.mxu0  ;;  %10402 = vmatprep.subr.bf16.mxu1 %v13531_v11  ;;  %10510 = vmatprep.subr.bf16.mxu0 %v13531_v11 }
 0x4c2   :  { %vm6301_vm9 = vcmp.gt.f32.partialorder %v6269_v31, 0.0  ;;  %v6333_v27 = vmul.f32 0.2, %v6269_v31  ;;  %v6231_v6 = vadd.f32 %v10085_v37, %v5652_v62  ;;  %10524 = vmatprep.mubr.msk.bf16.mxu0 %vm11279_vm4, %v13531_v11  ;;  %v13573_v62 = vld [vmem:[#allocation25_spill] sm:$0xff] }
 0x4c3   :  { %v10087_v56 = vpop.f32.mrf.mxu0 }
 0x4c4   :  { %v12960_v47 = vsel %vm6301_vm9, %v6269_v31, %v6333_v27  ;;  %v6270_v60 = vadd.f32 %v12729_v23, %v6231_v6  ;;  %v10088_v59 = vadd.f32 %v10087_v56, %v10086_v55  ;;  %10403 = vmatpush3.bf16.msra.mxu1 %v11177_v30  ;;  %10511 = vmatpush3.bf16.msra.mxu0 %v11178_v1  ;;  %v13572_v31 = vld [vmem:[#allocation21_spill] sm:$0xff]  ;;  %v11185_v27 = vld [vmem:[%s13470_s7 + $0xe0] sm:$0xff]   ;;  %vm8213_vm9 = vcmask 7168  }
 0x4c5   :  { %v6387_v50 = vpack.c.bf16 %v12960_v47, %v12957_v61  ;;  %v10089_v32 = vpop.f32.mrf.mxu0  ;;  %10408 = vmatprep.subr.bf16.mxu1 %v13531_v11  ;;  %10512 = vmatprep.subr.bf16.mxu0 %v13531_v11  ;;  %v9985_v37 = vadd.f32 %v13573_v62, %v13572_v31  ;;  %v11186_v6 = vld [vmem:[%s13470_s7 + $0x210] sm:$0xff]   ;;  %v13576_v31 = vld [vmem:[#allocation27_spill] sm:$0xff] }
 0x4c6   :  { %v6232_v18 = vadd.f32 %v10088_v59, %v5653_v46  ;;  %v6334_v14 = vmul.f32 0.2, %v6270_v60  ;;  %vm6302_vm10 = vcmp.gt.f32.partialorder %v6270_v60, 0.0  ;;  %v13574_v46 = vld [vmem:[#allocation26_spill] sm:$0xff]  ;;  %v9997_v62 = vadd.f32 %v13576_v31, %v12689_v10 }
 0x4c7   :  { %10405 = vmatmul.mubr.bf16.vlgmr.msra.gmra.mxu1 %v6380_v49  ;;  %v10090_v44 = vpop.f32.mrf.mxu0  ;;  %v5656_v9 = vadd.f32 %v9985_v37, %v12696_v16  ;;  %v11244_v47 = vld [vmem:[%s13470_s7 + $0x2e0] sm:$0xff]  }
 0x4c8   :  { %v6271_v48 = vadd.f32 %v12729_v23, %v6232_v18  ;;  %v10091_v57 = vadd.f32 %v10090_v44, %v10089_v32  ;;  %10409 = vmatpush3.bf16.msra.mxu1 %v11179_v45  ;;  %10513 = vmatpush3.bf16.msra.mxu0 %v11180_v36  ;;  %v12988_v49 = vsel %vm6302_vm10, %v6270_v60, %v6334_v14 }
 0x4c9   :  { %v10092_v58 = vpop.f32.mrf.mxu0  ;;  %10410 = vmatprep.subr.bf16.mxu1 %v13531_v11  ;;  %10514 = vmatprep.subr.bf16.mxu0 %v13531_v11 }
 0x4ca   :  { %vm6303_vm11 = vcmp.gt.f32.partialorder %v6271_v48, 0.0  ;;  %v6335_v26 = vmul.f32 0.2, %v6271_v48  ;;  %v6233_v25 = vadd.f32 %v10091_v57, %v12686_v7  ;;  %10424 = vmatprep.mubr.msk.bf16.mxu1 %vm11279_vm4, %v13531_v11  ;;  %v11184_v7 = vld [vmem:[%s13470_s7 + $0x218] sm:$0xff]   ;;  %v11188_v57 = vld [vmem:[%s13470_s7 + $0x208] sm:$0xff]  }
 0x4cb   :  { %v10093_v63 = vpop.f32.mrf.mxu0 }
 0x4cc   :  { %v12990_v52 = vsel %vm6303_vm11, %v6271_v48, %v6335_v26  ;;  %v6272_v17 = vadd.f32 %v12729_v23, %v6233_v25  ;;  %v10094_v22 = vadd.f32 %v10093_v63, %v10092_v58  ;;  %10411 = vmatpush3.bf16.msra.mxu1 %v11181_v2  ;;  %10515 = vmatpush3.bf16.msra.mxu0 %v11182_v19  ;;  %v11187_v48 = vld [vmem:[%s13470_s7 + $0xd8] sm:$0xff]  }
 0x4cd   :  { %v6388_v24 = vpack.c.bf16 %v12990_v52, %v12988_v49  ;;  %v10095_v54 = vpop.f32.mrf.mxu0  ;;  %10412 = vmatprep.subr.bf16.mxu1 %v13531_v11  ;;  %10516 = vmatprep.subr.bf16.mxu0 %v13531_v11  ;;  %v11211_v49 = vld [vmem:[%s13470_s7 + $0x1f8] sm:$0xff]   ;;  %v11212_v52 = vld [vmem:[%s13470_s7 + $0x328] sm:$0xff]  }
 0x4ce   :  { %v6234_v30 = vadd.f32 %v10094_v22, %v12693_v5  ;;  %v6336_v1 = vmul.f32 0.2, %v6272_v17  ;;  %vm6304_vm12 = vcmp.gt.f32.partialorder %v6272_v17, 0.0  ;;  %v13575_v5 = vld [vmem:[#allocation24_spill] sm:$0xff]  ;;  %v11190_v22 = vld [vmem:[%s13470_s7 + $0x200] sm:$0xff]  }
 0x4cf   :  { %v10096_v29 = vpop.f32.mrf.mxu0  ;;  %v9988_v56 = vadd.f32 %v13575_v5, %v13574_v46  ;;  %v13578_v46 = vld [vmem:[#allocation29_spill] sm:$0xff] }
 0x4d0   :  { %v6273_v33 = vadd.f32 %v12729_v23, %v6234_v30  ;;  %v10097_v55 = vadd.f32 %v10096_v29, %v10095_v54  ;;  %10413 = vmatpush3.bf16.msra.mxu1 %v11183_v0  ;;  %10517 = vmatpush3.bf16.msra.mxu0 %v11184_v7  ;;  %v13018_v45 = vsel %vm6304_vm12, %v6272_v17, %v6336_v1  ;;  %v11189_v17 = vld [vmem:[%s13470_s7 + $0xd0] sm:$0xff]  }
 0x4d1   :  { %v10098_v60 = vpop.f32.mrf.mxu0  ;;  %10414 = vmatprep.subr.bf16.mxu1 %v13531_v11  ;;  %10518 = vmatprep.subr.bf16.mxu0 %v13531_v11  ;;  %v5657_v36 = vadd.f32 %v9988_v56, %v12703_v28 }
 0x4d2   :  { %vm6305_vm13 = vcmp.gt.f32.partialorder %v6273_v33, 0.0  ;;  %v6337_v16 = vmul.f32 0.2, %v6273_v33  ;;  %v6235_v59 = vadd.f32 %v10097_v55, %v5656_v9  ;;  %v11191_v9 = vld [vmem:[%s13470_s7 + $0xc8] sm:$0xff]  }
 0x4d3   :  { %v10099_v32 = vpop.f32.mrf.mxu0 }
 0x4d4   :  { %v13021_v18 = vsel %vm6305_vm13, %v6273_v33, %v6337_v16  ;;  %v6274_v14 = vadd.f32 %v12729_v23, %v6235_v59  ;;  %v10100_v44 = vadd.f32 %v10099_v32, %v10098_v60  ;;  %10415 = vmatpush3.bf16.msra.mxu1 %v11185_v27  ;;  %10519 = vmatpush3.bf16.msra.mxu0 %v11186_v6  ;;  %v13577_v6 = vld [vmem:[#allocation28_spill] sm:$0xff] }
 0x4d5   :  { %v6389_v2 = vpack.c.bf16 %v13021_v18, %v13018_v45  ;;  %v10101_v28 = vpop.f32.mrf.mxu0  ;;  %10416 = vmatprep.subr.bf16.mxu1 %v13531_v11  ;;  %10520 = vmatprep.subr.bf16.mxu0 %v13531_v11  ;;  %v10000_v5 = vadd.f32 %v13578_v46, %v13577_v6  ;;  %v5660_v16 = vadd.f32 %v9997_v62, %v12712_v40  ;;  %v11194_v32 = vld [vmem:[%s13470_s7 + $0x2b0] sm:$0xff]   ;;  %v11201_v46 = vld [vmem:[%s13470_s7 + $0x160] sm:$0xff]   ;;  %v11251_v45 = vld [vmem:[%s13470_s7 + $0x368] sm:$0xff]  }
 0x4d6   :  { %v6236_v19 = vadd.f32 %v10100_v44, %v5657_v36  ;;  %v6338_v58 = vmul.f32 0.2, %v6274_v14  ;;  %vm6306_vm14 = vcmp.gt.f32.partialorder %v6274_v14, 0.0 }
 0x4d7   :  { %v10102_v26 = vpop.f32.mrf.mxu0  ;;  %v5661_v20 = vadd.f32 %v10000_v5, %v12715_v43  ;;  %v11202_v5 = vld [vmem:[%s13470_s7 + $0x290] sm:$0xff]  }
 0x4d8   :  { %v6275_v25 = vadd.f32 %v12729_v23, %v6236_v19  ;;  %v10103_v63 = vadd.f32 %v10102_v26, %v10101_v28  ;;  %10417 = vmatpush3.bf16.msra.mxu1 %v11187_v48  ;;  %10521 = vmatpush3.bf16.msra.mxu0 %v11188_v57  ;;  %v13046_v37 = vsel %vm6306_vm14, %v6274_v14, %v6338_v58  ;;  %v11195_v19 = vld [vmem:[%s13470_s7 + $0x178] sm:$0xff]   ;;  %v11196_v58 = vld [vmem:[%s13470_s7 + $0x2a8] sm:$0xff]  }
 0x4d9   :  { %v10104_v0 = vpop.f32.mrf.mxu0  ;;  %10418 = vmatprep.subr.bf16.mxu1 %v13531_v11  ;;  %10522 = vmatprep.subr.bf16.mxu0 %v13531_v11 }
 0x4da   :  { %vm6307_vm15 = vcmp.gt.f32.partialorder %v6275_v25, 0.0  ;;  %v6339_v7 = vmul.f32 0.2, %v6275_v25  ;;  %v6237_v54 = vadd.f32 %v10103_v63, %v12706_v34  ;;  %v11192_v34 = vld [vmem:[%s13470_s7 + $0x2b8] sm:$0xff]  }
 0x4db   :  { %v10105_v30 = vpop.f32.mrf.mxu0 }
 0x4dc   :  { %v13048_v1 = vsel %vm6307_vm15, %v6275_v25, %v6339_v7  ;;  %v6276_v29 = vadd.f32 %v12729_v23, %v6237_v54  ;;  %v10106_v33 = vadd.f32 %v10105_v30, %v10104_v0  ;;  %10419 = vmatpush3.bf16.msra.mxu1 %v11189_v17  ;;  %10523 = vmatpush3.bf16.msra.mxu0 %v11190_v22  ;;  %v11197_v7 = vld [vmem:[%s13470_s7 + $0x170] sm:$0xff]   ;;  %v11198_v54 = vld [vmem:[%s13470_s7 + $0x2a0] sm:$0xff]  }
 0x4dd   :  { %v6390_v10 = vpack.c.bf16 %v13048_v1, %v13046_v37  ;;  %v10107_v55 = vpop.f32.mrf.mxu0  ;;  %10420 = vmatprep.subr.bf16.mxu1 %v13531_v11  ;;  %10548 = vmatprep.subr.bf16.mxu0 %v13531_v11  ;;  %v11227_v37 = vld [vmem:[%s13470_s7 + $0x278] sm:$0xff]   ;;  %v11228_v1 = vld [vmem:[%s13470_s7 + $0x3a8] sm:$0xff]  }
 0x4de   :  { %v6238_v27 = vadd.f32 %v10106_v33, %v12709_v42  ;;  %v6340_v56 = vmul.f32 0.2, %v6276_v29  ;;  %vm6308_vm0 = vcmp.gt.f32.partialorder %v6276_v29, 0.0  ;;  %v11193_v42 = vld [vmem:[%s13470_s7 + $0xc0] sm:$0xff]  }
 0x4df   :  { %10525 = vmatmul.mubr.bf16.vlgmr.msra.gmra.mxu0 %v6386_v12  ;;  %v10108_v60 = vpop.f32.mrf.mxu0 }
 0x4e0   :  { %v6277_v59 = vadd.f32 %v12729_v23, %v6238_v27  ;;  %v10109_v36 = vadd.f32 %v10108_v60, %v10107_v55  ;;  %10421 = vmatpush3.bf16.msra.mxu1 %v11191_v9  ;;  %10549 = vmatpush3.bf16.msra.mxu0 %v11192_v34  ;;  %v13080_v12 = vsel %vm6308_vm0, %v6276_v29, %v6340_v56  ;;  %v11199_v9 = vld [vmem:[%s13470_s7 + $0x168] sm:$0xff]   ;;  %v11203_v60 = vld [vmem:[%s13470_s7 + $0x158] sm:$0xff]  }
 0x4e1   :  { %v10110_v14 = vpop.f32.mrf.mxu0  ;;  %10422 = vmatprep.subr.bf16.mxu1 %v13531_v11  ;;  %10550 = vmatprep.subr.bf16.mxu0 %v13531_v11 }
 0x4e2   :  { %vm6309_vm2 = vcmp.gt.f32.partialorder %v6277_v59, 0.0  ;;  %v6341_v40 = vmul.f32 0.2, %v6277_v59  ;;  %v6239_v51 = vadd.f32 %v10109_v36, %v5660_v16  ;;  %10564 = vmatprep.mubr.msk.bf16.mxu0 %vm11279_vm4, %v13531_v11  ;;  %v11204_v16 = vld [vmem:[%s13470_s7 + $0x288] sm:$0xff]   ;;  %v11205_v36 = vld [vmem:[%s13470_s7 + $0x150] sm:$0xff]  }
 0x4e3   :  { %v10111_v44 = vpop.f32.mrf.mxu0 }
 0x4e4   :  { %v13082_v48 = vsel %vm6309_vm2, %v6277_v59, %v6341_v40  ;;  %v6278_v57 = vadd.f32 %v12729_v23, %v6239_v51  ;;  %v10112_v28 = vadd.f32 %v10111_v44, %v10110_v14  ;;  %10423 = vmatpush3.bf16.msra.mxu1 %v11193_v42  ;;  %10551 = vmatpush3.bf16.msra.mxu0 %v11194_v32  ;;  %v11206_v42 = vld [vmem:[%s13470_s7 + $0x280] sm:$0xff]   ;;  %v11207_v32 = vld [vmem:[%s13470_s7 + $0x148] sm:$0xff]   ;;  %v11208_v14 = vld [vmem:[%s13470_s7 + $0x338] sm:$0xff]  }
 0x4e5   :  { %v6391_v43 = vpack.c.bf16 %v13082_v48, %v13080_v12  ;;  %v10113_v26 = vpop.f32.mrf.mxu0  ;;  %10448 = vmatprep.subr.bf16.mxu1 %v13531_v11  ;;  %10552 = vmatprep.subr.bf16.mxu0 %v13531_v11  ;;  %v11209_v40 = vld [vmem:[%s13470_s7 + $0x140] sm:$0xff]   ;;  %v11210_v51 = vld [vmem:[%s13470_s7 + $0x330] sm:$0xff]   ;;  %v11259_v12 = vld [vmem:[%s13470_s7 + $0x3e8] sm:$0xff]  }
 0x4e6   :  { %v6240_v25 = vadd.f32 %v10112_v28, %v5661_v20  ;;  %v6342_v63 = vmul.f32 0.2, %v6278_v57  ;;  %vm6310_vm3 = vcmp.gt.f32.partialorder %v6278_v57, 0.0  ;;  %v11214_v20 = vld [vmem:[%s13470_s7 + $0x320] sm:$0xff]   ;;  %v11218_v44 = vld [vmem:[%s13470_s7 + $0x310] sm:$0xff]   ;;  %v11220_v28 = vld [vmem:[%s13470_s7 + $0x308] sm:$0xff]  }
 0x4e7   :  { %10425 = vmatmul.mubr.bf16.vlgmr.msra.gmra.mxu1 %v6381_v35  ;;  %v10114_v17 = vpop.f32.mrf.mxu0 }
 0x4e8   :  { %v6279_v22 = vadd.f32 %v12729_v23, %v6240_v25  ;;  %v10115_v0 = vadd.f32 %v10114_v17, %v10113_v26  ;;  %10449 = vmatpush3.bf16.msra.mxu1 %v11195_v19  ;;  %10553 = vmatpush3.bf16.msra.mxu0 %v11196_v58  ;;  %v13110_v35 = vsel %vm6310_vm3, %v6278_v57, %v6342_v63  ;;  %v11219_v57 = vld [vmem:[%s13470_s7 + $0x1d8] sm:$0xff]   ;;  %v11221_v19 = vld [vmem:[%s13470_s7 + $0x1d0] sm:$0xff]   ;;  %v11222_v58 = vld [vmem:[%s13470_s7 + $0x300] sm:$0xff]  }
 0x4e9   :  { %v10116_v31 = vpop.f32.mrf.mxu0  ;;  %10450 = vmatprep.subr.bf16.mxu1 %v13531_v11  ;;  %10554 = vmatprep.subr.bf16.mxu0 %v13531_v11  ;;  %v11223_v26 = vld [vmem:[%s13470_s7 + $0x1c8] sm:$0xff]   ;;  %v11224_v25 = vld [vmem:[%s13470_s7 + $0x3b8] sm:$0xff]   ;;  %v11225_v63 = vld [vmem:[%s13470_s7 + $0x1c0] sm:$0xff]  }
 0x4ea   :  { %vm6311_vm1 = vcmp.gt.f32.partialorder %v6279_v22, 0.0  ;;  %v6343_v15 = vmul.f32 0.2, %v6279_v22  ;;  %v6241_v38 = vadd.f32 %v10115_v0, %v12718_v4  ;;  %10464 = vmatprep.mubr.msk.bf16.mxu1 %vm11279_vm4, %v13531_v11  ;;  %v11200_v4 = vld [vmem:[%s13470_s7 + $0x298] sm:$0xff]   ;;  %v11226_v17 = vld [vmem:[%s13470_s7 + $0x3b0] sm:$0xff]  }
 0x4eb   :  { %v10117_v62 = vpop.f32.mrf.mxu0  ;;  %v11234_v0 = vld [vmem:[%s13470_s7 + $0x390] sm:$0xff]  }
 0x4ec   :  { %v13112_v30 = vsel %vm6311_vm1, %v6279_v22, %v6343_v15  ;;  %v6280_v29 = vadd.f32 %v12729_v23, %v6241_v38  ;;  %v10118_v33 = vadd.f32 %v10117_v62, %v10116_v31  ;;  %10451 = vmatpush3.bf16.msra.mxu1 %v11197_v7  ;;  %10555 = vmatpush3.bf16.msra.mxu0 %v11198_v54  ;;  %v11230_v22 = vld [vmem:[%s13470_s7 + $0x3a0] sm:$0xff]   ;;  %v11235_v7 = vld [vmem:[%s13470_s7 + $0x258] sm:$0xff]   ;;  %v11236_v54 = vld [vmem:[%s13470_s7 + $0x388] sm:$0xff]  }
 0x4ed   :  { %v6392_v34 = vpack.c.bf16 %v13112_v30, %v13110_v35  ;;  %10452 = vmatprep.subr.bf16.mxu1 %v13531_v11  ;;  %10556 = vmatprep.subr.bf16.mxu0 %v13531_v11  ;;  %v11237_v31 = vld [vmem:[%s13470_s7 + $0x250] sm:$0xff]   ;;  %v11238_v15 = vld [vmem:[%s13470_s7 + $0x380] sm:$0xff]   ;;  %v11239_v38 = vld [vmem:[%s13470_s7 + $0x248] sm:$0xff]  }
 0x4ee   :  { %v6242_v55 = vadd.f32 %v10118_v33, %v12723_v3  ;;  %v6344_v27 = vmul.f32 0.2, %v6280_v29  ;;  %vm6312_vm5 = vcmp.gt.f32.partialorder %v6280_v29, 0.0  ;;  %v11240_v62 = vld [vmem:[%s13470_s7 + $0x240] sm:$0xff]   ;;  %v11242_v30 = vld [vmem:[%s13470_s7 + $0x2f0] sm:$0xff]  }
 0x4f0   :  { %v6281_v6 = vadd.f32 %v12729_v23, %v6242_v55  ;;  %10453 = vmatpush3.bf16.msra.mxu1 %v11199_v9  ;;  %10557 = vmatpush3.bf16.msra.mxu0 %v11200_v4  ;;  %v13135_v56 = vsel %vm6312_vm5, %v6280_v29, %v6344_v27  ;;  %v11241_v29 = vld [vmem:[%s13470_s7 + $0x2f8] sm:$0xff]   ;;  %v11243_v4 = vld [vmem:[%s13470_s7 + $0x2e8] sm:$0xff]  }
 0x4f1   :  { %10454 = vmatprep.subr.bf16.mxu1 %v13531_v11  ;;  %10558 = vmatprep.subr.bf16.mxu0 %v13531_v11  ;;  %v11247_v55 = vld [vmem:[%s13470_s7 + $0x2c8] sm:$0xff]  }
 0x4f2   :  { %vm6313_vm6 = vcmp.gt.f32.partialorder %v6281_v6, 0.0  ;;  %v6345_v3 = vmul.f32 0.2, %v6281_v6 }
 0x4f4   :  { %v13137_v23 = vsel %vm6313_vm6, %v6281_v6, %v6345_v3  ;;  %10455 = vmatpush3.bf16.msra.mxu1 %v11201_v46  ;;  %10559 = vmatpush3.bf16.msra.mxu0 %v11202_v5  ;;  %v11248_v6 = vld [vmem:[%s13470_s7 + $0x2c0] sm:$0xff]   ;;  %v11249_v3 = vld [vmem:[%s13470_s7 + $0x378] sm:$0xff]  }
 0x4f5   :  { %v6393_v59 = vpack.c.bf16 %v13137_v23, %v13135_v56  ;;  %10456 = vmatprep.subr.bf16.mxu1 %v13531_v11  ;;  %10560 = vmatprep.subr.bf16.mxu0 %v13531_v11 }
 0x4f8   :  { %10457 = vmatpush3.bf16.msra.mxu1 %v11203_v60  ;;  %10561 = vmatpush3.bf16.msra.mxu0 %v11204_v16 }
 0x4f9   :  { %10458 = vmatprep.subr.bf16.mxu1 %v13531_v11  ;;  %10562 = vmatprep.subr.bf16.mxu0 %v13531_v11 }
 0x4fc   :  { %10459 = vmatpush3.bf16.msra.mxu1 %v11205_v36  ;;  %10563 = vmatpush3.bf16.msra.mxu0 %v11206_v42  ;;  %v11250_v42 = vld [vmem:[%s13470_s7 + $0x370] sm:$0xff]  }
 0x4fd   :  { %10460 = vmatprep.subr.bf16.mxu1 %v13531_v11  ;;  %10588 = vmatprep.subr.bf16.mxu0 %v13531_v11 }
 0x4ff   :  { %10565 = vmatmul.mubr.bf16.vlgmr.msra.gmra.mxu0 %v6388_v24  ;;  %v11213_v24 = vld [vmem:[%s13470_s7 + $0x1f0] sm:$0xff]  }
 0x500   :  { %10461 = vmatpush3.bf16.msra.mxu1 %v11207_v32  ;;  %10589 = vmatpush3.bf16.msra.mxu0 %v11208_v14 }
 0x501   :  { %10462 = vmatprep.subr.bf16.mxu1 %v13531_v11  ;;  %10590 = vmatprep.subr.bf16.mxu0 %v13531_v11 }
 0x502   :  { %10604 = vmatprep.mubr.msk.bf16.mxu0 %vm11279_vm4, %v13531_v11 }
 0x504   :  { %10463 = vmatpush3.bf16.msra.mxu1 %v11209_v40  ;;  %10591 = vmatpush3.bf16.msra.mxu0 %v11210_v51  ;;  %v11253_v51 = vld [vmem:[%s13470_s7 + $0x358] sm:$0xff]  }
 0x505   :  { %10488 = vmatprep.subr.bf16.mxu1 %v13531_v11  ;;  %10592 = vmatprep.subr.bf16.mxu0 %v13531_v11 }
 0x507   :  { %10465 = vmatmul.mubr.bf16.vlgmr.msra.gmra.mxu1 %v6383_v13  ;;  %v11217_v13 = vld [vmem:[%s13470_s7 + $0x1e0] sm:$0xff]  }
 0x508   :  { %10489 = vmatpush3.bf16.msra.mxu1 %v11211_v49  ;;  %10593 = vmatpush3.bf16.msra.mxu0 %v11212_v52  ;;  %v11254_v49 = vld [vmem:[%s13470_s7 + $0x350] sm:$0xff]   ;;  %v11255_v52 = vld [vmem:[%s13470_s7 + $0x348] sm:$0xff]  }
 0x509   :  { %10490 = vmatprep.subr.bf16.mxu1 %v13531_v11  ;;  %10594 = vmatprep.subr.bf16.mxu0 %v13531_v11 }
 0x50a   :  { %10504 = vmatprep.mubr.msk.bf16.mxu1 %vm11279_vm4, %v13531_v11 }
 0x50c   :  { %10491 = vmatpush3.bf16.msra.mxu1 %v11213_v24  ;;  %10595 = vmatpush3.bf16.msra.mxu0 %v11214_v20  ;;  %v11256_v20 = vld [vmem:[%s13470_s7 + $0x340] sm:$0xff]  }
 0x50d   :  { %10492 = vmatprep.subr.bf16.mxu1 %v13531_v11  ;;  %10596 = vmatprep.subr.bf16.mxu0 %v13531_v11 }
 0x510   :  { %10493 = vmatpush3.bf16.msra.mxu1 %v11215_v21  ;;  %10597 = vmatpush3.bf16.msra.mxu0 %v11216_v8 }
 0x511   :  { %10494 = vmatprep.subr.bf16.mxu1 %v13531_v11  ;;  %10598 = vmatprep.subr.bf16.mxu0 %v13531_v11 }
 0x514   :  { %10495 = vmatpush3.bf16.msra.mxu1 %v11217_v13  ;;  %10599 = vmatpush3.bf16.msra.mxu0 %v11218_v44  ;;  %v11257_v13 = vld [vmem:[%s13470_s7 + $0x3f8] sm:$0xff]  }
 0x515   :  { %10496 = vmatprep.subr.bf16.mxu1 %v13531_v11  ;;  %10600 = vmatprep.subr.bf16.mxu0 %v13531_v11 }
 0x518   :  { %10497 = vmatpush3.bf16.msra.mxu1 %v11219_v57  ;;  %10601 = vmatpush3.bf16.msra.mxu0 %v11220_v28 }
 0x519   :  { %10498 = vmatprep.subr.bf16.mxu1 %v13531_v11  ;;  %10602 = vmatprep.subr.bf16.mxu0 %v13531_v11 }
 0x51c   :  { %10499 = vmatpush3.bf16.msra.mxu1 %v11221_v19  ;;  %10603 = vmatpush3.bf16.msra.mxu0 %v11222_v58  ;;  %v11258_v19 = vld [vmem:[%s13470_s7 + $0x3f0] sm:$0xff]  }
 0x51d   :  { %10500 = vmatprep.subr.bf16.mxu1 %v13531_v11  ;;  %10628 = vmatprep.subr.bf16.mxu0 %v13531_v11 }
 0x51f   :  { %10605 = vmatmul.mubr.bf16.vlgmr.msra.gmra.mxu0 %v6390_v10  ;;  %v11229_v10 = vld [vmem:[%s13470_s7 + $0x270] sm:$0xff]  }
 0x520   :  { %10501 = vmatpush3.bf16.msra.mxu1 %v11223_v26  ;;  %10629 = vmatpush3.bf16.msra.mxu0 %v11224_v25 }
 0x521   :  { %10502 = vmatprep.subr.bf16.mxu1 %v13531_v11  ;;  %10630 = vmatprep.subr.bf16.mxu0 %v13531_v11 }
 0x522   :  { %10644 = vmatprep.mubr.msk.bf16.mxu0 %vm11279_vm4, %v13531_v11 }
 0x524   :  { %10503 = vmatpush3.bf16.msra.mxu1 %v11225_v63  ;;  %10631 = vmatpush3.bf16.msra.mxu0 %v11226_v17  ;;  %v11261_v63 = vld [vmem:[%s13470_s7 + $0x3d8] sm:$0xff]   ;;  %v11262_v17 = vld [vmem:[%s13470_s7 + $0x3d0] sm:$0xff]  }
 0x525   :  { %10528 = vmatprep.subr.bf16.mxu1 %v13531_v11  ;;  %10632 = vmatprep.subr.bf16.mxu0 %v13531_v11 }
 0x527   :  { %10505 = vmatmul.mubr.bf16.vlgmr.msra.gmra.mxu1 %v6385_v41  ;;  %v11233_v41 = vld [vmem:[%s13470_s7 + $0x260] sm:$0xff]  }
 0x528   :  { %10529 = vmatpush3.bf16.msra.mxu1 %v11227_v37  ;;  %10633 = vmatpush3.bf16.msra.mxu0 %v11228_v1  ;;  %v11263_v37 = vld [vmem:[%s13470_s7 + $0x3c8] sm:$0xff]  }
 0x529   :  { %10530 = vmatprep.subr.bf16.mxu1 %v13531_v11  ;;  %10634 = vmatprep.subr.bf16.mxu0 %v13531_v11 }
 0x52a   :  { %10544 = vmatprep.mubr.msk.bf16.mxu1 %vm11279_vm4, %v13531_v11 }
 0x52c   :  { %10531 = vmatpush3.bf16.msra.mxu1 %v11229_v10  ;;  %10635 = vmatpush3.bf16.msra.mxu0 %v11230_v22  ;;  %v11264_v10 = vld [vmem:[%s13470_s7 + $0x3c0] sm:$0xff]  }
 0x52d   :  { %10532 = vmatprep.subr.bf16.mxu1 %v13531_v11  ;;  %10636 = vmatprep.subr.bf16.mxu0 %v13531_v11 }
 0x530   :  { %10533 = vmatpush3.bf16.msra.mxu1 %v11231_v39  ;;  %10637 = vmatpush3.bf16.msra.mxu0 %v11232_v53 }
 0x531   :  { %10534 = vmatprep.subr.bf16.mxu1 %v13531_v11  ;;  %10638 = vmatprep.subr.bf16.mxu0 %v13531_v11 }
 0x534   :  { %10535 = vmatpush3.bf16.msra.mxu1 %v11233_v41  ;;  %10639 = vmatpush3.bf16.msra.mxu0 %v11234_v0 }
 0x535   :  { %10536 = vmatprep.subr.bf16.mxu1 %v13531_v11  ;;  %10640 = vmatprep.subr.bf16.mxu0 %v13531_v11 }
 0x538   :  { %10537 = vmatpush3.bf16.msra.mxu1 %v11235_v7  ;;  %10641 = vmatpush3.bf16.msra.mxu0 %v11236_v54 }
 0x539   :  { %10538 = vmatprep.subr.bf16.mxu1 %v13531_v11  ;;  %10642 = vmatprep.subr.bf16.mxu0 %v13531_v11 }
 0x53c   :  { %10539 = vmatpush3.bf16.msra.mxu1 %v11237_v31  ;;  %10643 = vmatpush3.bf16.msra.mxu0 %v11238_v15 }
 0x53d   :  { %10540 = vmatprep.subr.bf16.mxu1 %v13531_v11  ;;  %10668 = vmatprep.subr.bf16.mxu0 %v13531_v11 }
 0x53f   :  { %10645 = vmatmul.mubr.bf16.vlgmr.msra.gmra.mxu0 %v6392_v34  ;;  %v11246_v34 = vld [vmem:[%s13470_s7 + $0x2d0] sm:$0xff]  }
 0x540   :  { %10541 = vmatpush3.bf16.msra.mxu1 %v11239_v38  ;;  %10672 = vmatprep.mubr.msk.bf16.mxu0 %vm11279_vm4, %v13531_v11 }
 0x541   :  { %10542 = vmatprep.subr.bf16.mxu1 %v13531_v11 }
 0x544   :  { %10543 = vmatpush3.bf16.msra.mxu1 %v11240_v62 }
 0x545   :  { %10568 = vmatprep.subr.bf16.mxu1 %v13531_v11 }
 0x547   :  { %10545 = vmatmul.mubr.bf16.vlgmr.msra.gmra.mxu1 %v6387_v50  ;;  %v6509_v35 = vpop.f32.mrf.mxu1  ;;  %v11245_v50 = vld [vmem:[%s13470_s7 + $0x2d8] sm:$0xff]  }
 0x548   :  { %10569 = vmatpush3.bf16.msra.mxu1 %v11241_v29  ;;  %10584 = vmatprep.mubr.msk.bf16.mxu1 %vm11279_vm4, %v13531_v11 }
 0x549   :  { %v10366_v33 = vpop.f32.mrf.mxu1  ;;  %10570 = vmatprep.subr.bf16.mxu1 %v13531_v11 }
 0x54b   :  { %v6512_v9 = vpop.f32.mrf.mxu1 }
 0x54c   :  { %10571 = vmatpush3.bf16.msra.mxu1 %v11242_v30 }
 0x54d   :  { %v10367_v61 = vpop.f32.mrf.mxu1  ;;  %10572 = vmatprep.subr.bf16.mxu1 %v13531_v11 }
 0x550   :  { %10573 = vmatpush3.bf16.msra.mxu1 %v11243_v4 }
 0x551   :  { %10574 = vmatprep.subr.bf16.mxu1 %v13531_v11 }
 0x554   :  { %10575 = vmatpush3.bf16.msra.mxu1 %v11244_v47 }
 0x555   :  { %10576 = vmatprep.subr.bf16.mxu1 %v13531_v11 }
 0x558   :  { %10577 = vmatpush3.bf16.msra.mxu1 %v11245_v50 }
 0x559   :  { %10578 = vmatprep.subr.bf16.mxu1 %v13531_v11 }
 0x55c   :  { %10579 = vmatpush3.bf16.msra.mxu1 %v11246_v34 }
 0x55d   :  { %10580 = vmatprep.subr.bf16.mxu1 %v13531_v11 }
 0x55f   :  { %v13352_v27 = vpop.f32.mrf.mxu0 }
 0x560   :  { %10581 = vmatpush3.bf16.msra.mxu1 %v11247_v55 }
 0x561   :  { %v10446_v46 = vpop.f32.mrf.mxu0  ;;  %10582 = vmatprep.subr.bf16.mxu1 %v13531_v11 }
 0x563   :  { %v13358_v5 = vpop.f32.mrf.mxu0 }
 0x564   :  { %10583 = vmatpush3.bf16.msra.mxu1 %v11248_v6 }
 0x565   :  { %v10447_v60 = vpop.f32.mrf.mxu0  ;;  %10608 = vmatprep.subr.bf16.mxu1 %v13531_v11 }
 0x567   :  { %v6598_v16 = vpop.f32.mrf.mxu1  ;;  %10585 = vmatmul.mubr.bf16.vlgmr.msra.gmra.mxu1 %v6389_v2  ;;  %v11252_v2 = vld [vmem:[%s13470_s7 + $0x360] sm:$0xff]  }
 0x568   :  { %v6599_v36 = vadd.f32 %v6598_v16, %v6509_v35  ;;  %10609 = vmatpush3.bf16.msra.mxu1 %v11249_v3  ;;  %10624 = vmatprep.mubr.msk.bf16.mxu1 %vm11279_vm4, %v13531_v11 }
 0x569   :  { %v10386_v32 = vpop.f32.mrf.mxu1  ;;  %10610 = vmatprep.subr.bf16.mxu1 %v13531_v11 }
 0x56a   :  { %v11266_v32 = vld [vmem:[%s13472_s9] sm:$0xff]  }
 0x56b   :  { %v6601_v14 = vpop.f32.mrf.mxu1 }
 0x56c   :  { %v6602_v40 = vadd.f32 %v6601_v14, %v6512_v9  ;;  %10611 = vmatpush3.bf16.msra.mxu1 %v11250_v42  ;;  %v16_v14 = vstv %s13473_s10 }
 0x56d   :  { %v10387_v18 = vpop.f32.mrf.mxu1  ;;  %10612 = vmatprep.subr.bf16.mxu1 %v13531_v11  ;;  %17 = vst [vmem:[#allocation4] sm:$0x1] %v16_v14 }
 0x570   :  { %10613 = vmatpush3.bf16.msra.mxu1 %v11251_v45 }
 0x571   :  { %10614 = vmatprep.subr.bf16.mxu1 %v13531_v11 }
 0x574   :  { %10615 = vmatpush3.bf16.msra.mxu1 %v11252_v2 }
 0x575   :  { %10616 = vmatprep.subr.bf16.mxu1 %v13531_v11 }
 0x578   :  { %10617 = vmatpush3.bf16.msra.mxu1 %v11253_v51 }
 0x579   :  { %10618 = vmatprep.subr.bf16.mxu1 %v13531_v11 }
 0x57c   :  { %10619 = vmatpush3.bf16.msra.mxu1 %v11254_v49 }
 0x57d   :  { %10620 = vmatprep.subr.bf16.mxu1 %v13531_v11 }
 0x57f   :  { %v13393_v24 = vpop.f32.mrf.mxu0 }
 0x580   :  { %10621 = vmatpush3.bf16.msra.mxu1 %v11255_v52 }
 0x581   :  { %v10486_v21 = vpop.f32.mrf.mxu0  ;;  %10622 = vmatprep.subr.bf16.mxu1 %v13531_v11 }
 0x583   :  { %v13399_v8 = vpop.f32.mrf.mxu0 }
 0x584   :  { %10623 = vmatpush3.bf16.msra.mxu1 %v11256_v20 }
 0x585   :  { %v10487_v44 = vpop.f32.mrf.mxu0  ;;  %10648 = vmatprep.subr.bf16.mxu1 %v13531_v11 }
 0x587   :  { %v6704_v57 = vpop.f32.mrf.mxu1  ;;  %10625 = vmatmul.mubr.bf16.vlgmr.msra.gmra.mxu1 %v6391_v43  ;;  %v11260_v43 = vld [vmem:[%s13470_s7 + $0x3e0] sm:$0xff]  }
 0x588   :  { %v6711_v28 = vadd.f32 %v6704_v57, %v6599_v36  ;;  %10649 = vmatpush3.bf16.msra.mxu1 %v11257_v13  ;;  %10664 = vmatprep.mubr.msk.bf16.mxu1 %vm11279_vm4, %v13531_v11 }
 0x589   :  { %v10406_v58 = vpop.f32.mrf.mxu1  ;;  %10650 = vmatprep.subr.bf16.mxu1 %v13531_v11 }
 0x58b   :  { %v6707_v26 = vpop.f32.mrf.mxu1 }
 0x58c   :  { %v6712_v25 = vadd.f32 %v6707_v26, %v6602_v40  ;;  %10651 = vmatpush3.bf16.msra.mxu1 %v11258_v19 }
 0x58d   :  { %v10407_v48 = vpop.f32.mrf.mxu1  ;;  %10652 = vmatprep.subr.bf16.mxu1 %v13531_v11 }
 0x590   :  { %10653 = vmatpush3.bf16.msra.mxu1 %v11259_v12 }
 0x591   :  { %10654 = vmatprep.subr.bf16.mxu1 %v13531_v11 }
 0x594   :  { %10655 = vmatpush3.bf16.msra.mxu1 %v11260_v43 }
 0x595   :  { %10656 = vmatprep.subr.bf16.mxu1 %v13531_v11 }
 0x598   :  { %10657 = vmatpush3.bf16.msra.mxu1 %v11261_v63 }
 0x599   :  { %10658 = vmatprep.subr.bf16.mxu1 %v13531_v11 }
 0x59c   :  { %10659 = vmatpush3.bf16.msra.mxu1 %v11262_v17 }
 0x59d   :  { %10660 = vmatprep.subr.bf16.mxu1 %v13531_v11 }
 0x59f   :  { %v7352_v1 = vpop.f32.mrf.mxu0 }
 0x5a0   :  { %10661 = vmatpush3.bf16.msra.mxu1 %v11263_v37 }
 0x5a1   :  { %v10526_v22 = vpop.f32.mrf.mxu0  ;;  %10662 = vmatprep.subr.bf16.mxu1 %v13531_v11 }
 0x5a3   :  { %v7355_v39 = vpop.f32.mrf.mxu0 }
 0x5a4   :  { %10663 = vmatpush3.bf16.msra.mxu1 %v11264_v10 }
 0x5a5   :  { %v10527_v53 = vpop.f32.mrf.mxu0 }
 0x5a6   :  { %v9128_v53 = vld [vmem:[%s13474_s8] ss:$0 sm:$0xff] }
 0x5a7   :  { %v6812_v41 = vpop.f32.mrf.mxu1  ;;  %10665 = vmatmul.mubr.bf16.vlgmr.msra.gmra.mxu1 %v6393_v59 }
 0x5a8   :  { %v6819_v0 = vadd.f32 %v6812_v41, %v6711_v28 }
 0x5a9   :  { %v10426_v7 = vpop.f32.mrf.mxu1 }
 0x5aa   :  { %v6927_v30 = vadd.f32 %v13352_v27, %v6819_v0 }
 0x5ab   :  { %v6815_v54 = vpop.f32.mrf.mxu1 }
 0x5ac   :  { %v6820_v31 = vadd.f32 %v6815_v54, %v6712_v25 }
 0x5ad   :  { %v10427_v15 = vpop.f32.mrf.mxu1 }
 0x5ae   :  { %v6928_v61 = vadd.f32 %v13358_v5, %v6820_v31  ;;  %v11265_v5 = vld [vmem:[%s13472_s9 + $0x8] sm:$0xff]  }
 0x5af   :  { %10669 = vmatpush3.bf16.msra.mxu0 %v11265_v5 }
 0x5b0   :  { %10670 = vmatprep.subr.bf16.mxu0 %v13531_v11 }
 0x5b3   :  { %10671 = vmatpush3.bf16.msra.mxu0 %v11266_v32 }
 0x5bf   :  { %v7568_v38 = vpop.f32.mrf.mxu0 }
 0x5c1   :  { %v10566_v62 = vpop.f32.mrf.mxu0 }
 0x5c3   :  { %v7571_v29 = vpop.f32.mrf.mxu0 }
 0x5c5   :  { %v10567_v35 = vpop.f32.mrf.mxu0 }
 0x5c7   :  { %v7028_v33 = vpop.f32.mrf.mxu1 }
 0x5c8   :  { %v7035_v9 = vadd.f32 %v7028_v33, %v6927_v30 }
 0x5c9   :  { %v10466_v4 = vpop.f32.mrf.mxu1 }
 0x5ca   :  { %v7143_v6 = vadd.f32 %v13393_v24, %v7035_v9  ;;  %v9129_v4 = vld [vmem:[#allocation4] ss:$0 sm:$0xff] }
 0x5cb   :  { %v7031_v47 = vpop.f32.mrf.mxu1 }
 0x5cc   :  { %v7036_v50 = vadd.f32 %v7031_v47, %v6928_v61 }
 0x5cd   :  { %v10467_v56 = vpop.f32.mrf.mxu1 }
 0x5ce   :  { %v7144_v16 = vadd.f32 %v13399_v8, %v7036_v50 }
 0x5df   :  { %v7784_v23 = vpop.f32.mrf.mxu0 }
 0x5e1   :  { %v10606_v59 = vpop.f32.mrf.mxu0 }
 0x5e3   :  { %v7787_v34 = vpop.f32.mrf.mxu0 }
 0x5e5   :  { %v10607_v55 = vpop.f32.mrf.mxu0 }
 0x5e7   :  { %v7244_v46 = vpop.f32.mrf.mxu1 }
 0x5e8   :  { %v7251_v3 = vadd.f32 %v7244_v46, %v7143_v6 }
 0x5e9   :  { %v10506_v60 = vpop.f32.mrf.mxu1 }
 0x5ea   :  { %v7359_v51 = vadd.f32 %v7352_v1, %v7251_v3 }
 0x5eb   :  { %v7247_v27 = vpop.f32.mrf.mxu1 }
 0x5ec   :  { %v7252_v36 = vadd.f32 %v7247_v27, %v7144_v16 }
 0x5ed   :  { %v10507_v42 = vpop.f32.mrf.mxu1 }
 0x5ee   :  { %v7360_v20 = vadd.f32 %v7355_v39, %v7252_v36 }
 0x5ff   :  { %v8000_v40 = vpop.f32.mrf.mxu0 }
 0x601   :  { %v10646_v45 = vpop.f32.mrf.mxu0 }
 0x603   :  { %v8003_v18 = vpop.f32.mrf.mxu0 }
 0x605   :  { %v10647_v2 = vpop.f32.mrf.mxu0 }
 0x607   :  { %v7460_v49 = vpop.f32.mrf.mxu1 }
 0x608   :  { %v7467_v52 = vadd.f32 %v7460_v49, %v7359_v51 }
 0x609   :  { %v10546_v24 = vpop.f32.mrf.mxu1 }
 0x60a   :  { %v7575_v12 = vadd.f32 %v7568_v38, %v7467_v52 }
 0x60b   :  { %v7463_v21 = vpop.f32.mrf.mxu1 }
 0x60c   :  { %v7468_v8 = vadd.f32 %v7463_v21, %v7360_v20 }
 0x60d   :  { %v10547_v13 = vpop.f32.mrf.mxu1 }
 0x60e   :  { %v7576_v43 = vadd.f32 %v7571_v29, %v7468_v8 }
 0x627   :  { %v7676_v44 = vpop.f32.mrf.mxu1 }
 0x628   :  { %v7683_v48 = vadd.f32 %v7676_v44, %v7575_v12 }
 0x629   :  { %v10586_v57 = vpop.f32.mrf.mxu1 }
 0x62a   :  { %v7791_v17 = vadd.f32 %v7784_v23, %v7683_v48 }
 0x62b   :  { %v7679_v28 = vpop.f32.mrf.mxu1 }
 0x62c   :  { %v7684_v63 = vadd.f32 %v7679_v28, %v7576_v43 }
 0x62d   :  { %v10587_v19 = vpop.f32.mrf.mxu1 }
 0x62e   :  { %v7792_v1 = vadd.f32 %v7787_v34, %v7684_v63 }
 0x647   :  { %v7892_v58 = vpop.f32.mrf.mxu1 }
 0x648   :  { %v7899_v37 = vadd.f32 %v7892_v58, %v7791_v17 }
 0x649   :  { %v10626_v11 = vpop.f32.mrf.mxu1 }
 0x64a   :  { %v8007_v22 = vadd.f32 %v8000_v40, %v7899_v37 }
 0x64b   :  { %v7895_v26 = vpop.f32.mrf.mxu1 }
 0x64c   :  { %v7900_v10 = vadd.f32 %v7895_v26, %v7792_v1 }
 0x64d   :  { %v10627_v25 = vpop.f32.mrf.mxu1 }
 0x64e   :  { %v8008_v54 = vadd.f32 %v8003_v18, %v7900_v10 }
 0x667   :  { %v8108_v39 = vpop.f32.mrf.mxu1 }
 0x668   :  { %v8115_v41 = vadd.f32 %v8108_v39, %v8007_v22 }
 0x669   :  { %v10666_v0 = vpop.f32.mrf.mxu1 }
 0x66a   :  { %v8124_v7 = vadd.f32 %v9128_v53, %v8115_v41 }
 0x66b   :  { %v8111_v31 = vpop.f32.mrf.mxu1 }
 0x66c   :  { %v8116_v15 = vadd.f32 %v8111_v31, %v8008_v54  ;;  %v8128_v62 = vmul.f32 0.2, %v8124_v7  ;;  %vm8126_vm4 = vcmp.gt.f32.partialorder %v8124_v7, 0.0 }
 0x66d   :  { %v10667_v38 = vpop.f32.mrf.mxu1 }
 0x66e   :  { %v8125_v29 = vadd.f32 %v9128_v53, %v8116_v15  ;;  %v8130_v30 = vsel %vm8126_vm4, %v8124_v7, %v8128_v62 }
 0x670   :  { %vm8127_vm7 = vcmp.gt.f32.partialorder %v8125_v29, 0.0  ;;  %v8129_v35 = vmul.f32 0.2, %v8125_v29 }
 0x672   :  { %v8131_v33 = vsel %vm8127_vm7, %v8125_v29, %v8129_v35 }
 0x673   :  { %v8132_v9 = vpack.c.bf16 %v8131_v33, %v8130_v30 }
 0x675   :  { %10673 = vmatmul.mubr.msk.bf16.vlgmr.msra.gmra.mxu0 %vm8156_vm8, %v8132_v9 }
 0x735   :  { %v8194_v61 = vpop.f32.mrf.mxu0 }
 0x736   :  { %v8195_v47 = vadd.f32 %v9129_v4, %v8194_v61 }
 0x737   :  { %v10674_v50 = vpop.f32.mrf.mxu0 }
 0x738   :  { %v9133_v56 = vmul.f32 -1.442695, %v8195_v47 }
 0x739   :  { %v8197_v23 = vpop.f32.mrf.mxu0 }
 0x73a   :  { %11267 = vpow2.f32 %v9133_v56  ;;  %v8198_v59 = vadd.f32 %v9129_v4, %v8197_v23 }
 0x73b   :  { %v10675_v34 = vpop.f32.mrf.mxu0 }
 0x73c   :  { %v9134_v55 = vmul.f32 -1.442695, %v8198_v59 }
 0x73e   :  { %11269 = vpow2.f32 %v9134_v55 }
 0x747   :  { %v11268_v6 = vpop.eup %11267 }
 0x748   :  { %v8207_v46 = vadd.f32 1.0, %v11268_v6 }
 0x74a   :  { %11271 = vrcp.f32 %v8207_v46 }
 0x74b   :  { %v11270_v3 = vpop.eup %11269 }
 0x74c   :  { %v8208_v60 = vadd.f32 1.0, %v11270_v3 }
 0x74e   :  { %11273 = vrcp.f32 %v8208_v60 }
 0x757   :  { %v11272_v16 = vpop.eup %11271 }
 0x758   :  { %8214 = vst.msk [vmem:[%s13475_s11] sm:$0xff] %vm8213_vm9, %v11272_v16 }
 0x75b   :  { %v11274_v27 = vpop.eup %11273 }
 0x75c   :  { %8215 = vst.msk [vmem:[%s13475_s11 + $0x8] sm:$0xff] %vm8213_vm9, %v11274_v27 }

</bundles_post_ra>
